<compile_context>
chip_gen: v7x
topology: tpu7x:2x2x1
jax: 0.10.0
libtpu: 0.0.40
codegen_flags: <defaults>
</compile_context>

<pallas_src>
import functools
import math

import jax
import jax.numpy as jnp
from jax.experimental import pallas as pl
from jax.experimental.pallas import tpu as pltpu

# ----------------------------------------------------------------------------
# Small synthetic config (distilroberta-base is hidden=768, layers=6, heads=12;
# scaled down, forward-pass structure preserved).
# ----------------------------------------------------------------------------
VOCAB = 100
TYPE_VOCAB = 2
MAX_POS = 32
HIDDEN = 64
N_HEADS = 4
HEAD_DIM = HIDDEN // N_HEADS
FFN = 4 * HIDDEN
N_LAYERS = 4            # >= 4 so that hidden_states[-1..-4] exist
OUTPUT_DIM = 3
DROPOUT_RATE = 0.1      # eval-mode dropout == identity (see forward)
LN_EPS = 1e-5

BATCH = 2
SEQ = 8

assert N_LAYERS >= 4, "last-4 hidden-state concat needs >= 4 layers"


# ----------------------------------------------------------------------------
# In-kernel helpers
# ----------------------------------------------------------------------------
def _ln(y, g, b, eps):
    """LayerNorm over the last axis. y:(M,D) f32, g/b:(1,D)."""
    mean = jnp.mean(y, axis=-1, keepdims=True)
    var = jnp.mean((y - mean) ** 2, axis=-1, keepdims=True)
    return (y - mean) * jax.lax.rsqrt(var + eps) * g + b


def _gelu_exact(x):
    # Exact erf GELU to match PyTorch nn.GELU / HF RoBERTa "gelu".
    return 0.5 * x * (1.0 + jax.lax.erf(x * (1.0 / math.sqrt(2.0))))


# ----------------------------------------------------------------------------
# The single fused kernel: emb-LN -> N_LAYERS x (attn + FFN) -> CLS concat ->
# classifier.  Everything stays resident in vregs/VMEM.
# ----------------------------------------------------------------------------
def _gen2_fused_kernel(emb_ref, mask_ref,
                       emb_ln_g_ref, emb_ln_b_ref,
                       wqkv_ref, bqkv_ref, wo_ref, bo_ref,
                       ln1g_ref, ln1b_ref, w1_ref, b1_ref, w2_ref, b2_ref,
                       ln2g_ref, ln2b_ref,
                       cls_w_ref, cls_b_ref,
                       o_ref,
                       *, batch, seq, n_layers, n_heads, head_dim, eps):
    H = n_heads * head_dim

    mask = mask_ref[...].astype(jnp.float32)            # (B, S) additive

    # ---- embedding LayerNorm (fused in) ----
    x = _ln(emb_ref[...].astype(jnp.float32),
            emb_ln_g_ref[...], emb_ln_b_ref[...], eps)  # (B*S, H)

    cls_parts = [None] * 4                               # last-4 CLS rows

    for l in range(n_layers):                            # static unroll
        # ---- fused QKV projection, batch folded into M (lane-dense 3H) ----
        # 1/sqrt(head_dim) is already folded into the Q columns of wqkv.
        qkv = (jnp.dot(x, wqkv_ref[l], preferred_element_type=jnp.float32)
               + bqkv_ref[l])                            # (B*S, 3H)

        # ---- multi-head attention (per batch element, per head) ----
        ctx_rows = []
        for b in range(batch):                           # static unroll
            qkv_b = qkv[b * seq:(b + 1) * seq, :]        # (S, 3H)
            mask_b = mask[b:b + 1, :]                    # (1, S)
            heads = []
            for h in range(n_heads):                     # static unroll
                q = qkv_b[:, h * head_dim:(h + 1) * head_dim]
                k = qkv_b[:, H + h * head_dim:H + (h + 1) * head_dim]
                v = qkv_b[:, 2 * H + h * head_dim:2 * H + (h + 1) * head_dim]
                s = jax.lax.dot_general(q, k, (((1,), (1,)), ((), ())),
                                        preferred_element_type=jnp.float32)
                s = s + mask_b                           # scale pre-folded
                s = s - jnp.max(s, axis=-1, keepdims=True)
                p = jnp.exp(s)
                p = p / jnp.sum(p, axis=-1, keepdims=True)   # exact softmax
                heads.append(jnp.dot(p, v, preferred_element_type=jnp.float32))
            ctx_rows.append(jnp.concatenate(heads, axis=-1))    # (S, H)
        ctx = jnp.concatenate(ctx_rows, axis=0)                 # (B*S, H)

        # ---- single output projection (no per-head accumulation) ----
        attn = (jnp.dot(ctx, wo_ref[l], preferred_element_type=jnp.float32)
                + bo_ref[l])

        # ---- residual + LN1, FFN (erf GELU), residual + LN2 ----
        x1 = _ln(x + attn, ln1g_ref[l], ln1b_ref[l], eps)
        hmid = (jnp.dot(x1, w1_ref[l], preferred_element_type=jnp.float32)
                + b1_ref[l])
        hmid = _gelu_exact(hmid)
        ff = (jnp.dot(hmid, w2_ref[l], preferred_element_type=jnp.float32)
              + b2_ref[l])
        x = _ln(x1 + ff, ln2g_ref[l], ln2b_ref[l], eps)

        # ---- collect CLS rows of the last 4 hidden states (in -1..-4 order) --
        slot = n_layers - 1 - l
        if slot < 4:
            cls_rows = jnp.concatenate(
                [x[b * seq:b * seq + 1, :] for b in range(batch)], axis=0)
            cls_parts[slot] = cls_rows                   # (B, H)

    # ---- torch.cat(hidden_states[-1..-4])[:, 0, :] -> dropout(id) -> linear --
    cls_cat = jnp.concatenate(cls_parts, axis=-1)        # (B, 4H)
    logits = (jnp.dot(cls_cat, cls_w_ref[...], preferred_element_type=jnp.float32)
              + cls_b_ref[...])                          # (B, OUT)
    o_ref[...] = logits.astype(o_ref.dtype)


def gen2_fused(emb2d, add_mask, params, *, batch, seq):
    """emb2d: (B*S, H) raw embeddings (pre-LN); add_mask: (B, S) additive."""
    H = HIDDEN
    BS = batch * seq
    kernel = functools.partial(
        _gen2_fused_kernel,
        batch=batch, seq=seq, n_layers=N_LAYERS,
        n_heads=N_HEADS, head_dim=HEAD_DIM, eps=LN_EPS)

    def full(shape):
        nd = len(shape)
        return pl.BlockSpec(shape, lambda i, _nd=nd: (0,) * _nd)

    in_specs = [
        full((BS, H)),                                   # emb (pre-LN)
        full((batch, seq)),                              # additive mask
        full((1, H)), full((1, H)),                      # emb LN g/b
        full((N_LAYERS, H, 3 * H)), full((N_LAYERS, 1, 3 * H)),   # wqkv/bqkv
        full((N_LAYERS, H, H)), full((N_LAYERS, 1, H)),           # wo/bo
        full((N_LAYERS, 1, H)), full((N_LAYERS, 1, H)),           # ln1 g/b
        full((N_LAYERS, H, FFN)), full((N_LAYERS, 1, FFN)),       # w1/b1
        full((N_LAYERS, FFN, H)), full((N_LAYERS, 1, H)),         # w2/b2
        full((N_LAYERS, 1, H)), full((N_LAYERS, 1, H)),           # ln2 g/b
        full((4 * H, OUTPUT_DIM)), full((1, OUTPUT_DIM)),         # classifier
    ]
    return pl.pallas_call(
        kernel,
        out_shape=jax.ShapeDtypeStruct((batch, OUTPUT_DIM), jnp.float32),
        grid=(1,),
        in_specs=in_specs,
        out_specs=full((batch, OUTPUT_DIM)),
        compiler_params=pltpu.CompilerParams(
            dimension_semantics=("arbitrary",)),
    )(emb2d, add_mask,
      params["emb_ln_g"], params["emb_ln_b"],
      params["wqkv"], params["bqkv"], params["wo"], params["bo"],
      params["ln1_g"], params["ln1_b"], params["w1"], params["b1"],
      params["w2"], params["b2"], params["ln2_g"], params["ln2_b"],
      params["cls_w"], params["cls_b"])


# ----------------------------------------------------------------------------
# Deterministic parameter init (synthetic — no checkpoint load)
# ----------------------------------------------------------------------------
def init_params(key):
    def nrm(k, shape, scale=0.02):
        return scale * jax.random.normal(k, shape, dtype=jnp.float32)

    keys = iter(jax.random.split(key, 4 + N_LAYERS * 4))
    p = {
        "word_emb": nrm(next(keys), (VOCAB, HIDDEN)),
        "pos_emb": nrm(next(keys), (MAX_POS, HIDDEN)),
        "type_emb": nrm(next(keys), (TYPE_VOCAB, HIDDEN)),
        "emb_ln_g": jnp.ones((1, HIDDEN), jnp.float32),
        "emb_ln_b": jnp.zeros((1, HIDDEN), jnp.float32),
        "cls_w": nrm(next(keys), (4 * HIDDEN, OUTPUT_DIM)),
        "cls_b": jnp.zeros((1, OUTPUT_DIM), jnp.float32),
    }

    att_scale = 1.0 / math.sqrt(HEAD_DIM)
    wqkv, wo, w1, w2 = [], [], [], []
    for _ in range(N_LAYERS):
        w = nrm(next(keys), (HIDDEN, 3 * HIDDEN))
        # Fold 1/sqrt(head_dim) into the Q columns at init time (the matching
        # bqkv Q slice would be scaled too; it is zero here).
        w = w.at[:, :HIDDEN].multiply(att_scale)
        wqkv.append(w)
        wo.append(nrm(next(keys), (HIDDEN, HIDDEN)))
        w1.append(nrm(next(keys), (HIDDEN, FFN)))
        w2.append(nrm(next(keys), (FFN, HIDDEN)))

    p["wqkv"] = jnp.stack(wqkv)                                   # (L, H, 3H)
    p["bqkv"] = jnp.zeros((N_LAYERS, 1, 3 * HIDDEN), jnp.float32)
    p["wo"] = jnp.stack(wo)                                       # (L, H, H)
    p["bo"] = jnp.zeros((N_LAYERS, 1, HIDDEN), jnp.float32)
    p["ln1_g"] = jnp.ones((N_LAYERS, 1, HIDDEN), jnp.float32)
    p["ln1_b"] = jnp.zeros((N_LAYERS, 1, HIDDEN), jnp.float32)
    p["w1"] = jnp.stack(w1)                                       # (L, H, FFN)
    p["b1"] = jnp.zeros((N_LAYERS, 1, FFN), jnp.float32)
    p["w2"] = jnp.stack(w2)                                       # (L, FFN, H)
    p["b2"] = jnp.zeros((N_LAYERS, 1, HIDDEN), jnp.float32)
    p["ln2_g"] = jnp.ones((N_LAYERS, 1, HIDDEN), jnp.float32)
    p["ln2_b"] = jnp.zeros((N_LAYERS, 1, HIDDEN), jnp.float32)
    return p


# ----------------------------------------------------------------------------
# Forward pass: embedding gathers in JAX glue, everything else in ONE kernel.
# ----------------------------------------------------------------------------
def gen2_forward(params, input_ids, token_type_ids, attention_mask):
    B, S = input_ids.shape

    # --- embedding table gathers (glue; no clean small-Pallas equivalent) ---
    # TODO(synk): real RoBERTa position ids start at padding_idx+1 and skip
    # padded tokens; plain arange is used for this synthetic config.
    positions = jnp.arange(S, dtype=jnp.int32)
    emb = (jnp.take(params["word_emb"], input_ids, axis=0)
           + jnp.take(params["pos_emb"], positions, axis=0)[None, :, :]
           + jnp.take(params["type_emb"], token_type_ids, axis=0))
    emb2d = emb.reshape(B * S, HIDDEN)

    # per-batch additive attention mask (B, S) — no per-head duplication
    add_mask = (1.0 - attention_mask.astype(jnp.float32)) * -1e9

    # nn.Dropout in eval mode is identity (inference semantics).
    # TODO(synk): training-mode dropout would use pltpu.prng_seed/prng_random_bits.
    logits = gen2_fused(emb2d, add_mask, params, batch=B, seq=S)   # (B, OUT)
    return logits


if __name__ == "__main__":
    key = jax.random.PRNGKey(0)
    pkey, ikey = jax.random.split(key)
    params = init_params(pkey)

    input_ids = jax.random.randint(ikey, (BATCH, SEQ), 0, VOCAB, dtype=jnp.int32)
    token_type_ids = jnp.zeros((BATCH, SEQ), dtype=jnp.int32)
    attention_mask = jnp.ones((BATCH, SEQ), dtype=jnp.int32)

    fwd = jax.jit(gen2_forward)
    out = fwd(params, input_ids, token_type_ids, attention_mask)
    out = jax.block_until_ready(out)
    assert out.shape == (BATCH, OUTPUT_DIM)
    assert bool(jnp.all(jnp.isfinite(out)))
    print("KERNEL_OK")
</pallas_src>

<mosaic_0001>
module attributes {stable_mosaic.version = 11 : i64} {
  func.func @_gen2_fused_kernel(%arg0: i32, %arg1: memref<16x64xf32, #tpu.memory_space<vmem>>, %arg2: memref<2x8xf32, #tpu.memory_space<vmem>>, %arg3: memref<1x64xf32, #tpu.memory_space<vmem>>, %arg4: memref<1x64xf32, #tpu.memory_space<vmem>>, %arg5: memref<4x64x192xf32, #tpu.memory_space<vmem>>, %arg6: memref<4x1x192xf32, #tpu.memory_space<vmem>>, %arg7: memref<4x64x64xf32, #tpu.memory_space<vmem>>, %arg8: memref<4x1x64xf32, #tpu.memory_space<vmem>>, %arg9: memref<4x1x64xf32, #tpu.memory_space<vmem>>, %arg10: memref<4x1x64xf32, #tpu.memory_space<vmem>>, %arg11: memref<4x64x256xf32, #tpu.memory_space<vmem>>, %arg12: memref<4x1x256xf32, #tpu.memory_space<vmem>>, %arg13: memref<4x256x64xf32, #tpu.memory_space<vmem>>, %arg14: memref<4x1x64xf32, #tpu.memory_space<vmem>>, %arg15: memref<4x1x64xf32, #tpu.memory_space<vmem>>, %arg16: memref<4x1x64xf32, #tpu.memory_space<vmem>>, %arg17: memref<256x3xf32, #tpu.memory_space<vmem>>, %arg18: memref<1x3xf32, #tpu.memory_space<vmem>>, %arg19: memref<2x3xf32, #tpu.memory_space<vmem>>) attributes {dimension_semantics = [#tpu.dimension_semantics<arbitrary>], iteration_bounds = array<i64: 1>, scalar_prefetch = 0 : i64, scratch_operands = 0 : i64, tpu.core_type = #tpu.core_type<tc>, window_params = [{pipeline_mode = #tpu.pipeline_mode<synchronous>, transform_indices = @transform_0, window_bounds = array<i64: 16, 64>}, {pipeline_mode = #tpu.pipeline_mode<synchronous>, transform_indices = @transform_1, window_bounds = array<i64: 2, 8>}, {pipeline_mode = #tpu.pipeline_mode<synchronous>, transform_indices = @transform_2, window_bounds = array<i64: 1, 64>}, {pipeline_mode = #tpu.pipeline_mode<synchronous>, transform_indices = @transform_3, window_bounds = array<i64: 1, 64>}, {pipeline_mode = #tpu.pipeline_mode<synchronous>, transform_indices = @transform_4, window_bounds = array<i64: 4, 64, 192>}, {pipeline_mode = #tpu.pipeline_mode<synchronous>, transform_indices = @transform_5, window_bounds = array<i64: 4, 1, 192>}, {pipeline_mode = #tpu.pipeline_mode<synchronous>, transform_indices = @transform_6, window_bounds = array<i64: 4, 64, 64>}, {pipeline_mode = #tpu.pipeline_mode<synchronous>, transform_indices = @transform_7, window_bounds = array<i64: 4, 1, 64>}, {pipeline_mode = #tpu.pipeline_mode<synchronous>, transform_indices = @transform_8, window_bounds = array<i64: 4, 1, 64>}, {pipeline_mode = #tpu.pipeline_mode<synchronous>, transform_indices = @transform_9, window_bounds = array<i64: 4, 1, 64>}, {pipeline_mode = #tpu.pipeline_mode<synchronous>, transform_indices = @transform_10, window_bounds = array<i64: 4, 64, 256>}, {pipeline_mode = #tpu.pipeline_mode<synchronous>, transform_indices = @transform_11, window_bounds = array<i64: 4, 1, 256>}, {pipeline_mode = #tpu.pipeline_mode<synchronous>, transform_indices = @transform_12, window_bounds = array<i64: 4, 256, 64>}, {pipeline_mode = #tpu.pipeline_mode<synchronous>, transform_indices = @transform_13, window_bounds = array<i64: 4, 1, 64>}, {pipeline_mode = #tpu.pipeline_mode<synchronous>, transform_indices = @transform_14, window_bounds = array<i64: 4, 1, 64>}, {pipeline_mode = #tpu.pipeline_mode<synchronous>, transform_indices = @transform_15, window_bounds = array<i64: 4, 1, 64>}, {pipeline_mode = #tpu.pipeline_mode<synchronous>, transform_indices = @transform_16, window_bounds = array<i64: 256, 3>}, {pipeline_mode = #tpu.pipeline_mode<synchronous>, transform_indices = @transform_17, window_bounds = array<i64: 1, 3>}, {pipeline_mode = #tpu.pipeline_mode<synchronous>, transform_indices = @transform_18, window_bounds = array<i64: 2, 3>}]} {
    %c0 = arith.constant 0 : index
    %c0_0 = arith.constant 0 : index
    %0 = vector.load %arg2[%c0, %c0_0] : memref<2x8xf32, #tpu.memory_space<vmem>>, vector<2x8xf32>
    %c0_1 = arith.constant 0 : index
    %c0_2 = arith.constant 0 : index
    %1 = vector.load %arg1[%c0_1, %c0_2] : memref<16x64xf32, #tpu.memory_space<vmem>>, vector<16x64xf32>
    %c0_3 = arith.constant 0 : index
    %c0_4 = arith.constant 0 : index
    %2 = vector.load %arg3[%c0_3, %c0_4] : memref<1x64xf32, #tpu.memory_space<vmem>>, vector<1x64xf32>
    %c0_5 = arith.constant 0 : index
    %c0_6 = arith.constant 0 : index
    %3 = vector.load %arg4[%c0_5, %c0_6] : memref<1x64xf32, #tpu.memory_space<vmem>>, vector<1x64xf32>
    %cst = arith.constant dense<0.000000e+00> : vector<16xf32>
    %4 = vector.multi_reduction <add>, %1, %cst [1] : vector<16x64xf32> to vector<16xf32>
    %5 = vector.shape_cast %4 : vector<16xf32> to vector<16x1xf32>
    %cst_7 = arith.constant 6.400000e+01 : f32
    %6 = vector.broadcast %cst_7 : f32 to vector<16x1xf32>
    %7 = arith.divf %5, %6 : vector<16x1xf32>
    %8 = vector.broadcast %7 : vector<16x1xf32> to vector<16x64xf32>
    %9 = arith.subf %1, %8 : vector<16x64xf32>
    %10 = arith.mulf %9, %9 : vector<16x64xf32>
    %cst_8 = arith.constant dense<0.000000e+00> : vector<16xf32>
    %11 = vector.multi_reduction <add>, %10, %cst_8 [1] : vector<16x64xf32> to vector<16xf32>
    %12 = vector.shape_cast %11 : vector<16xf32> to vector<16x1xf32>
    %cst_9 = arith.constant 6.400000e+01 : f32
    %13 = vector.broadcast %cst_9 : f32 to vector<16x1xf32>
    %14 = arith.divf %12, %13 : vector<16x1xf32>
    %15 = vector.broadcast %7 : vector<16x1xf32> to vector<16x64xf32>
    %16 = arith.subf %1, %15 : vector<16x64xf32>
    %cst_10 = arith.constant 9.99999974E-6 : f32
    %17 = vector.broadcast %cst_10 : f32 to vector<16x1xf32>
    %18 = arith.addf %14, %17 : vector<16x1xf32>
    %19 = math.rsqrt %18 : vector<16x1xf32>
    %20 = vector.broadcast %19 : vector<16x1xf32> to vector<16x64xf32>
    %21 = arith.mulf %16, %20 : vector<16x64xf32>
    %22 = vector.broadcast %2 : vector<1x64xf32> to vector<16x64xf32>
    %23 = arith.mulf %21, %22 : vector<16x64xf32>
    %24 = vector.broadcast %3 : vector<1x64xf32> to vector<16x64xf32>
    %25 = arith.addf %23, %24 : vector<16x64xf32>
    %c0_11 = arith.constant 0 : index
    %c0_12 = arith.constant 0 : index
    %c0_13 = arith.constant 0 : index
    %26 = vector.load %arg5[%c0_11, %c0_12, %c0_13] : memref<4x64x192xf32, #tpu.memory_space<vmem>>, vector<1x64x192xf32>
    %27 = vector.shape_cast %26 : vector<1x64x192xf32> to vector<64x192xf32>
    %cst_14 = arith.constant dense<0.000000e+00> : vector<16x192xf32>
    %28 = tpu.matmul %25, %27, %cst_14 {dimension_numbers = #tpu.dot_dimension_numbers<[1], [0], [0], [1], [0, 0, 1, 1], [], []>} : vector<16x64xf32>, vector<64x192xf32>, vector<16x192xf32> -> vector<16x192xf32>
    %c0_15 = arith.constant 0 : index
    %c0_16 = arith.constant 0 : index
    %c0_17 = arith.constant 0 : index
    %29 = vector.load %arg6[%c0_15, %c0_16, %c0_17] : memref<4x1x192xf32, #tpu.memory_space<vmem>>, vector<1x1x192xf32>
    %30 = vector.shape_cast %29 : vector<1x1x192xf32> to vector<1x192xf32>
    %31 = vector.broadcast %30 : vector<1x192xf32> to vector<16x192xf32>
    %32 = arith.addf %28, %31 : vector<16x192xf32>
    %33 = vector.extract_strided_slice %32 {offsets = [0, 0], sizes = [8, 192], strides = [1, 1]} : vector<16x192xf32> to vector<8x192xf32>
    %34 = vector.extract_strided_slice %0 {offsets = [0, 0], sizes = [1, 8], strides = [1, 1]} : vector<2x8xf32> to vector<1x8xf32>
    %35 = vector.extract_strided_slice %33 {offsets = [0, 0], sizes = [8, 16], strides = [1, 1]} : vector<8x192xf32> to vector<8x16xf32>
    %36 = vector.extract_strided_slice %33 {offsets = [0, 64], sizes = [8, 16], strides = [1, 1]} : vector<8x192xf32> to vector<8x16xf32>
    %37 = vector.extract_strided_slice %33 {offsets = [0, 128], sizes = [8, 16], strides = [1, 1]} : vector<8x192xf32> to vector<8x16xf32>
    %cst_18 = arith.constant dense<0.000000e+00> : vector<8x8xf32>
    %38 = tpu.matmul %35, %36, %cst_18 {dimension_numbers = #tpu.dot_dimension_numbers<[1], [1], [0], [0], [0, 0, 1, 0], [], []>} : vector<8x16xf32>, vector<8x16xf32>, vector<8x8xf32> -> vector<8x8xf32>
    %39 = vector.broadcast %34 : vector<1x8xf32> to vector<8x8xf32>
    %40 = arith.addf %38, %39 : vector<8x8xf32>
    %cst_19 = arith.constant dense<0xFF800000> : vector<8xf32>
    %41 = vector.multi_reduction <maximumf>, %40, %cst_19 [1] : vector<8x8xf32> to vector<8xf32>
    %42 = vector.shape_cast %41 : vector<8xf32> to vector<8x1xf32>
    %43 = vector.broadcast %42 : vector<8x1xf32> to vector<8x8xf32>
    %44 = arith.subf %40, %43 : vector<8x8xf32>
    %45 = math.exp %44 : vector<8x8xf32>
    %cst_20 = arith.constant dense<0.000000e+00> : vector<8xf32>
    %46 = vector.multi_reduction <add>, %45, %cst_20 [1] : vector<8x8xf32> to vector<8xf32>
    %47 = vector.shape_cast %46 : vector<8xf32> to vector<8x1xf32>
    %48 = vector.broadcast %47 : vector<8x1xf32> to vector<8x8xf32>
    %49 = arith.divf %45, %48 : vector<8x8xf32>
    %cst_21 = arith.constant dense<0.000000e+00> : vector<8x16xf32>
    %50 = tpu.matmul %49, %37, %cst_21 {dimension_numbers = #tpu.dot_dimension_numbers<[1], [0], [0], [1], [0, 0, 1, 1], [], []>} : vector<8x8xf32>, vector<8x16xf32>, vector<8x16xf32> -> vector<8x16xf32>
    %51 = vector.extract_strided_slice %33 {offsets = [0, 16], sizes = [8, 16], strides = [1, 1]} : vector<8x192xf32> to vector<8x16xf32>
    %52 = vector.extract_strided_slice %33 {offsets = [0, 80], sizes = [8, 16], strides = [1, 1]} : vector<8x192xf32> to vector<8x16xf32>
    %53 = vector.extract_strided_slice %33 {offsets = [0, 144], sizes = [8, 16], strides = [1, 1]} : vector<8x192xf32> to vector<8x16xf32>
    %cst_22 = arith.constant dense<0.000000e+00> : vector<8x8xf32>
    %54 = tpu.matmul %51, %52, %cst_22 {dimension_numbers = #tpu.dot_dimension_numbers<[1], [1], [0], [0], [0, 0, 1, 0], [], []>} : vector<8x16xf32>, vector<8x16xf32>, vector<8x8xf32> -> vector<8x8xf32>
    %55 = vector.broadcast %34 : vector<1x8xf32> to vector<8x8xf32>
    %56 = arith.addf %54, %55 : vector<8x8xf32>
    %cst_23 = arith.constant dense<0xFF800000> : vector<8xf32>
    %57 = vector.multi_reduction <maximumf>, %56, %cst_23 [1] : vector<8x8xf32> to vector<8xf32>
    %58 = vector.shape_cast %57 : vector<8xf32> to vector<8x1xf32>
    %59 = vector.broadcast %58 : vector<8x1xf32> to vector<8x8xf32>
    %60 = arith.subf %56, %59 : vector<8x8xf32>
    %61 = math.exp %60 : vector<8x8xf32>
    %cst_24 = arith.constant dense<0.000000e+00> : vector<8xf32>
    %62 = vector.multi_reduction <add>, %61, %cst_24 [1] : vector<8x8xf32> to vector<8xf32>
    %63 = vector.shape_cast %62 : vector<8xf32> to vector<8x1xf32>
    %64 = vector.broadcast %63 : vector<8x1xf32> to vector<8x8xf32>
    %65 = arith.divf %61, %64 : vector<8x8xf32>
    %cst_25 = arith.constant dense<0.000000e+00> : vector<8x16xf32>
    %66 = tpu.matmul %65, %53, %cst_25 {dimension_numbers = #tpu.dot_dimension_numbers<[1], [0], [0], [1], [0, 0, 1, 1], [], []>} : vector<8x8xf32>, vector<8x16xf32>, vector<8x16xf32> -> vector<8x16xf32>
    %67 = vector.extract_strided_slice %33 {offsets = [0, 32], sizes = [8, 16], strides = [1, 1]} : vector<8x192xf32> to vector<8x16xf32>
    %68 = vector.extract_strided_slice %33 {offsets = [0, 96], sizes = [8, 16], strides = [1, 1]} : vector<8x192xf32> to vector<8x16xf32>
    %69 = vector.extract_strided_slice %33 {offsets = [0, 160], sizes = [8, 16], strides = [1, 1]} : vector<8x192xf32> to vector<8x16xf32>
    %cst_26 = arith.constant dense<0.000000e+00> : vector<8x8xf32>
    %70 = tpu.matmul %67, %68, %cst_26 {dimension_numbers = #tpu.dot_dimension_numbers<[1], [1], [0], [0], [0, 0, 1, 0], [], []>} : vector<8x16xf32>, vector<8x16xf32>, vector<8x8xf32> -> vector<8x8xf32>
    %71 = vector.broadcast %34 : vector<1x8xf32> to vector<8x8xf32>
    %72 = arith.addf %70, %71 : vector<8x8xf32>
    %cst_27 = arith.constant dense<0xFF800000> : vector<8xf32>
    %73 = vector.multi_reduction <maximumf>, %72, %cst_27 [1] : vector<8x8xf32> to vector<8xf32>
    %74 = vector.shape_cast %73 : vector<8xf32> to vector<8x1xf32>
    %75 = vector.broadcast %74 : vector<8x1xf32> to vector<8x8xf32>
    %76 = arith.subf %72, %75 : vector<8x8xf32>
    %77 = math.exp %76 : vector<8x8xf32>
    %cst_28 = arith.constant dense<0.000000e+00> : vector<8xf32>
    %78 = vector.multi_reduction <add>, %77, %cst_28 [1] : vector<8x8xf32> to vector<8xf32>
    %79 = vector.shape_cast %78 : vector<8xf32> to vector<8x1xf32>
    %80 = vector.broadcast %79 : vector<8x1xf32> to vector<8x8xf32>
    %81 = arith.divf %77, %80 : vector<8x8xf32>
    %cst_29 = arith.constant dense<0.000000e+00> : vector<8x16xf32>
    %82 = tpu.matmul %81, %69, %cst_29 {dimension_numbers = #tpu.dot_dimension_numbers<[1], [0], [0], [1], [0, 0, 1, 1], [], []>} : vector<8x8xf32>, vector<8x16xf32>, vector<8x16xf32> -> vector<8x16xf32>
    %83 = vector.extract_strided_slice %33 {offsets = [0, 48], sizes = [8, 16], strides = [1, 1]} : vector<8x192xf32> to vector<8x16xf32>
    %84 = vector.extract_strided_slice %33 {offsets = [0, 112], sizes = [8, 16], strides = [1, 1]} : vector<8x192xf32> to vector<8x16xf32>
    %85 = vector.extract_strided_slice %33 {offsets = [0, 176], sizes = [8, 16], strides = [1, 1]} : vector<8x192xf32> to vector<8x16xf32>
    %cst_30 = arith.constant dense<0.000000e+00> : vector<8x8xf32>
    %86 = tpu.matmul %83, %84, %cst_30 {dimension_numbers = #tpu.dot_dimension_numbers<[1], [1], [0], [0], [0, 0, 1, 0], [], []>} : vector<8x16xf32>, vector<8x16xf32>, vector<8x8xf32> -> vector<8x8xf32>
    %87 = vector.broadcast %34 : vector<1x8xf32> to vector<8x8xf32>
    %88 = arith.addf %86, %87 : vector<8x8xf32>
    %cst_31 = arith.constant dense<0xFF800000> : vector<8xf32>
    %89 = vector.multi_reduction <maximumf>, %88, %cst_31 [1] : vector<8x8xf32> to vector<8xf32>
    %90 = vector.shape_cast %89 : vector<8xf32> to vector<8x1xf32>
    %91 = vector.broadcast %90 : vector<8x1xf32> to vector<8x8xf32>
    %92 = arith.subf %88, %91 : vector<8x8xf32>
    %93 = math.exp %92 : vector<8x8xf32>
    %cst_32 = arith.constant dense<0.000000e+00> : vector<8xf32>
    %94 = vector.multi_reduction <add>, %93, %cst_32 [1] : vector<8x8xf32> to vector<8xf32>
    %95 = vector.shape_cast %94 : vector<8xf32> to vector<8x1xf32>
    %96 = vector.broadcast %95 : vector<8x1xf32> to vector<8x8xf32>
    %97 = arith.divf %93, %96 : vector<8x8xf32>
    %cst_33 = arith.constant dense<0.000000e+00> : vector<8x16xf32>
    %98 = tpu.matmul %97, %85, %cst_33 {dimension_numbers = #tpu.dot_dimension_numbers<[1], [0], [0], [1], [0, 0, 1, 1], [], []>} : vector<8x8xf32>, vector<8x16xf32>, vector<8x16xf32> -> vector<8x16xf32>
    %99 = tpu.concatenate %50, %66, %82, %98 in 1 : vector<8x16xf32>, vector<8x16xf32>, vector<8x16xf32>, vector<8x16xf32> -> vector<8x64xf32>
    %100 = vector.extract_strided_slice %32 {offsets = [8, 0], sizes = [8, 192], strides = [1, 1]} : vector<16x192xf32> to vector<8x192xf32>
    %101 = vector.extract_strided_slice %0 {offsets = [1, 0], sizes = [1, 8], strides = [1, 1]} : vector<2x8xf32> to vector<1x8xf32>
    %102 = vector.extract_strided_slice %100 {offsets = [0, 0], sizes = [8, 16], strides = [1, 1]} : vector<8x192xf32> to vector<8x16xf32>
    %103 = vector.extract_strided_slice %100 {offsets = [0, 64], sizes = [8, 16], strides = [1, 1]} : vector<8x192xf32> to vector<8x16xf32>
    %104 = vector.extract_strided_slice %100 {offsets = [0, 128], sizes = [8, 16], strides = [1, 1]} : vector<8x192xf32> to vector<8x16xf32>
    %cst_34 = arith.constant dense<0.000000e+00> : vector<8x8xf32>
    %105 = tpu.matmul %102, %103, %cst_34 {dimension_numbers = #tpu.dot_dimension_numbers<[1], [1], [0], [0], [0, 0, 1, 0], [], []>} : vector<8x16xf32>, vector<8x16xf32>, vector<8x8xf32> -> vector<8x8xf32>
    %106 = vector.broadcast %101 : vector<1x8xf32> to vector<8x8xf32>
    %107 = arith.addf %105, %106 : vector<8x8xf32>
    %cst_35 = arith.constant dense<0xFF800000> : vector<8xf32>
    %108 = vector.multi_reduction <maximumf>, %107, %cst_35 [1] : vector<8x8xf32> to vector<8xf32>
    %109 = vector.shape_cast %108 : vector<8xf32> to vector<8x1xf32>
    %110 = vector.broadcast %109 : vector<8x1xf32> to vector<8x8xf32>
    %111 = arith.subf %107, %110 : vector<8x8xf32>
    %112 = math.exp %111 : vector<8x8xf32>
    %cst_36 = arith.constant dense<0.000000e+00> : vector<8xf32>
    %113 = vector.multi_reduction <add>, %112, %cst_36 [1] : vector<8x8xf32> to vector<8xf32>
    %114 = vector.shape_cast %113 : vector<8xf32> to vector<8x1xf32>
    %115 = vector.broadcast %114 : vector<8x1xf32> to vector<8x8xf32>
    %116 = arith.divf %112, %115 : vector<8x8xf32>
    %cst_37 = arith.constant dense<0.000000e+00> : vector<8x16xf32>
    %117 = tpu.matmul %116, %104, %cst_37 {dimension_numbers = #tpu.dot_dimension_numbers<[1], [0], [0], [1], [0, 0, 1, 1], [], []>} : vector<8x8xf32>, vector<8x16xf32>, vector<8x16xf32> -> vector<8x16xf32>
    %118 = vector.extract_strided_slice %100 {offsets = [0, 16], sizes = [8, 16], strides = [1, 1]} : vector<8x192xf32> to vector<8x16xf32>
    %119 = vector.extract_strided_slice %100 {offsets = [0, 80], sizes = [8, 16], strides = [1, 1]} : vector<8x192xf32> to vector<8x16xf32>
    %120 = vector.extract_strided_slice %100 {offsets = [0, 144], sizes = [8, 16], strides = [1, 1]} : vector<8x192xf32> to vector<8x16xf32>
    %cst_38 = arith.constant dense<0.000000e+00> : vector<8x8xf32>
    %121 = tpu.matmul %118, %119, %cst_38 {dimension_numbers = #tpu.dot_dimension_numbers<[1], [1], [0], [0], [0, 0, 1, 0], [], []>} : vector<8x16xf32>, vector<8x16xf32>, vector<8x8xf32> -> vector<8x8xf32>
    %122 = vector.broadcast %101 : vector<1x8xf32> to vector<8x8xf32>
    %123 = arith.addf %121, %122 : vector<8x8xf32>
    %cst_39 = arith.constant dense<0xFF800000> : vector<8xf32>
    %124 = vector.multi_reduction <maximumf>, %123, %cst_39 [1] : vector<8x8xf32> to vector<8xf32>
    %125 = vector.shape_cast %124 : vector<8xf32> to vector<8x1xf32>
    %126 = vector.broadcast %125 : vector<8x1xf32> to vector<8x8xf32>
    %127 = arith.subf %123, %126 : vector<8x8xf32>
    %128 = math.exp %127 : vector<8x8xf32>
    %cst_40 = arith.constant dense<0.000000e+00> : vector<8xf32>
    %129 = vector.multi_reduction <add>, %128, %cst_40 [1] : vector<8x8xf32> to vector<8xf32>
    %130 = vector.shape_cast %129 : vector<8xf32> to vector<8x1xf32>
    %131 = vector.broadcast %130 : vector<8x1xf32> to vector<8x8xf32>
    %132 = arith.divf %128, %131 : vector<8x8xf32>
    %cst_41 = arith.constant dense<0.000000e+00> : vector<8x16xf32>
    %133 = tpu.matmul %132, %120, %cst_41 {dimension_numbers = #tpu.dot_dimension_numbers<[1], [0], [0], [1], [0, 0, 1, 1], [], []>} : vector<8x8xf32>, vector<8x16xf32>, vector<8x16xf32> -> vector<8x16xf32>
    %134 = vector.extract_strided_slice %100 {offsets = [0, 32], sizes = [8, 16], strides = [1, 1]} : vector<8x192xf32> to vector<8x16xf32>
    %135 = vector.extract_strided_slice %100 {offsets = [0, 96], sizes = [8, 16], strides = [1, 1]} : vector<8x192xf32> to vector<8x16xf32>
    %136 = vector.extract_strided_slice %100 {offsets = [0, 160], sizes = [8, 16], strides = [1, 1]} : vector<8x192xf32> to vector<8x16xf32>
    %cst_42 = arith.constant dense<0.000000e+00> : vector<8x8xf32>
    %137 = tpu.matmul %134, %135, %cst_42 {dimension_numbers = #tpu.dot_dimension_numbers<[1], [1], [0], [0], [0, 0, 1, 0], [], []>} : vector<8x16xf32>, vector<8x16xf32>, vector<8x8xf32> -> vector<8x8xf32>
    %138 = vector.broadcast %101 : vector<1x8xf32> to vector<8x8xf32>
    %139 = arith.addf %137, %138 : vector<8x8xf32>
    %cst_43 = arith.constant dense<0xFF800000> : vector<8xf32>
    %140 = vector.multi_reduction <maximumf>, %139, %cst_43 [1] : vector<8x8xf32> to vector<8xf32>
    %141 = vector.shape_cast %140 : vector<8xf32> to vector<8x1xf32>
    %142 = vector.broadcast %141 : vector<8x1xf32> to vector<8x8xf32>
    %143 = arith.subf %139, %142 : vector<8x8xf32>
    %144 = math.exp %143 : vector<8x8xf32>
    %cst_44 = arith.constant dense<0.000000e+00> : vector<8xf32>
    %145 = vector.multi_reduction <add>, %144, %cst_44 [1] : vector<8x8xf32> to vector<8xf32>
    %146 = vector.shape_cast %145 : vector<8xf32> to vector<8x1xf32>
    %147 = vector.broadcast %146 : vector<8x1xf32> to vector<8x8xf32>
    %148 = arith.divf %144, %147 : vector<8x8xf32>
    %cst_45 = arith.constant dense<0.000000e+00> : vector<8x16xf32>
    %149 = tpu.matmul %148, %136, %cst_45 {dimension_numbers = #tpu.dot_dimension_numbers<[1], [0], [0], [1], [0, 0, 1, 1], [], []>} : vector<8x8xf32>, vector<8x16xf32>, vector<8x16xf32> -> vector<8x16xf32>
    %150 = vector.extract_strided_slice %100 {offsets = [0, 48], sizes = [8, 16], strides = [1, 1]} : vector<8x192xf32> to vector<8x16xf32>
    %151 = vector.extract_strided_slice %100 {offsets = [0, 112], sizes = [8, 16], strides = [1, 1]} : vector<8x192xf32> to vector<8x16xf32>
    %152 = vector.extract_strided_slice %100 {offsets = [0, 176], sizes = [8, 16], strides = [1, 1]} : vector<8x192xf32> to vector<8x16xf32>
    %cst_46 = arith.constant dense<0.000000e+00> : vector<8x8xf32>
    %153 = tpu.matmul %150, %151, %cst_46 {dimension_numbers = #tpu.dot_dimension_numbers<[1], [1], [0], [0], [0, 0, 1, 0], [], []>} : vector<8x16xf32>, vector<8x16xf32>, vector<8x8xf32> -> vector<8x8xf32>
    %154 = vector.broadcast %101 : vector<1x8xf32> to vector<8x8xf32>
    %155 = arith.addf %153, %154 : vector<8x8xf32>
    %cst_47 = arith.constant dense<0xFF800000> : vector<8xf32>
    %156 = vector.multi_reduction <maximumf>, %155, %cst_47 [1] : vector<8x8xf32> to vector<8xf32>
    %157 = vector.shape_cast %156 : vector<8xf32> to vector<8x1xf32>
    %158 = vector.broadcast %157 : vector<8x1xf32> to vector<8x8xf32>
    %159 = arith.subf %155, %158 : vector<8x8xf32>
    %160 = math.exp %159 : vector<8x8xf32>
    %cst_48 = arith.constant dense<0.000000e+00> : vector<8xf32>
    %161 = vector.multi_reduction <add>, %160, %cst_48 [1] : vector<8x8xf32> to vector<8xf32>
    %162 = vector.shape_cast %161 : vector<8xf32> to vector<8x1xf32>
    %163 = vector.broadcast %162 : vector<8x1xf32> to vector<8x8xf32>
    %164 = arith.divf %160, %163 : vector<8x8xf32>
    %cst_49 = arith.constant dense<0.000000e+00> : vector<8x16xf32>
    %165 = tpu.matmul %164, %152, %cst_49 {dimension_numbers = #tpu.dot_dimension_numbers<[1], [0], [0], [1], [0, 0, 1, 1], [], []>} : vector<8x8xf32>, vector<8x16xf32>, vector<8x16xf32> -> vector<8x16xf32>
    %166 = tpu.concatenate %117, %133, %149, %165 in 1 : vector<8x16xf32>, vector<8x16xf32>, vector<8x16xf32>, vector<8x16xf32> -> vector<8x64xf32>
    %167 = tpu.concatenate %99, %166 in 0 : vector<8x64xf32>, vector<8x64xf32> -> vector<16x64xf32>
    %c0_50 = arith.constant 0 : index
    %c0_51 = arith.constant 0 : index
    %c0_52 = arith.constant 0 : index
    %168 = vector.load %arg7[%c0_50, %c0_51, %c0_52] : memref<4x64x64xf32, #tpu.memory_space<vmem>>, vector<1x64x64xf32>
    %169 = vector.shape_cast %168 : vector<1x64x64xf32> to vector<64x64xf32>
    %cst_53 = arith.constant dense<0.000000e+00> : vector<16x64xf32>
    %170 = tpu.matmul %167, %169, %cst_53 {dimension_numbers = #tpu.dot_dimension_numbers<[1], [0], [0], [1], [0, 0, 1, 1], [], []>} : vector<16x64xf32>, vector<64x64xf32>, vector<16x64xf32> -> vector<16x64xf32>
    %c0_54 = arith.constant 0 : index
    %c0_55 = arith.constant 0 : index
    %c0_56 = arith.constant 0 : index
    %171 = vector.load %arg8[%c0_54, %c0_55, %c0_56] : memref<4x1x64xf32, #tpu.memory_space<vmem>>, vector<1x1x64xf32>
    %172 = vector.shape_cast %171 : vector<1x1x64xf32> to vector<1x64xf32>
    %173 = vector.broadcast %172 : vector<1x64xf32> to vector<16x64xf32>
    %174 = arith.addf %170, %173 : vector<16x64xf32>
    %175 = arith.addf %25, %174 : vector<16x64xf32>
    %c0_57 = arith.constant 0 : index
    %c0_58 = arith.constant 0 : index
    %c0_59 = arith.constant 0 : index
    %176 = vector.load %arg9[%c0_57, %c0_58, %c0_59] : memref<4x1x64xf32, #tpu.memory_space<vmem>>, vector<1x1x64xf32>
    %177 = vector.shape_cast %176 : vector<1x1x64xf32> to vector<1x64xf32>
    %c0_60 = arith.constant 0 : index
    %c0_61 = arith.constant 0 : index
    %c0_62 = arith.constant 0 : index
    %178 = vector.load %arg10[%c0_60, %c0_61, %c0_62] : memref<4x1x64xf32, #tpu.memory_space<vmem>>, vector<1x1x64xf32>
    %179 = vector.shape_cast %178 : vector<1x1x64xf32> to vector<1x64xf32>
    %cst_63 = arith.constant dense<0.000000e+00> : vector<16xf32>
    %180 = vector.multi_reduction <add>, %175, %cst_63 [1] : vector<16x64xf32> to vector<16xf32>
    %181 = vector.shape_cast %180 : vector<16xf32> to vector<16x1xf32>
    %cst_64 = arith.constant 6.400000e+01 : f32
    %182 = vector.broadcast %cst_64 : f32 to vector<16x1xf32>
    %183 = arith.divf %181, %182 : vector<16x1xf32>
    %184 = vector.broadcast %183 : vector<16x1xf32> to vector<16x64xf32>
    %185 = arith.subf %175, %184 : vector<16x64xf32>
    %186 = arith.mulf %185, %185 : vector<16x64xf32>
    %cst_65 = arith.constant dense<0.000000e+00> : vector<16xf32>
    %187 = vector.multi_reduction <add>, %186, %cst_65 [1] : vector<16x64xf32> to vector<16xf32>
    %188 = vector.shape_cast %187 : vector<16xf32> to vector<16x1xf32>
    %cst_66 = arith.constant 6.400000e+01 : f32
    %189 = vector.broadcast %cst_66 : f32 to vector<16x1xf32>
    %190 = arith.divf %188, %189 : vector<16x1xf32>
    %191 = vector.broadcast %183 : vector<16x1xf32> to vector<16x64xf32>
    %192 = arith.subf %175, %191 : vector<16x64xf32>
    %cst_67 = arith.constant 9.99999974E-6 : f32
    %193 = vector.broadcast %cst_67 : f32 to vector<16x1xf32>
    %194 = arith.addf %190, %193 : vector<16x1xf32>
    %195 = math.rsqrt %194 : vector<16x1xf32>
    %196 = vector.broadcast %195 : vector<16x1xf32> to vector<16x64xf32>
    %197 = arith.mulf %192, %196 : vector<16x64xf32>
    %198 = vector.broadcast %177 : vector<1x64xf32> to vector<16x64xf32>
    %199 = arith.mulf %197, %198 : vector<16x64xf32>
    %200 = vector.broadcast %179 : vector<1x64xf32> to vector<16x64xf32>
    %201 = arith.addf %199, %200 : vector<16x64xf32>
    %c0_68 = arith.constant 0 : index
    %c0_69 = arith.constant 0 : index
    %c0_70 = arith.constant 0 : index
    %202 = vector.load %arg11[%c0_68, %c0_69, %c0_70] : memref<4x64x256xf32, #tpu.memory_space<vmem>>, vector<1x64x256xf32>
    %203 = vector.shape_cast %202 : vector<1x64x256xf32> to vector<64x256xf32>
    %cst_71 = arith.constant dense<0.000000e+00> : vector<16x256xf32>
    %204 = tpu.matmul %201, %203, %cst_71 {dimension_numbers = #tpu.dot_dimension_numbers<[1], [0], [0], [1], [0, 0, 1, 1], [], []>} : vector<16x64xf32>, vector<64x256xf32>, vector<16x256xf32> -> vector<16x256xf32>
    %c0_72 = arith.constant 0 : index
    %c0_73 = arith.constant 0 : index
    %c0_74 = arith.constant 0 : index
    %205 = vector.load %arg12[%c0_72, %c0_73, %c0_74] : memref<4x1x256xf32, #tpu.memory_space<vmem>>, vector<1x1x256xf32>
    %206 = vector.shape_cast %205 : vector<1x1x256xf32> to vector<1x256xf32>
    %207 = vector.broadcast %206 : vector<1x256xf32> to vector<16x256xf32>
    %208 = arith.addf %204, %207 : vector<16x256xf32>
    %cst_75 = arith.constant 5.000000e-01 : f32
    %209 = vector.broadcast %cst_75 : f32 to vector<16x256xf32>
    %210 = arith.mulf %209, %208 : vector<16x256xf32>
    %cst_76 = arith.constant 0.707106769 : f32
    %211 = vector.broadcast %cst_76 : f32 to vector<16x256xf32>
    %212 = arith.mulf %208, %211 : vector<16x256xf32>
    %213 = math.erf %212 : vector<16x256xf32>
    %cst_77 = arith.constant 1.000000e+00 : f32
    %214 = vector.broadcast %cst_77 : f32 to vector<16x256xf32>
    %215 = arith.addf %214, %213 : vector<16x256xf32>
    %216 = arith.mulf %210, %215 : vector<16x256xf32>
    %c0_78 = arith.constant 0 : index
    %c0_79 = arith.constant 0 : index
    %c0_80 = arith.constant 0 : index
    %217 = vector.load %arg13[%c0_78, %c0_79, %c0_80] : memref<4x256x64xf32, #tpu.memory_space<vmem>>, vector<1x256x64xf32>
    %218 = vector.shape_cast %217 : vector<1x256x64xf32> to vector<256x64xf32>
    %cst_81 = arith.constant dense<0.000000e+00> : vector<16x64xf32>
    %219 = tpu.matmul %216, %218, %cst_81 {dimension_numbers = #tpu.dot_dimension_numbers<[1], [0], [0], [1], [0, 0, 1, 1], [], []>} : vector<16x256xf32>, vector<256x64xf32>, vector<16x64xf32> -> vector<16x64xf32>
    %c0_82 = arith.constant 0 : index
    %c0_83 = arith.constant 0 : index
    %c0_84 = arith.constant 0 : index
    %220 = vector.load %arg14[%c0_82, %c0_83, %c0_84] : memref<4x1x64xf32, #tpu.memory_space<vmem>>, vector<1x1x64xf32>
    %221 = vector.shape_cast %220 : vector<1x1x64xf32> to vector<1x64xf32>
    %222 = vector.broadcast %221 : vector<1x64xf32> to vector<16x64xf32>
    %223 = arith.addf %219, %222 : vector<16x64xf32>
    %224 = arith.addf %201, %223 : vector<16x64xf32>
    %c0_85 = arith.constant 0 : index
    %c0_86 = arith.constant 0 : index
    %c0_87 = arith.constant 0 : index
    %225 = vector.load %arg15[%c0_85, %c0_86, %c0_87] : memref<4x1x64xf32, #tpu.memory_space<vmem>>, vector<1x1x64xf32>
    %226 = vector.shape_cast %225 : vector<1x1x64xf32> to vector<1x64xf32>
    %c0_88 = arith.constant 0 : index
    %c0_89 = arith.constant 0 : index
    %c0_90 = arith.constant 0 : index
    %227 = vector.load %arg16[%c0_88, %c0_89, %c0_90] : memref<4x1x64xf32, #tpu.memory_space<vmem>>, vector<1x1x64xf32>
    %228 = vector.shape_cast %227 : vector<1x1x64xf32> to vector<1x64xf32>
    %cst_91 = arith.constant dense<0.000000e+00> : vector<16xf32>
    %229 = vector.multi_reduction <add>, %224, %cst_91 [1] : vector<16x64xf32> to vector<16xf32>
    %230 = vector.shape_cast %229 : vector<16xf32> to vector<16x1xf32>
    %cst_92 = arith.constant 6.400000e+01 : f32
    %231 = vector.broadcast %cst_92 : f32 to vector<16x1xf32>
    %232 = arith.divf %230, %231 : vector<16x1xf32>
    %233 = vector.broadcast %232 : vector<16x1xf32> to vector<16x64xf32>
    %234 = arith.subf %224, %233 : vector<16x64xf32>
    %235 = arith.mulf %234, %234 : vector<16x64xf32>
    %cst_93 = arith.constant dense<0.000000e+00> : vector<16xf32>
    %236 = vector.multi_reduction <add>, %235, %cst_93 [1] : vector<16x64xf32> to vector<16xf32>
    %237 = vector.shape_cast %236 : vector<16xf32> to vector<16x1xf32>
    %cst_94 = arith.constant 6.400000e+01 : f32
    %238 = vector.broadcast %cst_94 : f32 to vector<16x1xf32>
    %239 = arith.divf %237, %238 : vector<16x1xf32>
    %240 = vector.broadcast %232 : vector<16x1xf32> to vector<16x64xf32>
    %241 = arith.subf %224, %240 : vector<16x64xf32>
    %cst_95 = arith.constant 9.99999974E-6 : f32
    %242 = vector.broadcast %cst_95 : f32 to vector<16x1xf32>
    %243 = arith.addf %239, %242 : vector<16x1xf32>
    %244 = math.rsqrt %243 : vector<16x1xf32>
    %245 = vector.broadcast %244 : vector<16x1xf32> to vector<16x64xf32>
    %246 = arith.mulf %241, %245 : vector<16x64xf32>
    %247 = vector.broadcast %226 : vector<1x64xf32> to vector<16x64xf32>
    %248 = arith.mulf %246, %247 : vector<16x64xf32>
    %249 = vector.broadcast %228 : vector<1x64xf32> to vector<16x64xf32>
    %250 = arith.addf %248, %249 : vector<16x64xf32>
    %251 = vector.extract_strided_slice %250 {offsets = [0, 0], sizes = [1, 64], strides = [1, 1]} : vector<16x64xf32> to vector<1x64xf32>
    %252 = vector.extract_strided_slice %250 {offsets = [8, 0], sizes = [1, 64], strides = [1, 1]} : vector<16x64xf32> to vector<1x64xf32>
    %253 = tpu.concatenate %251, %252 in 0 : vector<1x64xf32>, vector<1x64xf32> -> vector<2x64xf32>
    %c1 = arith.constant 1 : index
    %c0_96 = arith.constant 0 : index
    %c0_97 = arith.constant 0 : index
    %254 = vector.load %arg5[%c1, %c0_96, %c0_97] : memref<4x64x192xf32, #tpu.memory_space<vmem>>, vector<1x64x192xf32>
    %255 = vector.shape_cast %254 : vector<1x64x192xf32> to vector<64x192xf32>
    %cst_98 = arith.constant dense<0.000000e+00> : vector<16x192xf32>
    %256 = tpu.matmul %250, %255, %cst_98 {dimension_numbers = #tpu.dot_dimension_numbers<[1], [0], [0], [1], [0, 0, 1, 1], [], []>} : vector<16x64xf32>, vector<64x192xf32>, vector<16x192xf32> -> vector<16x192xf32>
    %c1_99 = arith.constant 1 : index
    %c0_100 = arith.constant 0 : index
    %c0_101 = arith.constant 0 : index
    %257 = vector.load %arg6[%c1_99, %c0_100, %c0_101] : memref<4x1x192xf32, #tpu.memory_space<vmem>>, vector<1x1x192xf32>
    %258 = vector.shape_cast %257 : vector<1x1x192xf32> to vector<1x192xf32>
    %259 = vector.broadcast %258 : vector<1x192xf32> to vector<16x192xf32>
    %260 = arith.addf %256, %259 : vector<16x192xf32>
    %261 = vector.extract_strided_slice %260 {offsets = [0, 0], sizes = [8, 192], strides = [1, 1]} : vector<16x192xf32> to vector<8x192xf32>
    %262 = vector.extract_strided_slice %0 {offsets = [0, 0], sizes = [1, 8], strides = [1, 1]} : vector<2x8xf32> to vector<1x8xf32>
    %263 = vector.extract_strided_slice %261 {offsets = [0, 0], sizes = [8, 16], strides = [1, 1]} : vector<8x192xf32> to vector<8x16xf32>
    %264 = vector.extract_strided_slice %261 {offsets = [0, 64], sizes = [8, 16], strides = [1, 1]} : vector<8x192xf32> to vector<8x16xf32>
    %265 = vector.extract_strided_slice %261 {offsets = [0, 128], sizes = [8, 16], strides = [1, 1]} : vector<8x192xf32> to vector<8x16xf32>
    %cst_102 = arith.constant dense<0.000000e+00> : vector<8x8xf32>
    %266 = tpu.matmul %263, %264, %cst_102 {dimension_numbers = #tpu.dot_dimension_numbers<[1], [1], [0], [0], [0, 0, 1, 0], [], []>} : vector<8x16xf32>, vector<8x16xf32>, vector<8x8xf32> -> vector<8x8xf32>
    %267 = vector.broadcast %262 : vector<1x8xf32> to vector<8x8xf32>
    %268 = arith.addf %266, %267 : vector<8x8xf32>
    %cst_103 = arith.constant dense<0xFF800000> : vector<8xf32>
    %269 = vector.multi_reduction <maximumf>, %268, %cst_103 [1] : vector<8x8xf32> to vector<8xf32>
    %270 = vector.shape_cast %269 : vector<8xf32> to vector<8x1xf32>
    %271 = vector.broadcast %270 : vector<8x1xf32> to vector<8x8xf32>
    %272 = arith.subf %268, %271 : vector<8x8xf32>
    %273 = math.exp %272 : vector<8x8xf32>
    %cst_104 = arith.constant dense<0.000000e+00> : vector<8xf32>
    %274 = vector.multi_reduction <add>, %273, %cst_104 [1] : vector<8x8xf32> to vector<8xf32>
    %275 = vector.shape_cast %274 : vector<8xf32> to vector<8x1xf32>
    %276 = vector.broadcast %275 : vector<8x1xf32> to vector<8x8xf32>
    %277 = arith.divf %273, %276 : vector<8x8xf32>
    %cst_105 = arith.constant dense<0.000000e+00> : vector<8x16xf32>
    %278 = tpu.matmul %277, %265, %cst_105 {dimension_numbers = #tpu.dot_dimension_numbers<[1], [0], [0], [1], [0, 0, 1, 1], [], []>} : vector<8x8xf32>, vector<8x16xf32>, vector<8x16xf32> -> vector<8x16xf32>
    %279 = vector.extract_strided_slice %261 {offsets = [0, 16], sizes = [8, 16], strides = [1, 1]} : vector<8x192xf32> to vector<8x16xf32>
    %280 = vector.extract_strided_slice %261 {offsets = [0, 80], sizes = [8, 16], strides = [1, 1]} : vector<8x192xf32> to vector<8x16xf32>
    %281 = vector.extract_strided_slice %261 {offsets = [0, 144], sizes = [8, 16], strides = [1, 1]} : vector<8x192xf32> to vector<8x16xf32>
    %cst_106 = arith.constant dense<0.000000e+00> : vector<8x8xf32>
    %282 = tpu.matmul %279, %280, %cst_106 {dimension_numbers = #tpu.dot_dimension_numbers<[1], [1], [0], [0], [0, 0, 1, 0], [], []>} : vector<8x16xf32>, vector<8x16xf32>, vector<8x8xf32> -> vector<8x8xf32>
    %283 = vector.broadcast %262 : vector<1x8xf32> to vector<8x8xf32>
    %284 = arith.addf %282, %283 : vector<8x8xf32>
    %cst_107 = arith.constant dense<0xFF800000> : vector<8xf32>
    %285 = vector.multi_reduction <maximumf>, %284, %cst_107 [1] : vector<8x8xf32> to vector<8xf32>
    %286 = vector.shape_cast %285 : vector<8xf32> to vector<8x1xf32>
    %287 = vector.broadcast %286 : vector<8x1xf32> to vector<8x8xf32>
    %288 = arith.subf %284, %287 : vector<8x8xf32>
    %289 = math.exp %288 : vector<8x8xf32>
    %cst_108 = arith.constant dense<0.000000e+00> : vector<8xf32>
    %290 = vector.multi_reduction <add>, %289, %cst_108 [1] : vector<8x8xf32> to vector<8xf32>
    %291 = vector.shape_cast %290 : vector<8xf32> to vector<8x1xf32>
    %292 = vector.broadcast %291 : vector<8x1xf32> to vector<8x8xf32>
    %293 = arith.divf %289, %292 : vector<8x8xf32>
    %cst_109 = arith.constant dense<0.000000e+00> : vector<8x16xf32>
    %294 = tpu.matmul %293, %281, %cst_109 {dimension_numbers = #tpu.dot_dimension_numbers<[1], [0], [0], [1], [0, 0, 1, 1], [], []>} : vector<8x8xf32>, vector<8x16xf32>, vector<8x16xf32> -> vector<8x16xf32>
    %295 = vector.extract_strided_slice %261 {offsets = [0, 32], sizes = [8, 16], strides = [1, 1]} : vector<8x192xf32> to vector<8x16xf32>
    %296 = vector.extract_strided_slice %261 {offsets = [0, 96], sizes = [8, 16], strides = [1, 1]} : vector<8x192xf32> to vector<8x16xf32>
    %297 = vector.extract_strided_slice %261 {offsets = [0, 160], sizes = [8, 16], strides = [1, 1]} : vector<8x192xf32> to vector<8x16xf32>
    %cst_110 = arith.constant dense<0.000000e+00> : vector<8x8xf32>
    %298 = tpu.matmul %295, %296, %cst_110 {dimension_numbers = #tpu.dot_dimension_numbers<[1], [1], [0], [0], [0, 0, 1, 0], [], []>} : vector<8x16xf32>, vector<8x16xf32>, vector<8x8xf32> -> vector<8x8xf32>
    %299 = vector.broadcast %262 : vector<1x8xf32> to vector<8x8xf32>
    %300 = arith.addf %298, %299 : vector<8x8xf32>
    %cst_111 = arith.constant dense<0xFF800000> : vector<8xf32>
    %301 = vector.multi_reduction <maximumf>, %300, %cst_111 [1] : vector<8x8xf32> to vector<8xf32>
    %302 = vector.shape_cast %301 : vector<8xf32> to vector<8x1xf32>
    %303 = vector.broadcast %302 : vector<8x1xf32> to vector<8x8xf32>
    %304 = arith.subf %300, %303 : vector<8x8xf32>
    %305 = math.exp %304 : vector<8x8xf32>
    %cst_112 = arith.constant dense<0.000000e+00> : vector<8xf32>
    %306 = vector.multi_reduction <add>, %305, %cst_112 [1] : vector<8x8xf32> to vector<8xf32>
    %307 = vector.shape_cast %306 : vector<8xf32> to vector<8x1xf32>
    %308 = vector.broadcast %307 : vector<8x1xf32> to vector<8x8xf32>
    %309 = arith.divf %305, %308 : vector<8x8xf32>
    %cst_113 = arith.constant dense<0.000000e+00> : vector<8x16xf32>
    %310 = tpu.matmul %309, %297, %cst_113 {dimension_numbers = #tpu.dot_dimension_numbers<[1], [0], [0], [1], [0, 0, 1, 1], [], []>} : vector<8x8xf32>, vector<8x16xf32>, vector<8x16xf32> -> vector<8x16xf32>
    %311 = vector.extract_strided_slice %261 {offsets = [0, 48], sizes = [8, 16], strides = [1, 1]} : vector<8x192xf32> to vector<8x16xf32>
    %312 = vector.extract_strided_slice %261 {offsets = [0, 112], sizes = [8, 16], strides = [1, 1]} : vector<8x192xf32> to vector<8x16xf32>
    %313 = vector.extract_strided_slice %261 {offsets = [0, 176], sizes = [8, 16], strides = [1, 1]} : vector<8x192xf32> to vector<8x16xf32>
    %cst_114 = arith.constant dense<0.000000e+00> : vector<8x8xf32>
    %314 = tpu.matmul %311, %312, %cst_114 {dimension_numbers = #tpu.dot_dimension_numbers<[1], [1], [0], [0], [0, 0, 1, 0], [], []>} : vector<8x16xf32>, vector<8x16xf32>, vector<8x8xf32> -> vector<8x8xf32>
    %315 = vector.broadcast %262 : vector<1x8xf32> to vector<8x8xf32>
    %316 = arith.addf %314, %315 : vector<8x8xf32>
    %cst_115 = arith.constant dense<0xFF800000> : vector<8xf32>
    %317 = vector.multi_reduction <maximumf>, %316, %cst_115 [1] : vector<8x8xf32> to vector<8xf32>
    %318 = vector.shape_cast %317 : vector<8xf32> to vector<8x1xf32>
    %319 = vector.broadcast %318 : vector<8x1xf32> to vector<8x8xf32>
    %320 = arith.subf %316, %319 : vector<8x8xf32>
    %321 = math.exp %320 : vector<8x8xf32>
    %cst_116 = arith.constant dense<0.000000e+00> : vector<8xf32>
    %322 = vector.multi_reduction <add>, %321, %cst_116 [1] : vector<8x8xf32> to vector<8xf32>
    %323 = vector.shape_cast %322 : vector<8xf32> to vector<8x1xf32>
    %324 = vector.broadcast %323 : vector<8x1xf32> to vector<8x8xf32>
    %325 = arith.divf %321, %324 : vector<8x8xf32>
    %cst_117 = arith.constant dense<0.000000e+00> : vector<8x16xf32>
    %326 = tpu.matmul %325, %313, %cst_117 {dimension_numbers = #tpu.dot_dimension_numbers<[1], [0], [0], [1], [0, 0, 1, 1], [], []>} : vector<8x8xf32>, vector<8x16xf32>, vector<8x16xf32> -> vector<8x16xf32>
    %327 = tpu.concatenate %278, %294, %310, %326 in 1 : vector<8x16xf32>, vector<8x16xf32>, vector<8x16xf32>, vector<8x16xf32> -> vector<8x64xf32>
    %328 = vector.extract_strided_slice %260 {offsets = [8, 0], sizes = [8, 192], strides = [1, 1]} : vector<16x192xf32> to vector<8x192xf32>
    %329 = vector.extract_strided_slice %0 {offsets = [1, 0], sizes = [1, 8], strides = [1, 1]} : vector<2x8xf32> to vector<1x8xf32>
    %330 = vector.extract_strided_slice %328 {offsets = [0, 0], sizes = [8, 16], strides = [1, 1]} : vector<8x192xf32> to vector<8x16xf32>
    %331 = vector.extract_strided_slice %328 {offsets = [0, 64], sizes = [8, 16], strides = [1, 1]} : vector<8x192xf32> to vector<8x16xf32>
    %332 = vector.extract_strided_slice %328 {offsets = [0, 128], sizes = [8, 16], strides = [1, 1]} : vector<8x192xf32> to vector<8x16xf32>
    %cst_118 = arith.constant dense<0.000000e+00> : vector<8x8xf32>
    %333 = tpu.matmul %330, %331, %cst_118 {dimension_numbers = #tpu.dot_dimension_numbers<[1], [1], [0], [0], [0, 0, 1, 0], [], []>} : vector<8x16xf32>, vector<8x16xf32>, vector<8x8xf32> -> vector<8x8xf32>
    %334 = vector.broadcast %329 : vector<1x8xf32> to vector<8x8xf32>
    %335 = arith.addf %333, %334 : vector<8x8xf32>
    %cst_119 = arith.constant dense<0xFF800000> : vector<8xf32>
    %336 = vector.multi_reduction <maximumf>, %335, %cst_119 [1] : vector<8x8xf32> to vector<8xf32>
    %337 = vector.shape_cast %336 : vector<8xf32> to vector<8x1xf32>
    %338 = vector.broadcast %337 : vector<8x1xf32> to vector<8x8xf32>
    %339 = arith.subf %335, %338 : vector<8x8xf32>
    %340 = math.exp %339 : vector<8x8xf32>
    %cst_120 = arith.constant dense<0.000000e+00> : vector<8xf32>
    %341 = vector.multi_reduction <add>, %340, %cst_120 [1] : vector<8x8xf32> to vector<8xf32>
    %342 = vector.shape_cast %341 : vector<8xf32> to vector<8x1xf32>
    %343 = vector.broadcast %342 : vector<8x1xf32> to vector<8x8xf32>
    %344 = arith.divf %340, %343 : vector<8x8xf32>
    %cst_121 = arith.constant dense<0.000000e+00> : vector<8x16xf32>
    %345 = tpu.matmul %344, %332, %cst_121 {dimension_numbers = #tpu.dot_dimension_numbers<[1], [0], [0], [1], [0, 0, 1, 1], [], []>} : vector<8x8xf32>, vector<8x16xf32>, vector<8x16xf32> -> vector<8x16xf32>
    %346 = vector.extract_strided_slice %328 {offsets = [0, 16], sizes = [8, 16], strides = [1, 1]} : vector<8x192xf32> to vector<8x16xf32>
    %347 = vector.extract_strided_slice %328 {offsets = [0, 80], sizes = [8, 16], strides = [1, 1]} : vector<8x192xf32> to vector<8x16xf32>
    %348 = vector.extract_strided_slice %328 {offsets = [0, 144], sizes = [8, 16], strides = [1, 1]} : vector<8x192xf32> to vector<8x16xf32>
    %cst_122 = arith.constant dense<0.000000e+00> : vector<8x8xf32>
    %349 = tpu.matmul %346, %347, %cst_122 {dimension_numbers = #tpu.dot_dimension_numbers<[1], [1], [0], [0], [0, 0, 1, 0], [], []>} : vector<8x16xf32>, vector<8x16xf32>, vector<8x8xf32> -> vector<8x8xf32>
    %350 = vector.broadcast %329 : vector<1x8xf32> to vector<8x8xf32>
    %351 = arith.addf %349, %350 : vector<8x8xf32>
    %cst_123 = arith.constant dense<0xFF800000> : vector<8xf32>
    %352 = vector.multi_reduction <maximumf>, %351, %cst_123 [1] : vector<8x8xf32> to vector<8xf32>
    %353 = vector.shape_cast %352 : vector<8xf32> to vector<8x1xf32>
    %354 = vector.broadcast %353 : vector<8x1xf32> to vector<8x8xf32>
    %355 = arith.subf %351, %354 : vector<8x8xf32>
    %356 = math.exp %355 : vector<8x8xf32>
    %cst_124 = arith.constant dense<0.000000e+00> : vector<8xf32>
    %357 = vector.multi_reduction <add>, %356, %cst_124 [1] : vector<8x8xf32> to vector<8xf32>
    %358 = vector.shape_cast %357 : vector<8xf32> to vector<8x1xf32>
    %359 = vector.broadcast %358 : vector<8x1xf32> to vector<8x8xf32>
    %360 = arith.divf %356, %359 : vector<8x8xf32>
    %cst_125 = arith.constant dense<0.000000e+00> : vector<8x16xf32>
    %361 = tpu.matmul %360, %348, %cst_125 {dimension_numbers = #tpu.dot_dimension_numbers<[1], [0], [0], [1], [0, 0, 1, 1], [], []>} : vector<8x8xf32>, vector<8x16xf32>, vector<8x16xf32> -> vector<8x16xf32>
    %362 = vector.extract_strided_slice %328 {offsets = [0, 32], sizes = [8, 16], strides = [1, 1]} : vector<8x192xf32> to vector<8x16xf32>
    %363 = vector.extract_strided_slice %328 {offsets = [0, 96], sizes = [8, 16], strides = [1, 1]} : vector<8x192xf32> to vector<8x16xf32>
    %364 = vector.extract_strided_slice %328 {offsets = [0, 160], sizes = [8, 16], strides = [1, 1]} : vector<8x192xf32> to vector<8x16xf32>
    %cst_126 = arith.constant dense<0.000000e+00> : vector<8x8xf32>
    %365 = tpu.matmul %362, %363, %cst_126 {dimension_numbers = #tpu.dot_dimension_numbers<[1], [1], [0], [0], [0, 0, 1, 0], [], []>} : vector<8x16xf32>, vector<8x16xf32>, vector<8x8xf32> -> vector<8x8xf32>
    %366 = vector.broadcast %329 : vector<1x8xf32> to vector<8x8xf32>
    %367 = arith.addf %365, %366 : vector<8x8xf32>
    %cst_127 = arith.constant dense<0xFF800000> : vector<8xf32>
    %368 = vector.multi_reduction <maximumf>, %367, %cst_127 [1] : vector<8x8xf32> to vector<8xf32>
    %369 = vector.shape_cast %368 : vector<8xf32> to vector<8x1xf32>
    %370 = vector.broadcast %369 : vector<8x1xf32> to vector<8x8xf32>
    %371 = arith.subf %367, %370 : vector<8x8xf32>
    %372 = math.exp %371 : vector<8x8xf32>
    %cst_128 = arith.constant dense<0.000000e+00> : vector<8xf32>
    %373 = vector.multi_reduction <add>, %372, %cst_128 [1] : vector<8x8xf32> to vector<8xf32>
    %374 = vector.shape_cast %373 : vector<8xf32> to vector<8x1xf32>
    %375 = vector.broadcast %374 : vector<8x1xf32> to vector<8x8xf32>
    %376 = arith.divf %372, %375 : vector<8x8xf32>
    %cst_129 = arith.constant dense<0.000000e+00> : vector<8x16xf32>
    %377 = tpu.matmul %376, %364, %cst_129 {dimension_numbers = #tpu.dot_dimension_numbers<[1], [0], [0], [1], [0, 0, 1, 1], [], []>} : vector<8x8xf32>, vector<8x16xf32>, vector<8x16xf32> -> vector<8x16xf32>
    %378 = vector.extract_strided_slice %328 {offsets = [0, 48], sizes = [8, 16], strides = [1, 1]} : vector<8x192xf32> to vector<8x16xf32>
    %379 = vector.extract_strided_slice %328 {offsets = [0, 112], sizes = [8, 16], strides = [1, 1]} : vector<8x192xf32> to vector<8x16xf32>
    %380 = vector.extract_strided_slice %328 {offsets = [0, 176], sizes = [8, 16], strides = [1, 1]} : vector<8x192xf32> to vector<8x16xf32>
    %cst_130 = arith.constant dense<0.000000e+00> : vector<8x8xf32>
    %381 = tpu.matmul %378, %379, %cst_130 {dimension_numbers = #tpu.dot_dimension_numbers<[1], [1], [0], [0], [0, 0, 1, 0], [], []>} : vector<8x16xf32>, vector<8x16xf32>, vector<8x8xf32> -> vector<8x8xf32>
    %382 = vector.broadcast %329 : vector<1x8xf32> to vector<8x8xf32>
    %383 = arith.addf %381, %382 : vector<8x8xf32>
    %cst_131 = arith.constant dense<0xFF800000> : vector<8xf32>
    %384 = vector.multi_reduction <maximumf>, %383, %cst_131 [1] : vector<8x8xf32> to vector<8xf32>
    %385 = vector.shape_cast %384 : vector<8xf32> to vector<8x1xf32>
    %386 = vector.broadcast %385 : vector<8x1xf32> to vector<8x8xf32>
    %387 = arith.subf %383, %386 : vector<8x8xf32>
    %388 = math.exp %387 : vector<8x8xf32>
    %cst_132 = arith.constant dense<0.000000e+00> : vector<8xf32>
    %389 = vector.multi_reduction <add>, %388, %cst_132 [1] : vector<8x8xf32> to vector<8xf32>
    %390 = vector.shape_cast %389 : vector<8xf32> to vector<8x1xf32>
    %391 = vector.broadcast %390 : vector<8x1xf32> to vector<8x8xf32>
    %392 = arith.divf %388, %391 : vector<8x8xf32>
    %cst_133 = arith.constant dense<0.000000e+00> : vector<8x16xf32>
    %393 = tpu.matmul %392, %380, %cst_133 {dimension_numbers = #tpu.dot_dimension_numbers<[1], [0], [0], [1], [0, 0, 1, 1], [], []>} : vector<8x8xf32>, vector<8x16xf32>, vector<8x16xf32> -> vector<8x16xf32>
    %394 = tpu.concatenate %345, %361, %377, %393 in 1 : vector<8x16xf32>, vector<8x16xf32>, vector<8x16xf32>, vector<8x16xf32> -> vector<8x64xf32>
    %395 = tpu.concatenate %327, %394 in 0 : vector<8x64xf32>, vector<8x64xf32> -> vector<16x64xf32>
    %c1_134 = arith.constant 1 : index
    %c0_135 = arith.constant 0 : index
    %c0_136 = arith.constant 0 : index
    %396 = vector.load %arg7[%c1_134, %c0_135, %c0_136] : memref<4x64x64xf32, #tpu.memory_space<vmem>>, vector<1x64x64xf32>
    %397 = vector.shape_cast %396 : vector<1x64x64xf32> to vector<64x64xf32>
    %cst_137 = arith.constant dense<0.000000e+00> : vector<16x64xf32>
    %398 = tpu.matmul %395, %397, %cst_137 {dimension_numbers = #tpu.dot_dimension_numbers<[1], [0], [0], [1], [0, 0, 1, 1], [], []>} : vector<16x64xf32>, vector<64x64xf32>, vector<16x64xf32> -> vector<16x64xf32>
    %c1_138 = arith.constant 1 : index
    %c0_139 = arith.constant 0 : index
    %c0_140 = arith.constant 0 : index
    %399 = vector.load %arg8[%c1_138, %c0_139, %c0_140] : memref<4x1x64xf32, #tpu.memory_space<vmem>>, vector<1x1x64xf32>
    %400 = vector.shape_cast %399 : vector<1x1x64xf32> to vector<1x64xf32>
    %401 = vector.broadcast %400 : vector<1x64xf32> to vector<16x64xf32>
    %402 = arith.addf %398, %401 : vector<16x64xf32>
    %403 = arith.addf %250, %402 : vector<16x64xf32>
    %c1_141 = arith.constant 1 : index
    %c0_142 = arith.constant 0 : index
    %c0_143 = arith.constant 0 : index
    %404 = vector.load %arg9[%c1_141, %c0_142, %c0_143] : memref<4x1x64xf32, #tpu.memory_space<vmem>>, vector<1x1x64xf32>
    %405 = vector.shape_cast %404 : vector<1x1x64xf32> to vector<1x64xf32>
    %c1_144 = arith.constant 1 : index
    %c0_145 = arith.constant 0 : index
    %c0_146 = arith.constant 0 : index
    %406 = vector.load %arg10[%c1_144, %c0_145, %c0_146] : memref<4x1x64xf32, #tpu.memory_space<vmem>>, vector<1x1x64xf32>
    %407 = vector.shape_cast %406 : vector<1x1x64xf32> to vector<1x64xf32>
    %cst_147 = arith.constant dense<0.000000e+00> : vector<16xf32>
    %408 = vector.multi_reduction <add>, %403, %cst_147 [1] : vector<16x64xf32> to vector<16xf32>
    %409 = vector.shape_cast %408 : vector<16xf32> to vector<16x1xf32>
    %cst_148 = arith.constant 6.400000e+01 : f32
    %410 = vector.broadcast %cst_148 : f32 to vector<16x1xf32>
    %411 = arith.divf %409, %410 : vector<16x1xf32>
    %412 = vector.broadcast %411 : vector<16x1xf32> to vector<16x64xf32>
    %413 = arith.subf %403, %412 : vector<16x64xf32>
    %414 = arith.mulf %413, %413 : vector<16x64xf32>
    %cst_149 = arith.constant dense<0.000000e+00> : vector<16xf32>
    %415 = vector.multi_reduction <add>, %414, %cst_149 [1] : vector<16x64xf32> to vector<16xf32>
    %416 = vector.shape_cast %415 : vector<16xf32> to vector<16x1xf32>
    %cst_150 = arith.constant 6.400000e+01 : f32
    %417 = vector.broadcast %cst_150 : f32 to vector<16x1xf32>
    %418 = arith.divf %416, %417 : vector<16x1xf32>
    %419 = vector.broadcast %411 : vector<16x1xf32> to vector<16x64xf32>
    %420 = arith.subf %403, %419 : vector<16x64xf32>
    %cst_151 = arith.constant 9.99999974E-6 : f32
    %421 = vector.broadcast %cst_151 : f32 to vector<16x1xf32>
    %422 = arith.addf %418, %421 : vector<16x1xf32>
    %423 = math.rsqrt %422 : vector<16x1xf32>
    %424 = vector.broadcast %423 : vector<16x1xf32> to vector<16x64xf32>
    %425 = arith.mulf %420, %424 : vector<16x64xf32>
    %426 = vector.broadcast %405 : vector<1x64xf32> to vector<16x64xf32>
    %427 = arith.mulf %425, %426 : vector<16x64xf32>
    %428 = vector.broadcast %407 : vector<1x64xf32> to vector<16x64xf32>
    %429 = arith.addf %427, %428 : vector<16x64xf32>
    %c1_152 = arith.constant 1 : index
    %c0_153 = arith.constant 0 : index
    %c0_154 = arith.constant 0 : index
    %430 = vector.load %arg11[%c1_152, %c0_153, %c0_154] : memref<4x64x256xf32, #tpu.memory_space<vmem>>, vector<1x64x256xf32>
    %431 = vector.shape_cast %430 : vector<1x64x256xf32> to vector<64x256xf32>
    %cst_155 = arith.constant dense<0.000000e+00> : vector<16x256xf32>
    %432 = tpu.matmul %429, %431, %cst_155 {dimension_numbers = #tpu.dot_dimension_numbers<[1], [0], [0], [1], [0, 0, 1, 1], [], []>} : vector<16x64xf32>, vector<64x256xf32>, vector<16x256xf32> -> vector<16x256xf32>
    %c1_156 = arith.constant 1 : index
    %c0_157 = arith.constant 0 : index
    %c0_158 = arith.constant 0 : index
    %433 = vector.load %arg12[%c1_156, %c0_157, %c0_158] : memref<4x1x256xf32, #tpu.memory_space<vmem>>, vector<1x1x256xf32>
    %434 = vector.shape_cast %433 : vector<1x1x256xf32> to vector<1x256xf32>
    %435 = vector.broadcast %434 : vector<1x256xf32> to vector<16x256xf32>
    %436 = arith.addf %432, %435 : vector<16x256xf32>
    %cst_159 = arith.constant 5.000000e-01 : f32
    %437 = vector.broadcast %cst_159 : f32 to vector<16x256xf32>
    %438 = arith.mulf %437, %436 : vector<16x256xf32>
    %cst_160 = arith.constant 0.707106769 : f32
    %439 = vector.broadcast %cst_160 : f32 to vector<16x256xf32>
    %440 = arith.mulf %436, %439 : vector<16x256xf32>
    %441 = math.erf %440 : vector<16x256xf32>
    %cst_161 = arith.constant 1.000000e+00 : f32
    %442 = vector.broadcast %cst_161 : f32 to vector<16x256xf32>
    %443 = arith.addf %442, %441 : vector<16x256xf32>
    %444 = arith.mulf %438, %443 : vector<16x256xf32>
    %c1_162 = arith.constant 1 : index
    %c0_163 = arith.constant 0 : index
    %c0_164 = arith.constant 0 : index
    %445 = vector.load %arg13[%c1_162, %c0_163, %c0_164] : memref<4x256x64xf32, #tpu.memory_space<vmem>>, vector<1x256x64xf32>
    %446 = vector.shape_cast %445 : vector<1x256x64xf32> to vector<256x64xf32>
    %cst_165 = arith.constant dense<0.000000e+00> : vector<16x64xf32>
    %447 = tpu.matmul %444, %446, %cst_165 {dimension_numbers = #tpu.dot_dimension_numbers<[1], [0], [0], [1], [0, 0, 1, 1], [], []>} : vector<16x256xf32>, vector<256x64xf32>, vector<16x64xf32> -> vector<16x64xf32>
    %c1_166 = arith.constant 1 : index
    %c0_167 = arith.constant 0 : index
    %c0_168 = arith.constant 0 : index
    %448 = vector.load %arg14[%c1_166, %c0_167, %c0_168] : memref<4x1x64xf32, #tpu.memory_space<vmem>>, vector<1x1x64xf32>
    %449 = vector.shape_cast %448 : vector<1x1x64xf32> to vector<1x64xf32>
    %450 = vector.broadcast %449 : vector<1x64xf32> to vector<16x64xf32>
    %451 = arith.addf %447, %450 : vector<16x64xf32>
    %452 = arith.addf %429, %451 : vector<16x64xf32>
    %c1_169 = arith.constant 1 : index
    %c0_170 = arith.constant 0 : index
    %c0_171 = arith.constant 0 : index
    %453 = vector.load %arg15[%c1_169, %c0_170, %c0_171] : memref<4x1x64xf32, #tpu.memory_space<vmem>>, vector<1x1x64xf32>
    %454 = vector.shape_cast %453 : vector<1x1x64xf32> to vector<1x64xf32>
    %c1_172 = arith.constant 1 : index
    %c0_173 = arith.constant 0 : index
    %c0_174 = arith.constant 0 : index
    %455 = vector.load %arg16[%c1_172, %c0_173, %c0_174] : memref<4x1x64xf32, #tpu.memory_space<vmem>>, vector<1x1x64xf32>
    %456 = vector.shape_cast %455 : vector<1x1x64xf32> to vector<1x64xf32>
    %cst_175 = arith.constant dense<0.000000e+00> : vector<16xf32>
    %457 = vector.multi_reduction <add>, %452, %cst_175 [1] : vector<16x64xf32> to vector<16xf32>
    %458 = vector.shape_cast %457 : vector<16xf32> to vector<16x1xf32>
    %cst_176 = arith.constant 6.400000e+01 : f32
    %459 = vector.broadcast %cst_176 : f32 to vector<16x1xf32>
    %460 = arith.divf %458, %459 : vector<16x1xf32>
    %461 = vector.broadcast %460 : vector<16x1xf32> to vector<16x64xf32>
    %462 = arith.subf %452, %461 : vector<16x64xf32>
    %463 = arith.mulf %462, %462 : vector<16x64xf32>
    %cst_177 = arith.constant dense<0.000000e+00> : vector<16xf32>
    %464 = vector.multi_reduction <add>, %463, %cst_177 [1] : vector<16x64xf32> to vector<16xf32>
    %465 = vector.shape_cast %464 : vector<16xf32> to vector<16x1xf32>
    %cst_178 = arith.constant 6.400000e+01 : f32
    %466 = vector.broadcast %cst_178 : f32 to vector<16x1xf32>
    %467 = arith.divf %465, %466 : vector<16x1xf32>
    %468 = vector.broadcast %460 : vector<16x1xf32> to vector<16x64xf32>
    %469 = arith.subf %452, %468 : vector<16x64xf32>
    %cst_179 = arith.constant 9.99999974E-6 : f32
    %470 = vector.broadcast %cst_179 : f32 to vector<16x1xf32>
    %471 = arith.addf %467, %470 : vector<16x1xf32>
    %472 = math.rsqrt %471 : vector<16x1xf32>
    %473 = vector.broadcast %472 : vector<16x1xf32> to vector<16x64xf32>
    %474 = arith.mulf %469, %473 : vector<16x64xf32>
    %475 = vector.broadcast %454 : vector<1x64xf32> to vector<16x64xf32>
    %476 = arith.mulf %474, %475 : vector<16x64xf32>
    %477 = vector.broadcast %456 : vector<1x64xf32> to vector<16x64xf32>
    %478 = arith.addf %476, %477 : vector<16x64xf32>
    %479 = vector.extract_strided_slice %478 {offsets = [0, 0], sizes = [1, 64], strides = [1, 1]} : vector<16x64xf32> to vector<1x64xf32>
    %480 = vector.extract_strided_slice %478 {offsets = [8, 0], sizes = [1, 64], strides = [1, 1]} : vector<16x64xf32> to vector<1x64xf32>
    %481 = tpu.concatenate %479, %480 in 0 : vector<1x64xf32>, vector<1x64xf32> -> vector<2x64xf32>
    %c2 = arith.constant 2 : index
    %c0_180 = arith.constant 0 : index
    %c0_181 = arith.constant 0 : index
    %482 = vector.load %arg5[%c2, %c0_180, %c0_181] : memref<4x64x192xf32, #tpu.memory_space<vmem>>, vector<1x64x192xf32>
    %483 = vector.shape_cast %482 : vector<1x64x192xf32> to vector<64x192xf32>
    %cst_182 = arith.constant dense<0.000000e+00> : vector<16x192xf32>
    %484 = tpu.matmul %478, %483, %cst_182 {dimension_numbers = #tpu.dot_dimension_numbers<[1], [0], [0], [1], [0, 0, 1, 1], [], []>} : vector<16x64xf32>, vector<64x192xf32>, vector<16x192xf32> -> vector<16x192xf32>
    %c2_183 = arith.constant 2 : index
    %c0_184 = arith.constant 0 : index
    %c0_185 = arith.constant 0 : index
    %485 = vector.load %arg6[%c2_183, %c0_184, %c0_185] : memref<4x1x192xf32, #tpu.memory_space<vmem>>, vector<1x1x192xf32>
    %486 = vector.shape_cast %485 : vector<1x1x192xf32> to vector<1x192xf32>
    %487 = vector.broadcast %486 : vector<1x192xf32> to vector<16x192xf32>
    %488 = arith.addf %484, %487 : vector<16x192xf32>
    %489 = vector.extract_strided_slice %488 {offsets = [0, 0], sizes = [8, 192], strides = [1, 1]} : vector<16x192xf32> to vector<8x192xf32>
    %490 = vector.extract_strided_slice %0 {offsets = [0, 0], sizes = [1, 8], strides = [1, 1]} : vector<2x8xf32> to vector<1x8xf32>
    %491 = vector.extract_strided_slice %489 {offsets = [0, 0], sizes = [8, 16], strides = [1, 1]} : vector<8x192xf32> to vector<8x16xf32>
    %492 = vector.extract_strided_slice %489 {offsets = [0, 64], sizes = [8, 16], strides = [1, 1]} : vector<8x192xf32> to vector<8x16xf32>
    %493 = vector.extract_strided_slice %489 {offsets = [0, 128], sizes = [8, 16], strides = [1, 1]} : vector<8x192xf32> to vector<8x16xf32>
    %cst_186 = arith.constant dense<0.000000e+00> : vector<8x8xf32>
    %494 = tpu.matmul %491, %492, %cst_186 {dimension_numbers = #tpu.dot_dimension_numbers<[1], [1], [0], [0], [0, 0, 1, 0], [], []>} : vector<8x16xf32>, vector<8x16xf32>, vector<8x8xf32> -> vector<8x8xf32>
    %495 = vector.broadcast %490 : vector<1x8xf32> to vector<8x8xf32>
    %496 = arith.addf %494, %495 : vector<8x8xf32>
    %cst_187 = arith.constant dense<0xFF800000> : vector<8xf32>
    %497 = vector.multi_reduction <maximumf>, %496, %cst_187 [1] : vector<8x8xf32> to vector<8xf32>
    %498 = vector.shape_cast %497 : vector<8xf32> to vector<8x1xf32>
    %499 = vector.broadcast %498 : vector<8x1xf32> to vector<8x8xf32>
    %500 = arith.subf %496, %499 : vector<8x8xf32>
    %501 = math.exp %500 : vector<8x8xf32>
    %cst_188 = arith.constant dense<0.000000e+00> : vector<8xf32>
    %502 = vector.multi_reduction <add>, %501, %cst_188 [1] : vector<8x8xf32> to vector<8xf32>
    %503 = vector.shape_cast %502 : vector<8xf32> to vector<8x1xf32>
    %504 = vector.broadcast %503 : vector<8x1xf32> to vector<8x8xf32>
    %505 = arith.divf %501, %504 : vector<8x8xf32>
    %cst_189 = arith.constant dense<0.000000e+00> : vector<8x16xf32>
    %506 = tpu.matmul %505, %493, %cst_189 {dimension_numbers = #tpu.dot_dimension_numbers<[1], [0], [0], [1], [0, 0, 1, 1], [], []>} : vector<8x8xf32>, vector<8x16xf32>, vector<8x16xf32> -> vector<8x16xf32>
    %507 = vector.extract_strided_slice %489 {offsets = [0, 16], sizes = [8, 16], strides = [1, 1]} : vector<8x192xf32> to vector<8x16xf32>
    %508 = vector.extract_strided_slice %489 {offsets = [0, 80], sizes = [8, 16], strides = [1, 1]} : vector<8x192xf32> to vector<8x16xf32>
    %509 = vector.extract_strided_slice %489 {offsets = [0, 144], sizes = [8, 16], strides = [1, 1]} : vector<8x192xf32> to vector<8x16xf32>
    %cst_190 = arith.constant dense<0.000000e+00> : vector<8x8xf32>
    %510 = tpu.matmul %507, %508, %cst_190 {dimension_numbers = #tpu.dot_dimension_numbers<[1], [1], [0], [0], [0, 0, 1, 0], [], []>} : vector<8x16xf32>, vector<8x16xf32>, vector<8x8xf32> -> vector<8x8xf32>
    %511 = vector.broadcast %490 : vector<1x8xf32> to vector<8x8xf32>
    %512 = arith.addf %510, %511 : vector<8x8xf32>
    %cst_191 = arith.constant dense<0xFF800000> : vector<8xf32>
    %513 = vector.multi_reduction <maximumf>, %512, %cst_191 [1] : vector<8x8xf32> to vector<8xf32>
    %514 = vector.shape_cast %513 : vector<8xf32> to vector<8x1xf32>
    %515 = vector.broadcast %514 : vector<8x1xf32> to vector<8x8xf32>
    %516 = arith.subf %512, %515 : vector<8x8xf32>
    %517 = math.exp %516 : vector<8x8xf32>
    %cst_192 = arith.constant dense<0.000000e+00> : vector<8xf32>
    %518 = vector.multi_reduction <add>, %517, %cst_192 [1] : vector<8x8xf32> to vector<8xf32>
    %519 = vector.shape_cast %518 : vector<8xf32> to vector<8x1xf32>
    %520 = vector.broadcast %519 : vector<8x1xf32> to vector<8x8xf32>
    %521 = arith.divf %517, %520 : vector<8x8xf32>
    %cst_193 = arith.constant dense<0.000000e+00> : vector<8x16xf32>
    %522 = tpu.matmul %521, %509, %cst_193 {dimension_numbers = #tpu.dot_dimension_numbers<[1], [0], [0], [1], [0, 0, 1, 1], [], []>} : vector<8x8xf32>, vector<8x16xf32>, vector<8x16xf32> -> vector<8x16xf32>
    %523 = vector.extract_strided_slice %489 {offsets = [0, 32], sizes = [8, 16], strides = [1, 1]} : vector<8x192xf32> to vector<8x16xf32>
    %524 = vector.extract_strided_slice %489 {offsets = [0, 96], sizes = [8, 16], strides = [1, 1]} : vector<8x192xf32> to vector<8x16xf32>
    %525 = vector.extract_strided_slice %489 {offsets = [0, 160], sizes = [8, 16], strides = [1, 1]} : vector<8x192xf32> to vector<8x16xf32>
    %cst_194 = arith.constant dense<0.000000e+00> : vector<8x8xf32>
    %526 = tpu.matmul %523, %524, %cst_194 {dimension_numbers = #tpu.dot_dimension_numbers<[1], [1], [0], [0], [0, 0, 1, 0], [], []>} : vector<8x16xf32>, vector<8x16xf32>, vector<8x8xf32> -> vector<8x8xf32>
    %527 = vector.broadcast %490 : vector<1x8xf32> to vector<8x8xf32>
    %528 = arith.addf %526, %527 : vector<8x8xf32>
    %cst_195 = arith.constant dense<0xFF800000> : vector<8xf32>
    %529 = vector.multi_reduction <maximumf>, %528, %cst_195 [1] : vector<8x8xf32> to vector<8xf32>
    %530 = vector.shape_cast %529 : vector<8xf32> to vector<8x1xf32>
    %531 = vector.broadcast %530 : vector<8x1xf32> to vector<8x8xf32>
    %532 = arith.subf %528, %531 : vector<8x8xf32>
    %533 = math.exp %532 : vector<8x8xf32>
    %cst_196 = arith.constant dense<0.000000e+00> : vector<8xf32>
    %534 = vector.multi_reduction <add>, %533, %cst_196 [1] : vector<8x8xf32> to vector<8xf32>
    %535 = vector.shape_cast %534 : vector<8xf32> to vector<8x1xf32>
    %536 = vector.broadcast %535 : vector<8x1xf32> to vector<8x8xf32>
    %537 = arith.divf %533, %536 : vector<8x8xf32>
    %cst_197 = arith.constant dense<0.000000e+00> : vector<8x16xf32>
    %538 = tpu.matmul %537, %525, %cst_197 {dimension_numbers = #tpu.dot_dimension_numbers<[1], [0], [0], [1], [0, 0, 1, 1], [], []>} : vector<8x8xf32>, vector<8x16xf32>, vector<8x16xf32> -> vector<8x16xf32>
    %539 = vector.extract_strided_slice %489 {offsets = [0, 48], sizes = [8, 16], strides = [1, 1]} : vector<8x192xf32> to vector<8x16xf32>
    %540 = vector.extract_strided_slice %489 {offsets = [0, 112], sizes = [8, 16], strides = [1, 1]} : vector<8x192xf32> to vector<8x16xf32>
    %541 = vector.extract_strided_slice %489 {offsets = [0, 176], sizes = [8, 16], strides = [1, 1]} : vector<8x192xf32> to vector<8x16xf32>
    %cst_198 = arith.constant dense<0.000000e+00> : vector<8x8xf32>
    %542 = tpu.matmul %539, %540, %cst_198 {dimension_numbers = #tpu.dot_dimension_numbers<[1], [1], [0], [0], [0, 0, 1, 0], [], []>} : vector<8x16xf32>, vector<8x16xf32>, vector<8x8xf32> -> vector<8x8xf32>
    %543 = vector.broadcast %490 : vector<1x8xf32> to vector<8x8xf32>
    %544 = arith.addf %542, %543 : vector<8x8xf32>
    %cst_199 = arith.constant dense<0xFF800000> : vector<8xf32>
    %545 = vector.multi_reduction <maximumf>, %544, %cst_199 [1] : vector<8x8xf32> to vector<8xf32>
    %546 = vector.shape_cast %545 : vector<8xf32> to vector<8x1xf32>
    %547 = vector.broadcast %546 : vector<8x1xf32> to vector<8x8xf32>
    %548 = arith.subf %544, %547 : vector<8x8xf32>
    %549 = math.exp %548 : vector<8x8xf32>
    %cst_200 = arith.constant dense<0.000000e+00> : vector<8xf32>
    %550 = vector.multi_reduction <add>, %549, %cst_200 [1] : vector<8x8xf32> to vector<8xf32>
    %551 = vector.shape_cast %550 : vector<8xf32> to vector<8x1xf32>
    %552 = vector.broadcast %551 : vector<8x1xf32> to vector<8x8xf32>
    %553 = arith.divf %549, %552 : vector<8x8xf32>
    %cst_201 = arith.constant dense<0.000000e+00> : vector<8x16xf32>
    %554 = tpu.matmul %553, %541, %cst_201 {dimension_numbers = #tpu.dot_dimension_numbers<[1], [0], [0], [1], [0, 0, 1, 1], [], []>} : vector<8x8xf32>, vector<8x16xf32>, vector<8x16xf32> -> vector<8x16xf32>
    %555 = tpu.concatenate %506, %522, %538, %554 in 1 : vector<8x16xf32>, vector<8x16xf32>, vector<8x16xf32>, vector<8x16xf32> -> vector<8x64xf32>
    %556 = vector.extract_strided_slice %488 {offsets = [8, 0], sizes = [8, 192], strides = [1, 1]} : vector<16x192xf32> to vector<8x192xf32>
    %557 = vector.extract_strided_slice %0 {offsets = [1, 0], sizes = [1, 8], strides = [1, 1]} : vector<2x8xf32> to vector<1x8xf32>
    %558 = vector.extract_strided_slice %556 {offsets = [0, 0], sizes = [8, 16], strides = [1, 1]} : vector<8x192xf32> to vector<8x16xf32>
    %559 = vector.extract_strided_slice %556 {offsets = [0, 64], sizes = [8, 16], strides = [1, 1]} : vector<8x192xf32> to vector<8x16xf32>
    %560 = vector.extract_strided_slice %556 {offsets = [0, 128], sizes = [8, 16], strides = [1, 1]} : vector<8x192xf32> to vector<8x16xf32>
    %cst_202 = arith.constant dense<0.000000e+00> : vector<8x8xf32>
    %561 = tpu.matmul %558, %559, %cst_202 {dimension_numbers = #tpu.dot_dimension_numbers<[1], [1], [0], [0], [0, 0, 1, 0], [], []>} : vector<8x16xf32>, vector<8x16xf32>, vector<8x8xf32> -> vector<8x8xf32>
    %562 = vector.broadcast %557 : vector<1x8xf32> to vector<8x8xf32>
    %563 = arith.addf %561, %562 : vector<8x8xf32>
    %cst_203 = arith.constant dense<0xFF800000> : vector<8xf32>
    %564 = vector.multi_reduction <maximumf>, %563, %cst_203 [1] : vector<8x8xf32> to vector<8xf32>
    %565 = vector.shape_cast %564 : vector<8xf32> to vector<8x1xf32>
    %566 = vector.broadcast %565 : vector<8x1xf32> to vector<8x8xf32>
    %567 = arith.subf %563, %566 : vector<8x8xf32>
    %568 = math.exp %567 : vector<8x8xf32>
    %cst_204 = arith.constant dense<0.000000e+00> : vector<8xf32>
    %569 = vector.multi_reduction <add>, %568, %cst_204 [1] : vector<8x8xf32> to vector<8xf32>
    %570 = vector.shape_cast %569 : vector<8xf32> to vector<8x1xf32>
    %571 = vector.broadcast %570 : vector<8x1xf32> to vector<8x8xf32>
    %572 = arith.divf %568, %571 : vector<8x8xf32>
    %cst_205 = arith.constant dense<0.000000e+00> : vector<8x16xf32>
    %573 = tpu.matmul %572, %560, %cst_205 {dimension_numbers = #tpu.dot_dimension_numbers<[1], [0], [0], [1], [0, 0, 1, 1], [], []>} : vector<8x8xf32>, vector<8x16xf32>, vector<8x16xf32> -> vector<8x16xf32>
    %574 = vector.extract_strided_slice %556 {offsets = [0, 16], sizes = [8, 16], strides = [1, 1]} : vector<8x192xf32> to vector<8x16xf32>
    %575 = vector.extract_strided_slice %556 {offsets = [0, 80], sizes = [8, 16], strides = [1, 1]} : vector<8x192xf32> to vector<8x16xf32>
    %576 = vector.extract_strided_slice %556 {offsets = [0, 144], sizes = [8, 16], strides = [1, 1]} : vector<8x192xf32> to vector<8x16xf32>
    %cst_206 = arith.constant dense<0.000000e+00> : vector<8x8xf32>
    %577 = tpu.matmul %574, %575, %cst_206 {dimension_numbers = #tpu.dot_dimension_numbers<[1], [1], [0], [0], [0, 0, 1, 0], [], []>} : vector<8x16xf32>, vector<8x16xf32>, vector<8x8xf32> -> vector<8x8xf32>
    %578 = vector.broadcast %557 : vector<1x8xf32> to vector<8x8xf32>
    %579 = arith.addf %577, %578 : vector<8x8xf32>
    %cst_207 = arith.constant dense<0xFF800000> : vector<8xf32>
    %580 = vector.multi_reduction <maximumf>, %579, %cst_207 [1] : vector<8x8xf32> to vector<8xf32>
    %581 = vector.shape_cast %580 : vector<8xf32> to vector<8x1xf32>
    %582 = vector.broadcast %581 : vector<8x1xf32> to vector<8x8xf32>
    %583 = arith.subf %579, %582 : vector<8x8xf32>
    %584 = math.exp %583 : vector<8x8xf32>
    %cst_208 = arith.constant dense<0.000000e+00> : vector<8xf32>
    %585 = vector.multi_reduction <add>, %584, %cst_208 [1] : vector<8x8xf32> to vector<8xf32>
    %586 = vector.shape_cast %585 : vector<8xf32> to vector<8x1xf32>
    %587 = vector.broadcast %586 : vector<8x1xf32> to vector<8x8xf32>
    %588 = arith.divf %584, %587 : vector<8x8xf32>
    %cst_209 = arith.constant dense<0.000000e+00> : vector<8x16xf32>
    %589 = tpu.matmul %588, %576, %cst_209 {dimension_numbers = #tpu.dot_dimension_numbers<[1], [0], [0], [1], [0, 0, 1, 1], [], []>} : vector<8x8xf32>, vector<8x16xf32>, vector<8x16xf32> -> vector<8x16xf32>
    %590 = vector.extract_strided_slice %556 {offsets = [0, 32], sizes = [8, 16], strides = [1, 1]} : vector<8x192xf32> to vector<8x16xf32>
    %591 = vector.extract_strided_slice %556 {offsets = [0, 96], sizes = [8, 16], strides = [1, 1]} : vector<8x192xf32> to vector<8x16xf32>
    %592 = vector.extract_strided_slice %556 {offsets = [0, 160], sizes = [8, 16], strides = [1, 1]} : vector<8x192xf32> to vector<8x16xf32>
    %cst_210 = arith.constant dense<0.000000e+00> : vector<8x8xf32>
    %593 = tpu.matmul %590, %591, %cst_210 {dimension_numbers = #tpu.dot_dimension_numbers<[1], [1], [0], [0], [0, 0, 1, 0], [], []>} : vector<8x16xf32>, vector<8x16xf32>, vector<8x8xf32> -> vector<8x8xf32>
    %594 = vector.broadcast %557 : vector<1x8xf32> to vector<8x8xf32>
    %595 = arith.addf %593, %594 : vector<8x8xf32>
    %cst_211 = arith.constant dense<0xFF800000> : vector<8xf32>
    %596 = vector.multi_reduction <maximumf>, %595, %cst_211 [1] : vector<8x8xf32> to vector<8xf32>
    %597 = vector.shape_cast %596 : vector<8xf32> to vector<8x1xf32>
    %598 = vector.broadcast %597 : vector<8x1xf32> to vector<8x8xf32>
    %599 = arith.subf %595, %598 : vector<8x8xf32>
    %600 = math.exp %599 : vector<8x8xf32>
    %cst_212 = arith.constant dense<0.000000e+00> : vector<8xf32>
    %601 = vector.multi_reduction <add>, %600, %cst_212 [1] : vector<8x8xf32> to vector<8xf32>
    %602 = vector.shape_cast %601 : vector<8xf32> to vector<8x1xf32>
    %603 = vector.broadcast %602 : vector<8x1xf32> to vector<8x8xf32>
    %604 = arith.divf %600, %603 : vector<8x8xf32>
    %cst_213 = arith.constant dense<0.000000e+00> : vector<8x16xf32>
    %605 = tpu.matmul %604, %592, %cst_213 {dimension_numbers = #tpu.dot_dimension_numbers<[1], [0], [0], [1], [0, 0, 1, 1], [], []>} : vector<8x8xf32>, vector<8x16xf32>, vector<8x16xf32> -> vector<8x16xf32>
    %606 = vector.extract_strided_slice %556 {offsets = [0, 48], sizes = [8, 16], strides = [1, 1]} : vector<8x192xf32> to vector<8x16xf32>
    %607 = vector.extract_strided_slice %556 {offsets = [0, 112], sizes = [8, 16], strides = [1, 1]} : vector<8x192xf32> to vector<8x16xf32>
    %608 = vector.extract_strided_slice %556 {offsets = [0, 176], sizes = [8, 16], strides = [1, 1]} : vector<8x192xf32> to vector<8x16xf32>
    %cst_214 = arith.constant dense<0.000000e+00> : vector<8x8xf32>
    %609 = tpu.matmul %606, %607, %cst_214 {dimension_numbers = #tpu.dot_dimension_numbers<[1], [1], [0], [0], [0, 0, 1, 0], [], []>} : vector<8x16xf32>, vector<8x16xf32>, vector<8x8xf32> -> vector<8x8xf32>
    %610 = vector.broadcast %557 : vector<1x8xf32> to vector<8x8xf32>
    %611 = arith.addf %609, %610 : vector<8x8xf32>
    %cst_215 = arith.constant dense<0xFF800000> : vector<8xf32>
    %612 = vector.multi_reduction <maximumf>, %611, %cst_215 [1] : vector<8x8xf32> to vector<8xf32>
    %613 = vector.shape_cast %612 : vector<8xf32> to vector<8x1xf32>
    %614 = vector.broadcast %613 : vector<8x1xf32> to vector<8x8xf32>
    %615 = arith.subf %611, %614 : vector<8x8xf32>
    %616 = math.exp %615 : vector<8x8xf32>
    %cst_216 = arith.constant dense<0.000000e+00> : vector<8xf32>
    %617 = vector.multi_reduction <add>, %616, %cst_216 [1] : vector<8x8xf32> to vector<8xf32>
    %618 = vector.shape_cast %617 : vector<8xf32> to vector<8x1xf32>
    %619 = vector.broadcast %618 : vector<8x1xf32> to vector<8x8xf32>
    %620 = arith.divf %616, %619 : vector<8x8xf32>
    %cst_217 = arith.constant dense<0.000000e+00> : vector<8x16xf32>
    %621 = tpu.matmul %620, %608, %cst_217 {dimension_numbers = #tpu.dot_dimension_numbers<[1], [0], [0], [1], [0, 0, 1, 1], [], []>} : vector<8x8xf32>, vector<8x16xf32>, vector<8x16xf32> -> vector<8x16xf32>
    %622 = tpu.concatenate %573, %589, %605, %621 in 1 : vector<8x16xf32>, vector<8x16xf32>, vector<8x16xf32>, vector<8x16xf32> -> vector<8x64xf32>
    %623 = tpu.concatenate %555, %622 in 0 : vector<8x64xf32>, vector<8x64xf32> -> vector<16x64xf32>
    %c2_218 = arith.constant 2 : index
    %c0_219 = arith.constant 0 : index
    %c0_220 = arith.constant 0 : index
    %624 = vector.load %arg7[%c2_218, %c0_219, %c0_220] : memref<4x64x64xf32, #tpu.memory_space<vmem>>, vector<1x64x64xf32>
    %625 = vector.shape_cast %624 : vector<1x64x64xf32> to vector<64x64xf32>
    %cst_221 = arith.constant dense<0.000000e+00> : vector<16x64xf32>
    %626 = tpu.matmul %623, %625, %cst_221 {dimension_numbers = #tpu.dot_dimension_numbers<[1], [0], [0], [1], [0, 0, 1, 1], [], []>} : vector<16x64xf32>, vector<64x64xf32>, vector<16x64xf32> -> vector<16x64xf32>
    %c2_222 = arith.constant 2 : index
    %c0_223 = arith.constant 0 : index
    %c0_224 = arith.constant 0 : index
    %627 = vector.load %arg8[%c2_222, %c0_223, %c0_224] : memref<4x1x64xf32, #tpu.memory_space<vmem>>, vector<1x1x64xf32>
    %628 = vector.shape_cast %627 : vector<1x1x64xf32> to vector<1x64xf32>
    %629 = vector.broadcast %628 : vector<1x64xf32> to vector<16x64xf32>
    %630 = arith.addf %626, %629 : vector<16x64xf32>
    %631 = arith.addf %478, %630 : vector<16x64xf32>
    %c2_225 = arith.constant 2 : index
    %c0_226 = arith.constant 0 : index
    %c0_227 = arith.constant 0 : index
    %632 = vector.load %arg9[%c2_225, %c0_226, %c0_227] : memref<4x1x64xf32, #tpu.memory_space<vmem>>, vector<1x1x64xf32>
    %633 = vector.shape_cast %632 : vector<1x1x64xf32> to vector<1x64xf32>
    %c2_228 = arith.constant 2 : index
    %c0_229 = arith.constant 0 : index
    %c0_230 = arith.constant 0 : index
    %634 = vector.load %arg10[%c2_228, %c0_229, %c0_230] : memref<4x1x64xf32, #tpu.memory_space<vmem>>, vector<1x1x64xf32>
    %635 = vector.shape_cast %634 : vector<1x1x64xf32> to vector<1x64xf32>
    %cst_231 = arith.constant dense<0.000000e+00> : vector<16xf32>
    %636 = vector.multi_reduction <add>, %631, %cst_231 [1] : vector<16x64xf32> to vector<16xf32>
    %637 = vector.shape_cast %636 : vector<16xf32> to vector<16x1xf32>
    %cst_232 = arith.constant 6.400000e+01 : f32
    %638 = vector.broadcast %cst_232 : f32 to vector<16x1xf32>
    %639 = arith.divf %637, %638 : vector<16x1xf32>
    %640 = vector.broadcast %639 : vector<16x1xf32> to vector<16x64xf32>
    %641 = arith.subf %631, %640 : vector<16x64xf32>
    %642 = arith.mulf %641, %641 : vector<16x64xf32>
    %cst_233 = arith.constant dense<0.000000e+00> : vector<16xf32>
    %643 = vector.multi_reduction <add>, %642, %cst_233 [1] : vector<16x64xf32> to vector<16xf32>
    %644 = vector.shape_cast %643 : vector<16xf32> to vector<16x1xf32>
    %cst_234 = arith.constant 6.400000e+01 : f32
    %645 = vector.broadcast %cst_234 : f32 to vector<16x1xf32>
    %646 = arith.divf %644, %645 : vector<16x1xf32>
    %647 = vector.broadcast %639 : vector<16x1xf32> to vector<16x64xf32>
    %648 = arith.subf %631, %647 : vector<16x64xf32>
    %cst_235 = arith.constant 9.99999974E-6 : f32
    %649 = vector.broadcast %cst_235 : f32 to vector<16x1xf32>
    %650 = arith.addf %646, %649 : vector<16x1xf32>
    %651 = math.rsqrt %650 : vector<16x1xf32>
    %652 = vector.broadcast %651 : vector<16x1xf32> to vector<16x64xf32>
    %653 = arith.mulf %648, %652 : vector<16x64xf32>
    %654 = vector.broadcast %633 : vector<1x64xf32> to vector<16x64xf32>
    %655 = arith.mulf %653, %654 : vector<16x64xf32>
    %656 = vector.broadcast %635 : vector<1x64xf32> to vector<16x64xf32>
    %657 = arith.addf %655, %656 : vector<16x64xf32>
    %c2_236 = arith.constant 2 : index
    %c0_237 = arith.constant 0 : index
    %c0_238 = arith.constant 0 : index
    %658 = vector.load %arg11[%c2_236, %c0_237, %c0_238] : memref<4x64x256xf32, #tpu.memory_space<vmem>>, vector<1x64x256xf32>
    %659 = vector.shape_cast %658 : vector<1x64x256xf32> to vector<64x256xf32>
    %cst_239 = arith.constant dense<0.000000e+00> : vector<16x256xf32>
    %660 = tpu.matmul %657, %659, %cst_239 {dimension_numbers = #tpu.dot_dimension_numbers<[1], [0], [0], [1], [0, 0, 1, 1], [], []>} : vector<16x64xf32>, vector<64x256xf32>, vector<16x256xf32> -> vector<16x256xf32>
    %c2_240 = arith.constant 2 : index
    %c0_241 = arith.constant 0 : index
    %c0_242 = arith.constant 0 : index
    %661 = vector.load %arg12[%c2_240, %c0_241, %c0_242] : memref<4x1x256xf32, #tpu.memory_space<vmem>>, vector<1x1x256xf32>
    %662 = vector.shape_cast %661 : vector<1x1x256xf32> to vector<1x256xf32>
    %663 = vector.broadcast %662 : vector<1x256xf32> to vector<16x256xf32>
    %664 = arith.addf %660, %663 : vector<16x256xf32>
    %cst_243 = arith.constant 5.000000e-01 : f32
    %665 = vector.broadcast %cst_243 : f32 to vector<16x256xf32>
    %666 = arith.mulf %665, %664 : vector<16x256xf32>
    %cst_244 = arith.constant 0.707106769 : f32
    %667 = vector.broadcast %cst_244 : f32 to vector<16x256xf32>
    %668 = arith.mulf %664, %667 : vector<16x256xf32>
    %669 = math.erf %668 : vector<16x256xf32>
    %cst_245 = arith.constant 1.000000e+00 : f32
    %670 = vector.broadcast %cst_245 : f32 to vector<16x256xf32>
    %671 = arith.addf %670, %669 : vector<16x256xf32>
    %672 = arith.mulf %666, %671 : vector<16x256xf32>
    %c2_246 = arith.constant 2 : index
    %c0_247 = arith.constant 0 : index
    %c0_248 = arith.constant 0 : index
    %673 = vector.load %arg13[%c2_246, %c0_247, %c0_248] : memref<4x256x64xf32, #tpu.memory_space<vmem>>, vector<1x256x64xf32>
    %674 = vector.shape_cast %673 : vector<1x256x64xf32> to vector<256x64xf32>
    %cst_249 = arith.constant dense<0.000000e+00> : vector<16x64xf32>
    %675 = tpu.matmul %672, %674, %cst_249 {dimension_numbers = #tpu.dot_dimension_numbers<[1], [0], [0], [1], [0, 0, 1, 1], [], []>} : vector<16x256xf32>, vector<256x64xf32>, vector<16x64xf32> -> vector<16x64xf32>
    %c2_250 = arith.constant 2 : index
    %c0_251 = arith.constant 0 : index
    %c0_252 = arith.constant 0 : index
    %676 = vector.load %arg14[%c2_250, %c0_251, %c0_252] : memref<4x1x64xf32, #tpu.memory_space<vmem>>, vector<1x1x64xf32>
    %677 = vector.shape_cast %676 : vector<1x1x64xf32> to vector<1x64xf32>
    %678 = vector.broadcast %677 : vector<1x64xf32> to vector<16x64xf32>
    %679 = arith.addf %675, %678 : vector<16x64xf32>
    %680 = arith.addf %657, %679 : vector<16x64xf32>
    %c2_253 = arith.constant 2 : index
    %c0_254 = arith.constant 0 : index
    %c0_255 = arith.constant 0 : index
    %681 = vector.load %arg15[%c2_253, %c0_254, %c0_255] : memref<4x1x64xf32, #tpu.memory_space<vmem>>, vector<1x1x64xf32>
    %682 = vector.shape_cast %681 : vector<1x1x64xf32> to vector<1x64xf32>
    %c2_256 = arith.constant 2 : index
    %c0_257 = arith.constant 0 : index
    %c0_258 = arith.constant 0 : index
    %683 = vector.load %arg16[%c2_256, %c0_257, %c0_258] : memref<4x1x64xf32, #tpu.memory_space<vmem>>, vector<1x1x64xf32>
    %684 = vector.shape_cast %683 : vector<1x1x64xf32> to vector<1x64xf32>
    %cst_259 = arith.constant dense<0.000000e+00> : vector<16xf32>
    %685 = vector.multi_reduction <add>, %680, %cst_259 [1] : vector<16x64xf32> to vector<16xf32>
    %686 = vector.shape_cast %685 : vector<16xf32> to vector<16x1xf32>
    %cst_260 = arith.constant 6.400000e+01 : f32
    %687 = vector.broadcast %cst_260 : f32 to vector<16x1xf32>
    %688 = arith.divf %686, %687 : vector<16x1xf32>
    %689 = vector.broadcast %688 : vector<16x1xf32> to vector<16x64xf32>
    %690 = arith.subf %680, %689 : vector<16x64xf32>
    %691 = arith.mulf %690, %690 : vector<16x64xf32>
    %cst_261 = arith.constant dense<0.000000e+00> : vector<16xf32>
    %692 = vector.multi_reduction <add>, %691, %cst_261 [1] : vector<16x64xf32> to vector<16xf32>
    %693 = vector.shape_cast %692 : vector<16xf32> to vector<16x1xf32>
    %cst_262 = arith.constant 6.400000e+01 : f32
    %694 = vector.broadcast %cst_262 : f32 to vector<16x1xf32>
    %695 = arith.divf %693, %694 : vector<16x1xf32>
    %696 = vector.broadcast %688 : vector<16x1xf32> to vector<16x64xf32>
    %697 = arith.subf %680, %696 : vector<16x64xf32>
    %cst_263 = arith.constant 9.99999974E-6 : f32
    %698 = vector.broadcast %cst_263 : f32 to vector<16x1xf32>
    %699 = arith.addf %695, %698 : vector<16x1xf32>
    %700 = math.rsqrt %699 : vector<16x1xf32>
    %701 = vector.broadcast %700 : vector<16x1xf32> to vector<16x64xf32>
    %702 = arith.mulf %697, %701 : vector<16x64xf32>
    %703 = vector.broadcast %682 : vector<1x64xf32> to vector<16x64xf32>
    %704 = arith.mulf %702, %703 : vector<16x64xf32>
    %705 = vector.broadcast %684 : vector<1x64xf32> to vector<16x64xf32>
    %706 = arith.addf %704, %705 : vector<16x64xf32>
    %707 = vector.extract_strided_slice %706 {offsets = [0, 0], sizes = [1, 64], strides = [1, 1]} : vector<16x64xf32> to vector<1x64xf32>
    %708 = vector.extract_strided_slice %706 {offsets = [8, 0], sizes = [1, 64], strides = [1, 1]} : vector<16x64xf32> to vector<1x64xf32>
    %709 = tpu.concatenate %707, %708 in 0 : vector<1x64xf32>, vector<1x64xf32> -> vector<2x64xf32>
    %c3 = arith.constant 3 : index
    %c0_264 = arith.constant 0 : index
    %c0_265 = arith.constant 0 : index
    %710 = vector.load %arg5[%c3, %c0_264, %c0_265] : memref<4x64x192xf32, #tpu.memory_space<vmem>>, vector<1x64x192xf32>
    %711 = vector.shape_cast %710 : vector<1x64x192xf32> to vector<64x192xf32>
    %cst_266 = arith.constant dense<0.000000e+00> : vector<16x192xf32>
    %712 = tpu.matmul %706, %711, %cst_266 {dimension_numbers = #tpu.dot_dimension_numbers<[1], [0], [0], [1], [0, 0, 1, 1], [], []>} : vector<16x64xf32>, vector<64x192xf32>, vector<16x192xf32> -> vector<16x192xf32>
    %c3_267 = arith.constant 3 : index
    %c0_268 = arith.constant 0 : index
    %c0_269 = arith.constant 0 : index
    %713 = vector.load %arg6[%c3_267, %c0_268, %c0_269] : memref<4x1x192xf32, #tpu.memory_space<vmem>>, vector<1x1x192xf32>
    %714 = vector.shape_cast %713 : vector<1x1x192xf32> to vector<1x192xf32>
    %715 = vector.broadcast %714 : vector<1x192xf32> to vector<16x192xf32>
    %716 = arith.addf %712, %715 : vector<16x192xf32>
    %717 = vector.extract_strided_slice %716 {offsets = [0, 0], sizes = [8, 192], strides = [1, 1]} : vector<16x192xf32> to vector<8x192xf32>
    %718 = vector.extract_strided_slice %0 {offsets = [0, 0], sizes = [1, 8], strides = [1, 1]} : vector<2x8xf32> to vector<1x8xf32>
    %719 = vector.extract_strided_slice %717 {offsets = [0, 0], sizes = [8, 16], strides = [1, 1]} : vector<8x192xf32> to vector<8x16xf32>
    %720 = vector.extract_strided_slice %717 {offsets = [0, 64], sizes = [8, 16], strides = [1, 1]} : vector<8x192xf32> to vector<8x16xf32>
    %721 = vector.extract_strided_slice %717 {offsets = [0, 128], sizes = [8, 16], strides = [1, 1]} : vector<8x192xf32> to vector<8x16xf32>
    %cst_270 = arith.constant dense<0.000000e+00> : vector<8x8xf32>
    %722 = tpu.matmul %719, %720, %cst_270 {dimension_numbers = #tpu.dot_dimension_numbers<[1], [1], [0], [0], [0, 0, 1, 0], [], []>} : vector<8x16xf32>, vector<8x16xf32>, vector<8x8xf32> -> vector<8x8xf32>
    %723 = vector.broadcast %718 : vector<1x8xf32> to vector<8x8xf32>
    %724 = arith.addf %722, %723 : vector<8x8xf32>
    %cst_271 = arith.constant dense<0xFF800000> : vector<8xf32>
    %725 = vector.multi_reduction <maximumf>, %724, %cst_271 [1] : vector<8x8xf32> to vector<8xf32>
    %726 = vector.shape_cast %725 : vector<8xf32> to vector<8x1xf32>
    %727 = vector.broadcast %726 : vector<8x1xf32> to vector<8x8xf32>
    %728 = arith.subf %724, %727 : vector<8x8xf32>
    %729 = math.exp %728 : vector<8x8xf32>
    %cst_272 = arith.constant dense<0.000000e+00> : vector<8xf32>
    %730 = vector.multi_reduction <add>, %729, %cst_272 [1] : vector<8x8xf32> to vector<8xf32>
    %731 = vector.shape_cast %730 : vector<8xf32> to vector<8x1xf32>
    %732 = vector.broadcast %731 : vector<8x1xf32> to vector<8x8xf32>
    %733 = arith.divf %729, %732 : vector<8x8xf32>
    %cst_273 = arith.constant dense<0.000000e+00> : vector<8x16xf32>
    %734 = tpu.matmul %733, %721, %cst_273 {dimension_numbers = #tpu.dot_dimension_numbers<[1], [0], [0], [1], [0, 0, 1, 1], [], []>} : vector<8x8xf32>, vector<8x16xf32>, vector<8x16xf32> -> vector<8x16xf32>
    %735 = vector.extract_strided_slice %717 {offsets = [0, 16], sizes = [8, 16], strides = [1, 1]} : vector<8x192xf32> to vector<8x16xf32>
    %736 = vector.extract_strided_slice %717 {offsets = [0, 80], sizes = [8, 16], strides = [1, 1]} : vector<8x192xf32> to vector<8x16xf32>
    %737 = vector.extract_strided_slice %717 {offsets = [0, 144], sizes = [8, 16], strides = [1, 1]} : vector<8x192xf32> to vector<8x16xf32>
    %cst_274 = arith.constant dense<0.000000e+00> : vector<8x8xf32>
    %738 = tpu.matmul %735, %736, %cst_274 {dimension_numbers = #tpu.dot_dimension_numbers<[1], [1], [0], [0], [0, 0, 1, 0], [], []>} : vector<8x16xf32>, vector<8x16xf32>, vector<8x8xf32> -> vector<8x8xf32>
    %739 = vector.broadcast %718 : vector<1x8xf32> to vector<8x8xf32>
    %740 = arith.addf %738, %739 : vector<8x8xf32>
    %cst_275 = arith.constant dense<0xFF800000> : vector<8xf32>
    %741 = vector.multi_reduction <maximumf>, %740, %cst_275 [1] : vector<8x8xf32> to vector<8xf32>
    %742 = vector.shape_cast %741 : vector<8xf32> to vector<8x1xf32>
    %743 = vector.broadcast %742 : vector<8x1xf32> to vector<8x8xf32>
    %744 = arith.subf %740, %743 : vector<8x8xf32>
    %745 = math.exp %744 : vector<8x8xf32>
    %cst_276 = arith.constant dense<0.000000e+00> : vector<8xf32>
    %746 = vector.multi_reduction <add>, %745, %cst_276 [1] : vector<8x8xf32> to vector<8xf32>
    %747 = vector.shape_cast %746 : vector<8xf32> to vector<8x1xf32>
    %748 = vector.broadcast %747 : vector<8x1xf32> to vector<8x8xf32>
    %749 = arith.divf %745, %748 : vector<8x8xf32>
    %cst_277 = arith.constant dense<0.000000e+00> : vector<8x16xf32>
    %750 = tpu.matmul %749, %737, %cst_277 {dimension_numbers = #tpu.dot_dimension_numbers<[1], [0], [0], [1], [0, 0, 1, 1], [], []>} : vector<8x8xf32>, vector<8x16xf32>, vector<8x16xf32> -> vector<8x16xf32>
    %751 = vector.extract_strided_slice %717 {offsets = [0, 32], sizes = [8, 16], strides = [1, 1]} : vector<8x192xf32> to vector<8x16xf32>
    %752 = vector.extract_strided_slice %717 {offsets = [0, 96], sizes = [8, 16], strides = [1, 1]} : vector<8x192xf32> to vector<8x16xf32>
    %753 = vector.extract_strided_slice %717 {offsets = [0, 160], sizes = [8, 16], strides = [1, 1]} : vector<8x192xf32> to vector<8x16xf32>
    %cst_278 = arith.constant dense<0.000000e+00> : vector<8x8xf32>
    %754 = tpu.matmul %751, %752, %cst_278 {dimension_numbers = #tpu.dot_dimension_numbers<[1], [1], [0], [0], [0, 0, 1, 0], [], []>} : vector<8x16xf32>, vector<8x16xf32>, vector<8x8xf32> -> vector<8x8xf32>
    %755 = vector.broadcast %718 : vector<1x8xf32> to vector<8x8xf32>
    %756 = arith.addf %754, %755 : vector<8x8xf32>
    %cst_279 = arith.constant dense<0xFF800000> : vector<8xf32>
    %757 = vector.multi_reduction <maximumf>, %756, %cst_279 [1] : vector<8x8xf32> to vector<8xf32>
    %758 = vector.shape_cast %757 : vector<8xf32> to vector<8x1xf32>
    %759 = vector.broadcast %758 : vector<8x1xf32> to vector<8x8xf32>
    %760 = arith.subf %756, %759 : vector<8x8xf32>
    %761 = math.exp %760 : vector<8x8xf32>
    %cst_280 = arith.constant dense<0.000000e+00> : vector<8xf32>
    %762 = vector.multi_reduction <add>, %761, %cst_280 [1] : vector<8x8xf32> to vector<8xf32>
    %763 = vector.shape_cast %762 : vector<8xf32> to vector<8x1xf32>
    %764 = vector.broadcast %763 : vector<8x1xf32> to vector<8x8xf32>
    %765 = arith.divf %761, %764 : vector<8x8xf32>
    %cst_281 = arith.constant dense<0.000000e+00> : vector<8x16xf32>
    %766 = tpu.matmul %765, %753, %cst_281 {dimension_numbers = #tpu.dot_dimension_numbers<[1], [0], [0], [1], [0, 0, 1, 1], [], []>} : vector<8x8xf32>, vector<8x16xf32>, vector<8x16xf32> -> vector<8x16xf32>
    %767 = vector.extract_strided_slice %717 {offsets = [0, 48], sizes = [8, 16], strides = [1, 1]} : vector<8x192xf32> to vector<8x16xf32>
    %768 = vector.extract_strided_slice %717 {offsets = [0, 112], sizes = [8, 16], strides = [1, 1]} : vector<8x192xf32> to vector<8x16xf32>
    %769 = vector.extract_strided_slice %717 {offsets = [0, 176], sizes = [8, 16], strides = [1, 1]} : vector<8x192xf32> to vector<8x16xf32>
    %cst_282 = arith.constant dense<0.000000e+00> : vector<8x8xf32>
    %770 = tpu.matmul %767, %768, %cst_282 {dimension_numbers = #tpu.dot_dimension_numbers<[1], [1], [0], [0], [0, 0, 1, 0], [], []>} : vector<8x16xf32>, vector<8x16xf32>, vector<8x8xf32> -> vector<8x8xf32>
    %771 = vector.broadcast %718 : vector<1x8xf32> to vector<8x8xf32>
    %772 = arith.addf %770, %771 : vector<8x8xf32>
    %cst_283 = arith.constant dense<0xFF800000> : vector<8xf32>
    %773 = vector.multi_reduction <maximumf>, %772, %cst_283 [1] : vector<8x8xf32> to vector<8xf32>
    %774 = vector.shape_cast %773 : vector<8xf32> to vector<8x1xf32>
    %775 = vector.broadcast %774 : vector<8x1xf32> to vector<8x8xf32>
    %776 = arith.subf %772, %775 : vector<8x8xf32>
    %777 = math.exp %776 : vector<8x8xf32>
    %cst_284 = arith.constant dense<0.000000e+00> : vector<8xf32>
    %778 = vector.multi_reduction <add>, %777, %cst_284 [1] : vector<8x8xf32> to vector<8xf32>
    %779 = vector.shape_cast %778 : vector<8xf32> to vector<8x1xf32>
    %780 = vector.broadcast %779 : vector<8x1xf32> to vector<8x8xf32>
    %781 = arith.divf %777, %780 : vector<8x8xf32>
    %cst_285 = arith.constant dense<0.000000e+00> : vector<8x16xf32>
    %782 = tpu.matmul %781, %769, %cst_285 {dimension_numbers = #tpu.dot_dimension_numbers<[1], [0], [0], [1], [0, 0, 1, 1], [], []>} : vector<8x8xf32>, vector<8x16xf32>, vector<8x16xf32> -> vector<8x16xf32>
    %783 = tpu.concatenate %734, %750, %766, %782 in 1 : vector<8x16xf32>, vector<8x16xf32>, vector<8x16xf32>, vector<8x16xf32> -> vector<8x64xf32>
    %784 = vector.extract_strided_slice %716 {offsets = [8, 0], sizes = [8, 192], strides = [1, 1]} : vector<16x192xf32> to vector<8x192xf32>
    %785 = vector.extract_strided_slice %0 {offsets = [1, 0], sizes = [1, 8], strides = [1, 1]} : vector<2x8xf32> to vector<1x8xf32>
    %786 = vector.extract_strided_slice %784 {offsets = [0, 0], sizes = [8, 16], strides = [1, 1]} : vector<8x192xf32> to vector<8x16xf32>
    %787 = vector.extract_strided_slice %784 {offsets = [0, 64], sizes = [8, 16], strides = [1, 1]} : vector<8x192xf32> to vector<8x16xf32>
    %788 = vector.extract_strided_slice %784 {offsets = [0, 128], sizes = [8, 16], strides = [1, 1]} : vector<8x192xf32> to vector<8x16xf32>
    %cst_286 = arith.constant dense<0.000000e+00> : vector<8x8xf32>
    %789 = tpu.matmul %786, %787, %cst_286 {dimension_numbers = #tpu.dot_dimension_numbers<[1], [1], [0], [0], [0, 0, 1, 0], [], []>} : vector<8x16xf32>, vector<8x16xf32>, vector<8x8xf32> -> vector<8x8xf32>
    %790 = vector.broadcast %785 : vector<1x8xf32> to vector<8x8xf32>
    %791 = arith.addf %789, %790 : vector<8x8xf32>
    %cst_287 = arith.constant dense<0xFF800000> : vector<8xf32>
    %792 = vector.multi_reduction <maximumf>, %791, %cst_287 [1] : vector<8x8xf32> to vector<8xf32>
    %793 = vector.shape_cast %792 : vector<8xf32> to vector<8x1xf32>
    %794 = vector.broadcast %793 : vector<8x1xf32> to vector<8x8xf32>
    %795 = arith.subf %791, %794 : vector<8x8xf32>
    %796 = math.exp %795 : vector<8x8xf32>
    %cst_288 = arith.constant dense<0.000000e+00> : vector<8xf32>
    %797 = vector.multi_reduction <add>, %796, %cst_288 [1] : vector<8x8xf32> to vector<8xf32>
    %798 = vector.shape_cast %797 : vector<8xf32> to vector<8x1xf32>
    %799 = vector.broadcast %798 : vector<8x1xf32> to vector<8x8xf32>
    %800 = arith.divf %796, %799 : vector<8x8xf32>
    %cst_289 = arith.constant dense<0.000000e+00> : vector<8x16xf32>
    %801 = tpu.matmul %800, %788, %cst_289 {dimension_numbers = #tpu.dot_dimension_numbers<[1], [0], [0], [1], [0, 0, 1, 1], [], []>} : vector<8x8xf32>, vector<8x16xf32>, vector<8x16xf32> -> vector<8x16xf32>
    %802 = vector.extract_strided_slice %784 {offsets = [0, 16], sizes = [8, 16], strides = [1, 1]} : vector<8x192xf32> to vector<8x16xf32>
    %803 = vector.extract_strided_slice %784 {offsets = [0, 80], sizes = [8, 16], strides = [1, 1]} : vector<8x192xf32> to vector<8x16xf32>
    %804 = vector.extract_strided_slice %784 {offsets = [0, 144], sizes = [8, 16], strides = [1, 1]} : vector<8x192xf32> to vector<8x16xf32>
    %cst_290 = arith.constant dense<0.000000e+00> : vector<8x8xf32>
    %805 = tpu.matmul %802, %803, %cst_290 {dimension_numbers = #tpu.dot_dimension_numbers<[1], [1], [0], [0], [0, 0, 1, 0], [], []>} : vector<8x16xf32>, vector<8x16xf32>, vector<8x8xf32> -> vector<8x8xf32>
    %806 = vector.broadcast %785 : vector<1x8xf32> to vector<8x8xf32>
    %807 = arith.addf %805, %806 : vector<8x8xf32>
    %cst_291 = arith.constant dense<0xFF800000> : vector<8xf32>
    %808 = vector.multi_reduction <maximumf>, %807, %cst_291 [1] : vector<8x8xf32> to vector<8xf32>
    %809 = vector.shape_cast %808 : vector<8xf32> to vector<8x1xf32>
    %810 = vector.broadcast %809 : vector<8x1xf32> to vector<8x8xf32>
    %811 = arith.subf %807, %810 : vector<8x8xf32>
    %812 = math.exp %811 : vector<8x8xf32>
    %cst_292 = arith.constant dense<0.000000e+00> : vector<8xf32>
    %813 = vector.multi_reduction <add>, %812, %cst_292 [1] : vector<8x8xf32> to vector<8xf32>
    %814 = vector.shape_cast %813 : vector<8xf32> to vector<8x1xf32>
    %815 = vector.broadcast %814 : vector<8x1xf32> to vector<8x8xf32>
    %816 = arith.divf %812, %815 : vector<8x8xf32>
    %cst_293 = arith.constant dense<0.000000e+00> : vector<8x16xf32>
    %817 = tpu.matmul %816, %804, %cst_293 {dimension_numbers = #tpu.dot_dimension_numbers<[1], [0], [0], [1], [0, 0, 1, 1], [], []>} : vector<8x8xf32>, vector<8x16xf32>, vector<8x16xf32> -> vector<8x16xf32>
    %818 = vector.extract_strided_slice %784 {offsets = [0, 32], sizes = [8, 16], strides = [1, 1]} : vector<8x192xf32> to vector<8x16xf32>
    %819 = vector.extract_strided_slice %784 {offsets = [0, 96], sizes = [8, 16], strides = [1, 1]} : vector<8x192xf32> to vector<8x16xf32>
    %820 = vector.extract_strided_slice %784 {offsets = [0, 160], sizes = [8, 16], strides = [1, 1]} : vector<8x192xf32> to vector<8x16xf32>
    %cst_294 = arith.constant dense<0.000000e+00> : vector<8x8xf32>
    %821 = tpu.matmul %818, %819, %cst_294 {dimension_numbers = #tpu.dot_dimension_numbers<[1], [1], [0], [0], [0, 0, 1, 0], [], []>} : vector<8x16xf32>, vector<8x16xf32>, vector<8x8xf32> -> vector<8x8xf32>
    %822 = vector.broadcast %785 : vector<1x8xf32> to vector<8x8xf32>
    %823 = arith.addf %821, %822 : vector<8x8xf32>
    %cst_295 = arith.constant dense<0xFF800000> : vector<8xf32>
    %824 = vector.multi_reduction <maximumf>, %823, %cst_295 [1] : vector<8x8xf32> to vector<8xf32>
    %825 = vector.shape_cast %824 : vector<8xf32> to vector<8x1xf32>
    %826 = vector.broadcast %825 : vector<8x1xf32> to vector<8x8xf32>
    %827 = arith.subf %823, %826 : vector<8x8xf32>
    %828 = math.exp %827 : vector<8x8xf32>
    %cst_296 = arith.constant dense<0.000000e+00> : vector<8xf32>
    %829 = vector.multi_reduction <add>, %828, %cst_296 [1] : vector<8x8xf32> to vector<8xf32>
    %830 = vector.shape_cast %829 : vector<8xf32> to vector<8x1xf32>
    %831 = vector.broadcast %830 : vector<8x1xf32> to vector<8x8xf32>
    %832 = arith.divf %828, %831 : vector<8x8xf32>
    %cst_297 = arith.constant dense<0.000000e+00> : vector<8x16xf32>
    %833 = tpu.matmul %832, %820, %cst_297 {dimension_numbers = #tpu.dot_dimension_numbers<[1], [0], [0], [1], [0, 0, 1, 1], [], []>} : vector<8x8xf32>, vector<8x16xf32>, vector<8x16xf32> -> vector<8x16xf32>
    %834 = vector.extract_strided_slice %784 {offsets = [0, 48], sizes = [8, 16], strides = [1, 1]} : vector<8x192xf32> to vector<8x16xf32>
    %835 = vector.extract_strided_slice %784 {offsets = [0, 112], sizes = [8, 16], strides = [1, 1]} : vector<8x192xf32> to vector<8x16xf32>
    %836 = vector.extract_strided_slice %784 {offsets = [0, 176], sizes = [8, 16], strides = [1, 1]} : vector<8x192xf32> to vector<8x16xf32>
    %cst_298 = arith.constant dense<0.000000e+00> : vector<8x8xf32>
    %837 = tpu.matmul %834, %835, %cst_298 {dimension_numbers = #tpu.dot_dimension_numbers<[1], [1], [0], [0], [0, 0, 1, 0], [], []>} : vector<8x16xf32>, vector<8x16xf32>, vector<8x8xf32> -> vector<8x8xf32>
    %838 = vector.broadcast %785 : vector<1x8xf32> to vector<8x8xf32>
    %839 = arith.addf %837, %838 : vector<8x8xf32>
    %cst_299 = arith.constant dense<0xFF800000> : vector<8xf32>
    %840 = vector.multi_reduction <maximumf>, %839, %cst_299 [1] : vector<8x8xf32> to vector<8xf32>
    %841 = vector.shape_cast %840 : vector<8xf32> to vector<8x1xf32>
    %842 = vector.broadcast %841 : vector<8x1xf32> to vector<8x8xf32>
    %843 = arith.subf %839, %842 : vector<8x8xf32>
    %844 = math.exp %843 : vector<8x8xf32>
    %cst_300 = arith.constant dense<0.000000e+00> : vector<8xf32>
    %845 = vector.multi_reduction <add>, %844, %cst_300 [1] : vector<8x8xf32> to vector<8xf32>
    %846 = vector.shape_cast %845 : vector<8xf32> to vector<8x1xf32>
    %847 = vector.broadcast %846 : vector<8x1xf32> to vector<8x8xf32>
    %848 = arith.divf %844, %847 : vector<8x8xf32>
    %cst_301 = arith.constant dense<0.000000e+00> : vector<8x16xf32>
    %849 = tpu.matmul %848, %836, %cst_301 {dimension_numbers = #tpu.dot_dimension_numbers<[1], [0], [0], [1], [0, 0, 1, 1], [], []>} : vector<8x8xf32>, vector<8x16xf32>, vector<8x16xf32> -> vector<8x16xf32>
    %850 = tpu.concatenate %801, %817, %833, %849 in 1 : vector<8x16xf32>, vector<8x16xf32>, vector<8x16xf32>, vector<8x16xf32> -> vector<8x64xf32>
    %851 = tpu.concatenate %783, %850 in 0 : vector<8x64xf32>, vector<8x64xf32> -> vector<16x64xf32>
    %c3_302 = arith.constant 3 : index
    %c0_303 = arith.constant 0 : index
    %c0_304 = arith.constant 0 : index
    %852 = vector.load %arg7[%c3_302, %c0_303, %c0_304] : memref<4x64x64xf32, #tpu.memory_space<vmem>>, vector<1x64x64xf32>
    %853 = vector.shape_cast %852 : vector<1x64x64xf32> to vector<64x64xf32>
    %cst_305 = arith.constant dense<0.000000e+00> : vector<16x64xf32>
    %854 = tpu.matmul %851, %853, %cst_305 {dimension_numbers = #tpu.dot_dimension_numbers<[1], [0], [0], [1], [0, 0, 1, 1], [], []>} : vector<16x64xf32>, vector<64x64xf32>, vector<16x64xf32> -> vector<16x64xf32>
    %c3_306 = arith.constant 3 : index
    %c0_307 = arith.constant 0 : index
    %c0_308 = arith.constant 0 : index
    %855 = vector.load %arg8[%c3_306, %c0_307, %c0_308] : memref<4x1x64xf32, #tpu.memory_space<vmem>>, vector<1x1x64xf32>
    %856 = vector.shape_cast %855 : vector<1x1x64xf32> to vector<1x64xf32>
    %857 = vector.broadcast %856 : vector<1x64xf32> to vector<16x64xf32>
    %858 = arith.addf %854, %857 : vector<16x64xf32>
    %859 = arith.addf %706, %858 : vector<16x64xf32>
    %c3_309 = arith.constant 3 : index
    %c0_310 = arith.constant 0 : index
    %c0_311 = arith.constant 0 : index
    %860 = vector.load %arg9[%c3_309, %c0_310, %c0_311] : memref<4x1x64xf32, #tpu.memory_space<vmem>>, vector<1x1x64xf32>
    %861 = vector.shape_cast %860 : vector<1x1x64xf32> to vector<1x64xf32>
    %c3_312 = arith.constant 3 : index
    %c0_313 = arith.constant 0 : index
    %c0_314 = arith.constant 0 : index
    %862 = vector.load %arg10[%c3_312, %c0_313, %c0_314] : memref<4x1x64xf32, #tpu.memory_space<vmem>>, vector<1x1x64xf32>
    %863 = vector.shape_cast %862 : vector<1x1x64xf32> to vector<1x64xf32>
    %cst_315 = arith.constant dense<0.000000e+00> : vector<16xf32>
    %864 = vector.multi_reduction <add>, %859, %cst_315 [1] : vector<16x64xf32> to vector<16xf32>
    %865 = vector.shape_cast %864 : vector<16xf32> to vector<16x1xf32>
    %cst_316 = arith.constant 6.400000e+01 : f32
    %866 = vector.broadcast %cst_316 : f32 to vector<16x1xf32>
    %867 = arith.divf %865, %866 : vector<16x1xf32>
    %868 = vector.broadcast %867 : vector<16x1xf32> to vector<16x64xf32>
    %869 = arith.subf %859, %868 : vector<16x64xf32>
    %870 = arith.mulf %869, %869 : vector<16x64xf32>
    %cst_317 = arith.constant dense<0.000000e+00> : vector<16xf32>
    %871 = vector.multi_reduction <add>, %870, %cst_317 [1] : vector<16x64xf32> to vector<16xf32>
    %872 = vector.shape_cast %871 : vector<16xf32> to vector<16x1xf32>
    %cst_318 = arith.constant 6.400000e+01 : f32
    %873 = vector.broadcast %cst_318 : f32 to vector<16x1xf32>
    %874 = arith.divf %872, %873 : vector<16x1xf32>
    %875 = vector.broadcast %867 : vector<16x1xf32> to vector<16x64xf32>
    %876 = arith.subf %859, %875 : vector<16x64xf32>
    %cst_319 = arith.constant 9.99999974E-6 : f32
    %877 = vector.broadcast %cst_319 : f32 to vector<16x1xf32>
    %878 = arith.addf %874, %877 : vector<16x1xf32>
    %879 = math.rsqrt %878 : vector<16x1xf32>
    %880 = vector.broadcast %879 : vector<16x1xf32> to vector<16x64xf32>
    %881 = arith.mulf %876, %880 : vector<16x64xf32>
    %882 = vector.broadcast %861 : vector<1x64xf32> to vector<16x64xf32>
    %883 = arith.mulf %881, %882 : vector<16x64xf32>
    %884 = vector.broadcast %863 : vector<1x64xf32> to vector<16x64xf32>
    %885 = arith.addf %883, %884 : vector<16x64xf32>
    %c3_320 = arith.constant 3 : index
    %c0_321 = arith.constant 0 : index
    %c0_322 = arith.constant 0 : index
    %886 = vector.load %arg11[%c3_320, %c0_321, %c0_322] : memref<4x64x256xf32, #tpu.memory_space<vmem>>, vector<1x64x256xf32>
    %887 = vector.shape_cast %886 : vector<1x64x256xf32> to vector<64x256xf32>
    %cst_323 = arith.constant dense<0.000000e+00> : vector<16x256xf32>
    %888 = tpu.matmul %885, %887, %cst_323 {dimension_numbers = #tpu.dot_dimension_numbers<[1], [0], [0], [1], [0, 0, 1, 1], [], []>} : vector<16x64xf32>, vector<64x256xf32>, vector<16x256xf32> -> vector<16x256xf32>
    %c3_324 = arith.constant 3 : index
    %c0_325 = arith.constant 0 : index
    %c0_326 = arith.constant 0 : index
    %889 = vector.load %arg12[%c3_324, %c0_325, %c0_326] : memref<4x1x256xf32, #tpu.memory_space<vmem>>, vector<1x1x256xf32>
    %890 = vector.shape_cast %889 : vector<1x1x256xf32> to vector<1x256xf32>
    %891 = vector.broadcast %890 : vector<1x256xf32> to vector<16x256xf32>
    %892 = arith.addf %888, %891 : vector<16x256xf32>
    %cst_327 = arith.constant 5.000000e-01 : f32
    %893 = vector.broadcast %cst_327 : f32 to vector<16x256xf32>
    %894 = arith.mulf %893, %892 : vector<16x256xf32>
    %cst_328 = arith.constant 0.707106769 : f32
    %895 = vector.broadcast %cst_328 : f32 to vector<16x256xf32>
    %896 = arith.mulf %892, %895 : vector<16x256xf32>
    %897 = math.erf %896 : vector<16x256xf32>
    %cst_329 = arith.constant 1.000000e+00 : f32
    %898 = vector.broadcast %cst_329 : f32 to vector<16x256xf32>
    %899 = arith.addf %898, %897 : vector<16x256xf32>
    %900 = arith.mulf %894, %899 : vector<16x256xf32>
    %c3_330 = arith.constant 3 : index
    %c0_331 = arith.constant 0 : index
    %c0_332 = arith.constant 0 : index
    %901 = vector.load %arg13[%c3_330, %c0_331, %c0_332] : memref<4x256x64xf32, #tpu.memory_space<vmem>>, vector<1x256x64xf32>
    %902 = vector.shape_cast %901 : vector<1x256x64xf32> to vector<256x64xf32>
    %cst_333 = arith.constant dense<0.000000e+00> : vector<16x64xf32>
    %903 = tpu.matmul %900, %902, %cst_333 {dimension_numbers = #tpu.dot_dimension_numbers<[1], [0], [0], [1], [0, 0, 1, 1], [], []>} : vector<16x256xf32>, vector<256x64xf32>, vector<16x64xf32> -> vector<16x64xf32>
    %c3_334 = arith.constant 3 : index
    %c0_335 = arith.constant 0 : index
    %c0_336 = arith.constant 0 : index
    %904 = vector.load %arg14[%c3_334, %c0_335, %c0_336] : memref<4x1x64xf32, #tpu.memory_space<vmem>>, vector<1x1x64xf32>
    %905 = vector.shape_cast %904 : vector<1x1x64xf32> to vector<1x64xf32>
    %906 = vector.broadcast %905 : vector<1x64xf32> to vector<16x64xf32>
    %907 = arith.addf %903, %906 : vector<16x64xf32>
    %908 = arith.addf %885, %907 : vector<16x64xf32>
    %c3_337 = arith.constant 3 : index
    %c0_338 = arith.constant 0 : index
    %c0_339 = arith.constant 0 : index
    %909 = vector.load %arg15[%c3_337, %c0_338, %c0_339] : memref<4x1x64xf32, #tpu.memory_space<vmem>>, vector<1x1x64xf32>
    %910 = vector.shape_cast %909 : vector<1x1x64xf32> to vector<1x64xf32>
    %c3_340 = arith.constant 3 : index
    %c0_341 = arith.constant 0 : index
    %c0_342 = arith.constant 0 : index
    %911 = vector.load %arg16[%c3_340, %c0_341, %c0_342] : memref<4x1x64xf32, #tpu.memory_space<vmem>>, vector<1x1x64xf32>
    %912 = vector.shape_cast %911 : vector<1x1x64xf32> to vector<1x64xf32>
    %cst_343 = arith.constant dense<0.000000e+00> : vector<16xf32>
    %913 = vector.multi_reduction <add>, %908, %cst_343 [1] : vector<16x64xf32> to vector<16xf32>
    %914 = vector.shape_cast %913 : vector<16xf32> to vector<16x1xf32>
    %cst_344 = arith.constant 6.400000e+01 : f32
    %915 = vector.broadcast %cst_344 : f32 to vector<16x1xf32>
    %916 = arith.divf %914, %915 : vector<16x1xf32>
    %917 = vector.broadcast %916 : vector<16x1xf32> to vector<16x64xf32>
    %918 = arith.subf %908, %917 : vector<16x64xf32>
    %919 = arith.mulf %918, %918 : vector<16x64xf32>
    %cst_345 = arith.constant dense<0.000000e+00> : vector<16xf32>
    %920 = vector.multi_reduction <add>, %919, %cst_345 [1] : vector<16x64xf32> to vector<16xf32>
    %921 = vector.shape_cast %920 : vector<16xf32> to vector<16x1xf32>
    %cst_346 = arith.constant 6.400000e+01 : f32
    %922 = vector.broadcast %cst_346 : f32 to vector<16x1xf32>
    %923 = arith.divf %921, %922 : vector<16x1xf32>
    %924 = vector.broadcast %916 : vector<16x1xf32> to vector<16x64xf32>
    %925 = arith.subf %908, %924 : vector<16x64xf32>
    %cst_347 = arith.constant 9.99999974E-6 : f32
    %926 = vector.broadcast %cst_347 : f32 to vector<16x1xf32>
    %927 = arith.addf %923, %926 : vector<16x1xf32>
    %928 = math.rsqrt %927 : vector<16x1xf32>
    %929 = vector.broadcast %928 : vector<16x1xf32> to vector<16x64xf32>
    %930 = arith.mulf %925, %929 : vector<16x64xf32>
    %931 = vector.broadcast %910 : vector<1x64xf32> to vector<16x64xf32>
    %932 = arith.mulf %930, %931 : vector<16x64xf32>
    %933 = vector.broadcast %912 : vector<1x64xf32> to vector<16x64xf32>
    %934 = arith.addf %932, %933 : vector<16x64xf32>
    %935 = vector.extract_strided_slice %934 {offsets = [0, 0], sizes = [1, 64], strides = [1, 1]} : vector<16x64xf32> to vector<1x64xf32>
    %936 = vector.extract_strided_slice %934 {offsets = [8, 0], sizes = [1, 64], strides = [1, 1]} : vector<16x64xf32> to vector<1x64xf32>
    %937 = tpu.concatenate %935, %936 in 0 : vector<1x64xf32>, vector<1x64xf32> -> vector<2x64xf32>
    %938 = tpu.concatenate %937, %709, %481, %253 in 1 : vector<2x64xf32>, vector<2x64xf32>, vector<2x64xf32>, vector<2x64xf32> -> vector<2x256xf32>
    %c0_348 = arith.constant 0 : index
    %c0_349 = arith.constant 0 : index
    %939 = vector.load %arg17[%c0_348, %c0_349] : memref<256x3xf32, #tpu.memory_space<vmem>>, vector<256x3xf32>
    %cst_350 = arith.constant dense<0.000000e+00> : vector<2x3xf32>
    %940 = tpu.matmul %938, %939, %cst_350 {dimension_numbers = #tpu.dot_dimension_numbers<[1], [0], [0], [1], [0, 0, 1, 1], [], []>} : vector<2x256xf32>, vector<256x3xf32>, vector<2x3xf32> -> vector<2x3xf32>
    %c0_351 = arith.constant 0 : index
    %c0_352 = arith.constant 0 : index
    %941 = vector.load %arg18[%c0_351, %c0_352] : memref<1x3xf32, #tpu.memory_space<vmem>>, vector<1x3xf32>
    %942 = vector.broadcast %941 : vector<1x3xf32> to vector<2x3xf32>
    %943 = arith.addf %940, %942 : vector<2x3xf32>
    %c0_353 = arith.constant 0 : index
    %c0_354 = arith.constant 0 : index
    %944 = vector.load %arg19[%c0_353, %c0_354] : memref<2x3xf32, #tpu.memory_space<vmem>>, vector<2x3xf32>
    tpu.vector_store %arg19[%c0_353, %c0_354], %943 {strides = array<i32>} : memref<2x3xf32, #tpu.memory_space<vmem>>, vector<2x3xf32>,
    return
  }
  func.func @transform_0(%arg0: i32) -> (i32, i32) {
    %c0_i32 = arith.constant 0 : i32
    %c0_i32_0 = arith.constant 0 : i32
    %c0_i32_1 = arith.constant 0 : i32
    return %c0_i32, %c0_i32_0 : i32, i32
  }
  func.func @transform_1(%arg0: i32) -> (i32, i32) {
    %c0_i32 = arith.constant 0 : i32
    %c0_i32_0 = arith.constant 0 : i32
    %c0_i32_1 = arith.constant 0 : i32
    return %c0_i32, %c0_i32_0 : i32, i32
  }
  func.func @transform_2(%arg0: i32) -> (i32, i32) {
    %c0_i32 = arith.constant 0 : i32
    %c0_i32_0 = arith.constant 0 : i32
    %c0_i32_1 = arith.constant 0 : i32
    return %c0_i32, %c0_i32_0 : i32, i32
  }
  func.func @transform_3(%arg0: i32) -> (i32, i32) {
    %c0_i32 = arith.constant 0 : i32
    %c0_i32_0 = arith.constant 0 : i32
    %c0_i32_1 = arith.constant 0 : i32
    return %c0_i32, %c0_i32_0 : i32, i32
  }
  func.func @transform_4(%arg0: i32) -> (i32, i32, i32) {
    %c0_i32 = arith.constant 0 : i32
    %c0_i32_0 = arith.constant 0 : i32
    %c0_i32_1 = arith.constant 0 : i32
    %c0_i32_2 = arith.constant 0 : i32
    return %c0_i32, %c0_i32_0, %c0_i32_1 : i32, i32, i32
  }
  func.func @transform_5(%arg0: i32) -> (i32, i32, i32) {
    %c0_i32 = arith.constant 0 : i32
    %c0_i32_0 = arith.constant 0 : i32
    %c0_i32_1 = arith.constant 0 : i32
    %c0_i32_2 = arith.constant 0 : i32
    return %c0_i32, %c0_i32_0, %c0_i32_1 : i32, i32, i32
  }
  func.func @transform_6(%arg0: i32) -> (i32, i32, i32) {
    %c0_i32 = arith.constant 0 : i32
    %c0_i32_0 = arith.constant 0 : i32
    %c0_i32_1 = arith.constant 0 : i32
    %c0_i32_2 = arith.constant 0 : i32
    return %c0_i32, %c0_i32_0, %c0_i32_1 : i32, i32, i32
  }
  func.func @transform_7(%arg0: i32) -> (i32, i32, i32) {
    %c0_i32 = arith.constant 0 : i32
    %c0_i32_0 = arith.constant 0 : i32
    %c0_i32_1 = arith.constant 0 : i32
    %c0_i32_2 = arith.constant 0 : i32
    return %c0_i32, %c0_i32_0, %c0_i32_1 : i32, i32, i32
  }
  func.func @transform_8(%arg0: i32) -> (i32, i32, i32) {
    %c0_i32 = arith.constant 0 : i32
    %c0_i32_0 = arith.constant 0 : i32
    %c0_i32_1 = arith.constant 0 : i32
    %c0_i32_2 = arith.constant 0 : i32
    return %c0_i32, %c0_i32_0, %c0_i32_1 : i32, i32, i32
  }
  func.func @transform_9(%arg0: i32) -> (i32, i32, i32) {
    %c0_i32 = arith.constant 0 : i32
    %c0_i32_0 = arith.constant 0 : i32
    %c0_i32_1 = arith.constant 0 : i32
    %c0_i32_2 = arith.constant 0 : i32
    return %c0_i32, %c0_i32_0, %c0_i32_1 : i32, i32, i32
  }
  func.func @transform_10(%arg0: i32) -> (i32, i32, i32) {
    %c0_i32 = arith.constant 0 : i32
    %c0_i32_0 = arith.constant 0 : i32
    %c0_i32_1 = arith.constant 0 : i32
    %c0_i32_2 = arith.constant 0 : i32
    return %c0_i32, %c0_i32_0, %c0_i32_1 : i32, i32, i32
  }
  func.func @transform_11(%arg0: i32) -> (i32, i32, i32) {
    %c0_i32 = arith.constant 0 : i32
    %c0_i32_0 = arith.constant 0 : i32
    %c0_i32_1 = arith.constant 0 : i32
    %c0_i32_2 = arith.constant 0 : i32
    return %c0_i32, %c0_i32_0, %c0_i32_1 : i32, i32, i32
  }
  func.func @transform_12(%arg0: i32) -> (i32, i32, i32) {
    %c0_i32 = arith.constant 0 : i32
    %c0_i32_0 = arith.constant 0 : i32
    %c0_i32_1 = arith.constant 0 : i32
    %c0_i32_2 = arith.constant 0 : i32
    return %c0_i32, %c0_i32_0, %c0_i32_1 : i32, i32, i32
  }
  func.func @transform_13(%arg0: i32) -> (i32, i32, i32) {
    %c0_i32 = arith.constant 0 : i32
    %c0_i32_0 = arith.constant 0 : i32
    %c0_i32_1 = arith.constant 0 : i32
    %c0_i32_2 = arith.constant 0 : i32
    return %c0_i32, %c0_i32_0, %c0_i32_1 : i32, i32, i32
  }
  func.func @transform_14(%arg0: i32) -> (i32, i32, i32) {
    %c0_i32 = arith.constant 0 : i32
    %c0_i32_0 = arith.constant 0 : i32
    %c0_i32_1 = arith.constant 0 : i32
    %c0_i32_2 = arith.constant 0 : i32
    return %c0_i32, %c0_i32_0, %c0_i32_1 : i32, i32, i32
  }
  func.func @transform_15(%arg0: i32) -> (i32, i32, i32) {
    %c0_i32 = arith.constant 0 : i32
    %c0_i32_0 = arith.constant 0 : i32
    %c0_i32_1 = arith.constant 0 : i32
    %c0_i32_2 = arith.constant 0 : i32
    return %c0_i32, %c0_i32_0, %c0_i32_1 : i32, i32, i32
  }
  func.func @transform_16(%arg0: i32) -> (i32, i32) {
    %c0_i32 = arith.constant 0 : i32
    %c0_i32_0 = arith.constant 0 : i32
    %c0_i32_1 = arith.constant 0 : i32
    return %c0_i32, %c0_i32_0 : i32, i32
  }
  func.func @transform_17(%arg0: i32) -> (i32, i32) {
    %c0_i32 = arith.constant 0 : i32
    %c0_i32_0 = arith.constant 0 : i32
    %c0_i32_1 = arith.constant 0 : i32
    return %c0_i32, %c0_i32_0 : i32, i32
  }
  func.func @transform_18(%arg0: i32) -> (i32, i32) {
    %c0_i32 = arith.constant 0 : i32
    %c0_i32_0 = arith.constant 0 : i32
    %c0_i32_1 = arith.constant 0 : i32
    return %c0_i32, %c0_i32_0 : i32, i32
  }
}

</mosaic_0001>

<bundles_post_ra>
// kernel: gen2_forward.1
= control target key start
LH: loop header
LB: loop body
LE: loop exit
PB: predicated region body
PF: predicated region fallthrough
CT: control target
= control target key end

     0   :  { %s11686_s0 = inlined_call_operand.vmem [shape: f32[16,64], index: 0, kind: input, shape index: {}]   ;;  %s11687_s1 = inlined_call_operand.vmem [shape: f32[2,8], index: 1, kind: input, shape index: {}]   ;;  %s11688_s2 = inlined_call_operand.vmem [shape: f32[1,64], index: 2, kind: input, shape index: {}]   ;;  %s11689_s3 = inlined_call_operand.vmem [shape: f32[1,64], index: 3, kind: input, shape index: {}]   ;;  %s11690_s4 = inlined_call_operand.vmem [shape: f32[4,64,192], index: 4, kind: input, shape index: {}]   ;;  %s11691_s5 = inlined_call_operand.vmem [shape: f32[4,1,192], index: 5, kind: input, shape index: {}]   ;;  %s11692_s6 = inlined_call_operand.vmem [shape: f32[4,64,64], index: 6, kind: input, shape index: {}]   ;;  %s11693_s7 = inlined_call_operand.vmem [shape: f32[4,1,64], index: 7, kind: input, shape index: {}]   ;;  %s11694_s8 = inlined_call_operand.vmem [shape: f32[4,1,64], index: 8, kind: input, shape index: {}]   ;;  %s11695_s9 = inlined_call_operand.vmem [shape: f32[4,1,64], index: 9, kind: input, shape index: {}]   ;;  %s11696_s10 = inlined_call_operand.vmem [shape: f32[4,64,256], index: 10, kind: input, shape index: {}]   ;;  %s11697_s11 = inlined_call_operand.vmem [shape: f32[4,1,256], index: 11, kind: input, shape index: {}]   ;;  %s11698_s12 = inlined_call_operand.vmem [shape: f32[4,256,64], index: 12, kind: input, shape index: {}]   ;;  %s11699_s13 = inlined_call_operand.vmem [shape: f32[4,1,64], index: 13, kind: input, shape index: {}]   ;;  %s11700_s14 = inlined_call_operand.vmem [shape: f32[4,1,64], index: 14, kind: input, shape index: {}]   ;;  %s11701_s15 = inlined_call_operand.vmem [shape: f32[4,1,64], index: 15, kind: input, shape index: {}]   ;;  %s11702_s16 = inlined_call_operand.vmem [shape: f32[256,3], index: 16, kind: input, shape index: {}]   ;;  %s11703_s17 = inlined_call_operand.vmem [shape: f32[1,3], index: 17, kind: input, shape index: {}]   ;;  %s11704_s18 = inlined_call_operand.hbm [shape: f32[2,3], index: 18, kind: output, shape index: {}]  }
   0x1   :  { %11718 = sst [smem:[#allocation5_spill]] %s11686_s0 }
   0x2   :  { %11719 = sst [smem:[#allocation6_spill]] %s11687_s1 }
   0x3   :  { %11720 = sst [smem:[#allocation7_spill]] %s11688_s2 }
   0x4   :  { %s11721_s29 = sld [smem:[#allocation5_spill]]  ;;  %vm65_vm0 = vcmask 523264  }
   0xa   :  { %v61_v0 = vld [vmem:[%s11721_s29] sm:$0xff] }
   0xb   :  { %23 = vsyncpa [#allocation3], 0  ;;  %v66_v1 = vsel %vm65_vm0, %v61_v0, 0.0  ;;  %v110_v7 = vld [vmem:[%s11690_s4 + $0x8] sm:$0xff]  ;;  %v112_v8 = vld [vmem:[%s11690_s4 + $0x18] sm:$0xff]  ;;  %v9583_v20 = vmov 0.0   ;;  %v127_v41 = vlaneseq }
   0xc   :  { %67 = vadd.xlane.f32.xlu0 %v66_v1  ;;  %v8996_v9 = vpack.c.bf16 %v112_v8, %v110_v7  ;;  %v109_v10 = vld [vmem:[%s11690_s4] sm:$0xff]  ;;  %v111_v11 = vld [vmem:[%s11690_s4 + $0x10] sm:$0xff]  ;;  %v114_v13 = vld [vmem:[%s11690_s4 + $0x28] sm:$0xff]  ;;  %207 = vmatprep.mubr.f32.mxu0 %v9583_v20  ;;  %s11722_s22 = sld [smem:[#allocation7_spill]]  ;;  %vm9584_vm1 = vmmov 0   ;;  %s11706_s25 = smov 48  }
   0xd   :  { %v8998_v12 = vpack.c.bf16 %v111_v11, %v109_v10  ;;  %v116_v14 = vld [vmem:[%s11690_s4 + $0x38] sm:$0xff]  ;;  %v113_v15 = vld [vmem:[%s11690_s4 + $0x20] sm:$0xff]  ;;  %v115_v17 = vld [vmem:[%s11690_s4 + $0x30] sm:$0xff]  ;;  %8600 = vmatprep.subr.mxu1 %v9583_v20  ;;  %v128_v42 = vshrl.u32 %v127_v41, 7  ;;  %8602 = vmatprep.mubr.msk.f32.mxu1 %vm9584_vm1, %v9583_v20  ;;  %s9586_s26 = smov 64   ;;  %vm227_vm2 = vcmask 130048  }
   0xe   :  { %8997 = vmatprep.subr.bf16.mxu0 %v8996_v9  ;;  %v9000_v16 = vpack.c.bf16 %v116_v14, %v114_v13  ;;  %v118_v18 = vld [vmem:[%s11690_s4 + $0x48] sm:$0xff]  ;;  %v120_v19 = vld [vmem:[%s11690_s4 + $0x58] sm:$0xff]  ;;  %v9002_v21 = vpack.c.bf16 %v115_v17, %v113_v15  ;;  %v117_v23 = vld [vmem:[%s11690_s4 + $0x40] sm:$0xff]  ;;  %s11723_s30 = sld [smem:[#allocation6_spill]]  ;;  %vm302_vm3 = vcmask 64512   ;;  %s11716_s0 = smov 112  }
   0xf   :  { %8999 = vmatpush1.bf16.msra.mxu0 %v8998_v12  ;;  %v9004_v22 = vpack.c.bf16 %v120_v19, %v118_v18  ;;  %v119_v24 = vld [vmem:[%s11690_s4 + $0x50] sm:$0xff]  ;;  %v122_v25 = vld [vmem:[%s11690_s4 + $0x68] sm:$0xff]  ;;  %v124_v26 = vld [vmem:[%s11690_s4 + $0x78] sm:$0xff]  ;;  %v9763_v43 = vsub.s32 0, %v128_v42  ;;  %v9778_v49 = vsub.s32 1, %v128_v42  ;;  %s11714_s20 = smov 32  }
  0x10   :  { %9001 = vmatprep.subr.bf16.mxu0 %v9000_v16  ;;  %v9006_v27 = vpack.c.bf16 %v119_v24, %v117_v23  ;;  %v9008_v28 = vpack.c.bf16 %v124_v26, %v122_v25  ;;  %v121_v29 = vld [vmem:[%s11690_s4 + $0x60] sm:$0xff]  ;;  %v123_v30 = vld [vmem:[%s11690_s4 + $0x70] sm:$0xff]  ;;  %s11712_s21 = smov 16   ;;  %vm896_vm4 = vcmask 261120   ;;  %vm898_vm5 = vcmask 392192   ;;  %s11724_s24 = smov 80  }
  0x11   :  { %v9010_v31 = vpack.c.bf16 %v123_v30, %v121_v29  ;;  %v9752_v38 = vld [vmem:[%s11689_s3] ss:$0 sm:$0xff]  ;;  %s11725_s27 = smov 48   ;;  %s11726_s19 = smov 16   ;;  %vm2012_vm6 = vcmask 1040384   ;;  %vm7842_vm7 = vcmask 17408  }
  0x12   :  { %v9747_v36 = vld [vmem:[%s11722_s22] ss:$0 sm:$0xff]  ;;  %s11708_s22 = smov 80   ;;  %s11728_s2 = smov 112  }
  0x13   :  { %9003 = vmatpush1.bf16.msra.mxu0 %v9002_v21  ;;  %v125_v44 = vld [vmem:[%s11691_s5] sm:$0x3]  ;;  %s11729_s23 = smov 32  }
  0x14   :  { %9005 = vmatprep.subr.bf16.mxu0 %v9004_v22  ;;  %v9769_v45 = vrot.slane %v125_v44, %v9763_v43  ;;  %v9781_v50 = vrot.slane %v125_v44, %v9778_v49  ;;  %v9797_v53 = vld [vmem:[%s11723_s30] sm:$0x3] }
  0x15   :  { %v9801_v54 = vrot.slane %v9797_v53, %v9763_v43 }
  0x17   :  { %9007 = vmatpush1.bf16.msra.mxu0 %v9006_v27 }
  0x18   :  { %9009 = vmatprep.subr.bf16.mxu0 %v9008_v28 }
  0x1b   :  { %9011 = vmatpush1.bf16.msra.mxu0 %v9010_v31 }
  0x1c   :  { %8625 = vmatprep.subr.mxu0 %v9583_v20 }
  0x99   :  { %v68_v2 = vpop.xlane.xlu0 %67 }
  0x9a   :  { %v73_v3 = vmul.f32 0.015625, %v68_v2 }
  0x9c   :  { %v75_v4 = vsub.f32 %v61_v0, %v73_v3  ;;  %v62_v0 = vld [vmem:[%s11721_s29 + $0x8] sm:$0xff]  ;;  %s11710_s29 = smov 96  }
  0x9d   :  { %v69_v1 = vsel %vm65_vm0, %v62_v0, 0.0 }
  0x9e   :  { %v77_v5 = vmul.f32 %v75_v4, %v75_v4 }
  0xa0   :  { %v79_v6 = vsel %vm65_vm0, %v77_v5, 0.0 }
  0xa1   :  { %80 = vadd.xlane.f32.xlu0 %v79_v6 }
 0x12e   :  { %v81_v32 = vpop.xlane.xlu0 %80 }
 0x12f   :  { %v85_v33 = vmul.f32 0.015625, %v81_v32 }
 0x131   :  { %v87_v34 = vadd.f32 1e-05, %v85_v33 }
 0x133   :  { %9363 = vrsqrt.f32 %v87_v34 }
 0x13d   :  { %v9364_v35 = vpop.eup %9363 }
 0x13e   :  { %v91_v37 = vmul.f32 %v9364_v35, %v75_v4 }
 0x140   :  { %v99_v39 = vmul.f32 %v9747_v36, %v91_v37 }
 0x142   :  { %v9756_v40 = vadd.f32 %v9752_v38, %v99_v39 }
 0x144   :  { %7860 = vmatmul.mubr.msk.f32.vlgmr.msra.gmra.mrb[0].mxu0 %vm65_vm0, %v9756_v40 }
 0x145   :  { %213 = vmatprep.mubr.f32.mxu0 %v9583_v20 }
 0x217   :  { %v209_v46 = vpop.f32.mrb[0].mxu0 }
 0x218   :  { %v9772_v47 = vadd.f32 %v209_v46, %v9769_v45  ;;  %v211_v48 = vpop.f32.mrb[1].mxu0 }
 0x219   :  { %v9786_v52 = vadd.f32 %v211_v48, %v9781_v50 }
 0x21a   :  { %389 = vrot.lane.b32.xlu0 %v9772_v47, %s11706_s25  ;;  %225 = vrot.lane.b32.xlu1 %v9772_v47, %s9586_s26 }
 0x28c   :  { %v226_v51 = vpop.permute.xlu1 %225  ;;  %v390_v2 = vpop.permute.xlu0 %389 }
 0x28d   :  { %8601 = vmatpush3.xpose.msk.msra.mxu1 %vm227_vm2, %v226_v51 }
 0x28e   :  { %8605 = vmatprep.subr.mxu1 %v9583_v20 }
 0x290   :  { %8603 = vmatmul.mubr.msk.f32.vlgmr.msra.gmra.mrb[0].mxu1 %vm227_vm2, %v9772_v47 }
 0x291   :  { %8606 = vmatpush3.msra.mxu1 %v9786_v52  ;;  %8607 = vmatprep.mubr.msk.f32.mxu1 %vm9584_vm1, %v9583_v20 }
 0x292   :  { %8610 = vmatprep.subr.mxu1 %v9583_v20 }
 0x363   :  { %v298_v55 = vpop.f32.mrb[0].mxu1 }
 0x364   :  { %v299_v56 = vadd.f32 %v298_v55, %v9801_v54  ;;  %v8604_v57 = vpop.f32.mrb[1].mxu1 }
 0x366   :  { %v303_v58 = vsel %vm302_vm3, %v299_v56, -inf }
 0x367   :  { %304 = vmax.xlane.f32.xlu1 %v303_v58 }
 0x3f4   :  { %v305_v59 = vpop.xlane.xlu1 %304 }
 0x3f5   :  { %v306_v60 = vsub.f32 %v299_v56, %v305_v59 }
 0x3f7   :  { %v307_v61 = vmul.f32 1.442695, %v306_v60 }
 0x3f9   :  { %9365 = vpow2.f32 %v307_v61 }
 0x403   :  { %v9366_v62 = vpop.eup %9365 }
 0x404   :  { %v309_v63 = vsel %vm302_vm3, %v9366_v62, 0.0 }
 0x405   :  { %310 = vadd.xlane.f32.xlu0 %v309_v63  ;;  %v9891_v63 = vrot.slane %v9797_v53, %v9778_v49 }
 0x41b   :  { %387 = vrot.lane.b32.xlu0 %v9772_v47, %s11716_s0 }
 0x43a   :  { %70 = vadd.xlane.f32.xlu0 %v69_v1 }
 0x450   :  { %555 = vrot.lane.b32.xlu0 %v9772_v47, %s11714_s20 }
 0x492   :  { %v311_v3 = vpop.xlane.xlu0 %310 }
 0x493   :  { %9367 = vrcp.f32 %v311_v3 }
 0x496   :  { %v388_v6 = vpop.permute.xlu0 %387 }
 0x49d   :  { %v9368_v4 = vpop.eup %9367 }
 0x49e   :  { %v313_v5 = vmul.f32 %v9368_v4, %v9366_v62 }
 0x4a0   :  { %8608 = vmatmul.mubr.msk.f32.vlgmr.msra.gmra.mrb[2].mxu1 %vm302_vm3, %v313_v5 }
 0x4a1   :  { %8611 = vmatpush3.xpose.msk.msra.mxu1 %vm227_vm2, %v390_v2  ;;  %8612 = vmatprep.mubr.msk.f32.mxu1 %vm9584_vm1, %v9583_v20 }
 0x4a2   :  { %8615 = vmatprep.subr.mxu1 %v9583_v20 }
 0x4a4   :  { %8613 = vmatmul.mubr.msk.f32.vlgmr.msra.gmra.mrb[4].mxu1 %vm227_vm2, %v388_v6 }
 0x4a5   :  { %8617 = vmatprep.mubr.msk.f32.mxu1 %vm9584_vm1, %v9583_v20 }
 0x4c7   :  { %v71_v7 = vpop.xlane.xlu0 %70 }
 0x4c8   :  { %v74_v8 = vmul.f32 0.015625, %v71_v7 }
 0x4ca   :  { %v76_v9 = vsub.f32 %v62_v0, %v74_v8 }
 0x4cb   :  { %v556_v42 = vpop.permute.xlu0 %555 }
 0x4cc   :  { %v78_v10 = vmul.f32 %v76_v9, %v76_v9 }
 0x4ce   :  { %v82_v11 = vsel %vm65_vm0, %v78_v10, 0.0 }
 0x4cf   :  { %83 = vadd.xlane.f32.xlu1 %v82_v11 }
 0x55c   :  { %v84_v12 = vpop.xlane.xlu1 %83 }
 0x55d   :  { %v86_v13 = vmul.f32 0.015625, %v84_v12 }
 0x55f   :  { %v88_v14 = vadd.f32 1e-05, %v86_v13 }
 0x561   :  { %9369 = vrsqrt.f32 %v88_v14 }
 0x56b   :  { %v9370_v15 = vpop.eup %9369 }
 0x56c   :  { %v92_v16 = vmul.f32 %v9370_v15, %v76_v9 }
 0x56e   :  { %v100_v17 = vmul.f32 %v9747_v36, %v92_v16 }
 0x570   :  { %v9825_v18 = vadd.f32 %v9752_v38, %v100_v17 }
 0x572   :  { %7861 = vmatmul.mubr.msk.f32.gmra.mrb[2].mxu0 %vm65_vm0, %v9825_v18 }
 0x573   :  { %v9829_v19 = vpop.f32.mrb[2].mxu1  ;;  %8627 = vmatprep.mubr.msk.f32.mxu0 %vm9584_vm1, %v9583_v20 }
 0x574   :  { %v8609_v21 = vpop.f32.mrb[3].mxu1 }
 0x577   :  { %v461_v22 = vpop.f32.mrb[4].mxu1 }
 0x578   :  { %v462_v23 = vadd.f32 %v461_v22, %v9801_v54  ;;  %v8614_v24 = vpop.f32.mrb[5].mxu1 }
 0x57a   :  { %v465_v25 = vsel %vm302_vm3, %v462_v23, -inf }
 0x57b   :  { %466 = vmax.xlane.f32.xlu1 %v465_v25 }
 0x58c   :  { %477 = vrot.lane.b32.xlu1 %v9786_v52, %s11716_s0 }
 0x590   :  { %553 = vrot.lane.b32.xlu1 %v9772_v47, %s11710_s29 }
 0x594   :  { %720 = vrot.lane.b32.xlu1 %v9772_v47, %s11712_s21 }
 0x598   :  { %718 = vrot.lane.b32.xlu1 %v9772_v47, %s11708_s22 }
 0x608   :  { %v467_v26 = vpop.xlane.xlu1 %466 }
 0x609   :  { %v468_v27 = vsub.f32 %v462_v23, %v467_v26 }
 0x60b   :  { %v469_v28 = vmul.f32 1.442695, %v468_v27 }
 0x60c   :  { %v478_v29 = vpop.permute.xlu1 %477 }
 0x60d   :  { %9371 = vpow2.f32 %v469_v28  ;;  %8616 = vmatpush3.msra.mxu1 %v478_v29 }
 0x60e   :  { %8620 = vmatprep.subr.mxu1 %v9583_v20 }
 0x610   :  { %v554_v35 = vpop.permute.xlu1 %553 }
 0x614   :  { %v721_v36 = vpop.permute.xlu1 %720 }
 0x617   :  { %v9372_v30 = vpop.eup %9371 }
 0x618   :  { %v471_v31 = vsel %vm302_vm3, %v9372_v30, 0.0  ;;  %v719_v37 = vpop.permute.xlu1 %718 }
 0x619   :  { %472 = vadd.xlane.f32.xlu1 %v471_v31 }
 0x645   :  { %v215_v32 = vpop.f32.mrb[2].mxu0 }
 0x646   :  { %v216_v33 = vadd.f32 %v215_v32, %v9769_v45  ;;  %v9846_v34 = vpop.f32.mrb[3].mxu0 }
 0x648   :  { %1233 = vrot.lane.b32.xlu0 %v216_v33, %s11714_s20  ;;  %905 = vrot.lane.b32.xlu1 %v216_v33, %s9586_s26 }
 0x64c   :  { %1398 = vrot.lane.b32.xlu0 %v216_v33, %s11712_s21  ;;  %1067 = vrot.lane.b32.xlu1 %v216_v33, %s11706_s25 }
 0x650   :  { %1065 = vrot.lane.b32.xlu1 %v216_v33, %s11716_s0 }
 0x654   :  { %1231 = vrot.lane.b32.xlu1 %v216_v33, %s11710_s29 }
 0x658   :  { %1396 = vrot.lane.b32.xlu1 %v216_v33, %s11708_s22 }
 0x6a6   :  { %v473_v38 = vpop.xlane.xlu1 %472 }
 0x6a7   :  { %9373 = vrcp.f32 %v473_v38 }
 0x6b1   :  { %v9374_v39 = vpop.eup %9373 }
 0x6b2   :  { %v475_v41 = vmul.f32 %v9374_v39, %v9372_v30 }
 0x6b4   :  { %8618 = vmatmul.mubr.msk.f32.vlgmr.msra.gmra.mrb[6].mxu1 %vm302_vm3, %v475_v41 }
 0x6b5   :  { %8621 = vmatpush3.xpose.msk.msra.mxu1 %vm227_vm2, %v556_v42  ;;  %8622 = vmatprep.mubr.msk.f32.mxu1 %vm9584_vm1, %v9583_v20 }
 0x6b6   :  { %8630 = vmatprep.subr.mxu1 %v9583_v20 }
 0x6b8   :  { %8623 = vmatmul.mubr.msk.f32.vlgmr.msra.gmra.mrb[8].mxu1 %vm227_vm2, %v554_v35 }
 0x6b9   :  { %8631 = vmatpush3.xpose.msk.msra.mxu1 %vm227_vm2, %v721_v36  ;;  %8632 = vmatprep.mubr.msk.f32.mxu1 %vm9584_vm1, %v9583_v20 }
 0x6ba   :  { %v906_v44 = vpop.permute.xlu1 %905  ;;  %8640 = vmatprep.subr.mxu1 %v9583_v20  ;;  %v1234_v46 = vpop.permute.xlu0 %1233 }
 0x6bc   :  { %8633 = vmatmul.mubr.msk.f32.vlgmr.msra.gmra.mrb[10].mxu1 %vm227_vm2, %v719_v37 }
 0x6bd   :  { %8641 = vmatpush3.xpose.msk.msra.mxu1 %vm227_vm2, %v906_v44  ;;  %8642 = vmatprep.mubr.msk.f32.mxu1 %vm9584_vm1, %v9583_v20 }
 0x6be   :  { %v1068_v45 = vpop.permute.xlu1 %1067  ;;  %8650 = vmatprep.subr.mxu1 %v9583_v20  ;;  %v1399_v51 = vpop.permute.xlu0 %1398 }
 0x6c0   :  { %8643 = vmatmul.mubr.msk.f32.vlgmr.msra.gmra.mrb[12].mxu1 %vm227_vm2, %v216_v33  ;;  %v218_v33 = vadd.f32 %v9846_v34, %v9781_v50 }
 0x6c1   :  { %8651 = vmatpush3.xpose.msk.msra.mxu1 %vm227_vm2, %v1068_v45  ;;  %8652 = vmatprep.mubr.msk.f32.mxu1 %vm9584_vm1, %v9583_v20 }
 0x6c2   :  { %v1066_v47 = vpop.permute.xlu1 %1065  ;;  %8660 = vmatprep.subr.mxu1 %v9583_v20 }
 0x6c4   :  { %8653 = vmatmul.mubr.msk.f32.vlgmr.msra.gmra.mrb[14].mxu1 %vm227_vm2, %v1066_v47 }
 0x6c5   :  { %8661 = vmatpush3.xpose.msk.msra.mxu1 %vm227_vm2, %v1234_v46  ;;  %8662 = vmatprep.mubr.msk.f32.mxu1 %vm9584_vm1, %v9583_v20 }
 0x6c6   :  { %v1232_v48 = vpop.permute.xlu1 %1231  ;;  %8670 = vmatprep.subr.mxu1 %v9583_v20 }
 0x6c8   :  { %8663 = vmatmul.mubr.msk.f32.vlgmr.msra.gmra.mrb[16].mxu1 %vm227_vm2, %v1232_v48 }
 0x6c9   :  { %8671 = vmatpush3.xpose.msk.msra.mxu1 %vm227_vm2, %v1399_v51  ;;  %8672 = vmatprep.mubr.msk.f32.mxu1 %vm9584_vm1, %v9583_v20 }
 0x6ca   :  { %v1397_v55 = vpop.permute.xlu1 %1396 }
 0x6cc   :  { %8673 = vmatmul.mubr.msk.f32.vlgmr.msra.gmra.mrb[18].mxu1 %vm227_vm2, %v1397_v55 }
 0x787   :  { %v9885_v56 = vpop.f32.mrb[6].mxu1 }
 0x788   :  { %v8619_v57 = vpop.f32.mrb[7].mxu1 }
 0x78b   :  { %v627_v58 = vpop.f32.mrb[8].mxu1 }
 0x78c   :  { %v628_v59 = vadd.f32 %v627_v58, %v9801_v54  ;;  %v8624_v60 = vpop.f32.mrb[9].mxu1 }
 0x78e   :  { %v631_v61 = vsel %vm302_vm3, %v628_v59, -inf }
 0x78f   :  { %632 = vmax.xlane.f32.xlu0 %v631_v61  ;;  %v792_v62 = vpop.f32.mrb[10].mxu1 }
 0x790   :  { %v793_v0 = vadd.f32 %v792_v62, %v9801_v54  ;;  %v8634_v1 = vpop.f32.mrb[11].mxu1 }
 0x792   :  { %v796_v2 = vsel %vm302_vm3, %v793_v0, -inf }
 0x793   :  { %797 = vmax.xlane.f32.xlu1 %v796_v2  ;;  %v977_v3 = vpop.f32.mrb[12].mxu1 }
 0x794   :  { %v978_v4 = vadd.f32 %v977_v3, %v9891_v63  ;;  %v8644_v5 = vpop.f32.mrb[13].mxu1 }
 0x796   :  { %v981_v6 = vsel %vm302_vm3, %v978_v4, -inf }
 0x797   :  { %982 = vmax.xlane.f32.xlu0 %v981_v6  ;;  %v1139_v7 = vpop.f32.mrb[14].mxu1 }
 0x798   :  { %v1140_v8 = vadd.f32 %v1139_v7, %v9891_v63  ;;  %v8654_v9 = vpop.f32.mrb[15].mxu1 }
 0x79a   :  { %v1143_v53 = vsel %vm302_vm3, %v1140_v8, -inf }
 0x79b   :  { %1144 = vmax.xlane.f32.xlu0 %v1143_v53  ;;  %v1305_v10 = vpop.f32.mrb[16].mxu1 }
 0x79c   :  { %v1306_v11 = vadd.f32 %v1305_v10, %v9891_v63  ;;  %v8664_v12 = vpop.f32.mrb[17].mxu1 }
 0x79e   :  { %v1309_v13 = vsel %vm302_vm3, %v1306_v11, -inf }
 0x79f   :  { %1310 = vmax.xlane.f32.xlu1 %v1309_v13  ;;  %v1470_v14 = vpop.f32.mrb[18].mxu1 }
 0x7a0   :  { %v1471_v15 = vadd.f32 %v1470_v14, %v9891_v63  ;;  %v8674_v16 = vpop.f32.mrb[19].mxu1 }
 0x7a1   :  { %v1576_v16 = vld [vmem:[%s11692_s6] sm:$0xff] }
 0x7a2   :  { %v1474_v17 = vsel %vm302_vm3, %v1471_v15, -inf }
 0x7a3   :  { %1475 = vmax.xlane.f32.xlu0 %v1474_v17  ;;  %v1577_v17 = vld [vmem:[%s11692_s6 + $0x8] sm:$0xff] }
 0x7b0   :  { %642 = vrot.lane.b32.xlu1 %v9786_v52, %s11710_s29 }
 0x81c   :  { %v633_v21 = vpop.xlane.xlu0 %632 }
 0x81d   :  { %v634_v22 = vsub.f32 %v628_v59, %v633_v21  ;;  %v1578_v21 = vld [vmem:[%s11692_s6 + $0x10] sm:$0xff] }
 0x81f   :  { %v635_v23 = vmul.f32 1.442695, %v634_v22  ;;  %v9012_v22 = vpack.c.bf16 %v1577_v17, %v1576_v16  ;;  %v1722_v16 = vld [vmem:[%s11696_s10 + $0x20] sm:$0xff]  ;;  %v1724_v17 = vld [vmem:[%s11696_s10 + $0x30] sm:$0xff] }
 0x820   :  { %v798_v24 = vpop.xlane.xlu1 %797 }
 0x821   :  { %9375 = vpow2.f32 %v635_v23  ;;  %v799_v25 = vsub.f32 %v793_v0, %v798_v24  ;;  %v1579_v23 = vld [vmem:[%s11692_s6 + $0x18] sm:$0xff]  ;;  %9013 = vmatprep.subr.bf16.mxu1 %v9012_v22 }
 0x822   :  { %v9016_v24 = vpack.c.bf16 %v1579_v23, %v1578_v21  ;;  %9015 = vmatpush3.bf16.msra.mxu1 %v9012_v22  ;;  %v9034_v21 = vpack.c.bf16 %v1724_v17, %v1722_v16  ;;  %v1727_v22 = vld [vmem:[%s11696_s10 + $0x48] sm:$0xff]  ;;  %v1729_v23 = vld [vmem:[%s11696_s10 + $0x58] sm:$0xff]  ;;  %v1875_v16 = vld [vmem:[%s11698_s12 + $0xd0] sm:$0xff] }
 0x823   :  { %v800_v26 = vmul.f32 1.442695, %v799_v25  ;;  %v1876_v17 = vld [vmem:[%s11698_s12 + $0xd8] sm:$0xff] }
 0x824   :  { %v983_v35 = vpop.xlane.xlu0 %982  ;;  %9017 = vmatprep.subr.bf16.mxu1 %v9016_v24 }
 0x825   :  { %9377 = vpow2.f32 %v800_v26  ;;  %v984_v36 = vsub.f32 %v978_v4, %v983_v35 }
 0x826   :  { %9019 = vmatpush3.bf16.msra.mxu1 %v9016_v24  ;;  %v9036_v24 = vpack.c.bf16 %v1729_v23, %v1727_v22  ;;  %v1859_v22 = vld [vmem:[%s11698_s12 + $0x50] sm:$0xff]  ;;  %v1860_v23 = vld [vmem:[%s11698_s12 + $0x58] sm:$0xff] }
 0x827   :  { %v985_v39 = vmul.f32 1.442695, %v984_v36 }
 0x828   :  { %v1145_v37 = vpop.xlane.xlu0 %1144 }
 0x829   :  { %v1146_v38 = vsub.f32 %v1140_v8, %v1145_v37  ;;  %9379 = vpow2.f32 %v985_v39 }
 0x82b   :  { %v9376_v27 = vpop.eup %9375  ;;  %v1147_v44 = vmul.f32 1.442695, %v1146_v38 }
 0x82c   :  { %v1311_v28 = vpop.xlane.xlu1 %1310  ;;  %v637_v29 = vsel %vm302_vm3, %v9376_v27, 0.0 }
 0x82d   :  { %638 = vadd.xlane.f32.xlu1 %v637_v29  ;;  %v1312_v41 = vsub.f32 %v1306_v11, %v1311_v28  ;;  %9381 = vpow2.f32 %v1147_v44  ;;  %v1580_v29 = vld [vmem:[%s11692_s6 + $0x20] sm:$0xff] }
 0x82f   :  { %v9378_v30 = vpop.eup %9377  ;;  %v1313_v45 = vmul.f32 1.442695, %v1312_v41 }
 0x830   :  { %v643_v31 = vpop.permute.xlu1 %642  ;;  %v802_v32 = vsel %vm302_vm3, %v9378_v30, 0.0  ;;  %v1476_v42 = vpop.xlane.xlu0 %1475 }
 0x831   :  { %8626 = vmatpush3.msra.mxu0 %v643_v31  ;;  %803 = vadd.xlane.f32.xlu0 %v802_v32  ;;  %v1477_v46 = vsub.f32 %v1471_v15, %v1476_v42  ;;  %9383 = vpow2.f32 %v1313_v45  ;;  %v1582_v32 = vld [vmem:[%s11692_s6 + $0x30] sm:$0xff] }
 0x832   :  { %8635 = vmatprep.subr.mxu0 %v9583_v20 }
 0x833   :  { %v1478_v47 = vmul.f32 1.442695, %v1477_v46  ;;  %v9380_v50 = vpop.eup %9379 }
 0x834   :  { %v987_v48 = vsel %vm302_vm3, %v9380_v50, 0.0 }
 0x835   :  { %9385 = vpow2.f32 %v1478_v47 }
 0x837   :  { %v9382_v34 = vpop.eup %9381 }
 0x838   :  { %v1149_v55 = vsel %vm302_vm3, %v9382_v34, 0.0 }
 0x83b   :  { %v9384_v51 = vpop.eup %9383 }
 0x83e   :  { %1155 = vrot.lane.b32.xlu1 %v218_v33, %s11716_s0 }
 0x83f   :  { %v9386_v57 = vpop.eup %9385 }
 0x840   :  { %v1480_v58 = vsel %vm302_vm3, %v9386_v57, 0.0 }
 0x847   :  { %807 = vrot.lane.b32.xlu0 %v9786_v52, %s11708_s22  ;;  %v1315_v52 = vsel %vm302_vm3, %v9384_v51, 0.0 }
 0x862   :  { %988 = vadd.xlane.f32.xlu1 %v987_v48 }
 0x866   :  { %1316 = vadd.xlane.f32.xlu1 %v1315_v52  ;;  %1150 = vadd.xlane.f32.xlu0 %v1149_v55 }
 0x86a   :  { %1481 = vadd.xlane.f32.xlu0 %v1480_v58 }
 0x877   :  { %1320 = vrot.lane.b32.xlu1 %v218_v33, %s11710_s29 }
 0x87b   :  { %884 = vrot.lane.b32.xlu1 %v9885_v56, %s11712_s21 }
 0x880   :  { %1485 = vrot.lane.b32.xlu0 %v218_v33, %s11708_s22 }
 0x8ba   :  { %v639_v59 = vpop.xlane.xlu1 %638 }
 0x8bb   :  { %9387 = vrcp.f32 %v639_v59 }
 0x8be   :  { %v804_v60 = vpop.xlane.xlu0 %803  ;;  %v1156_v56 = vpop.permute.xlu1 %1155 }
 0x8bf   :  { %9389 = vrcp.f32 %v804_v60 }
 0x8c2   :  { %v808_v0 = vpop.permute.xlu0 %807 }
 0x8c5   :  { %v9388_v61 = vpop.eup %9387 }
 0x8c6   :  { %v641_v62 = vmul.f32 %v9388_v61, %v9376_v27 }
 0x8c8   :  { %8628 = vmatmul.mubr.msk.f32.vlgmr.msra.gmra.mrb[4].mxu0 %vm302_vm3, %v641_v62 }
 0x8c9   :  { %v9390_v1 = vpop.eup %9389  ;;  %8636 = vmatpush3.msra.mxu0 %v808_v0  ;;  %8637 = vmatprep.mubr.msk.f32.mxu0 %vm9584_vm1, %v9583_v20 }
 0x8ca   :  { %8645 = vmatprep.subr.mxu0 %v9583_v20  ;;  %v806_v2 = vmul.f32 %v9390_v1, %v9378_v30  ;;  %v1581_v30 = vld [vmem:[%s11692_s6 + $0x28] sm:$0xff] }
 0x8cb   :  { %v9020_v31 = vpack.c.bf16 %v1581_v30, %v1580_v29  ;;  %v1733_v29 = vld [vmem:[%s11696_s10 + $0x78] sm:$0xff]  ;;  %v1730_v30 = vld [vmem:[%s11696_s10 + $0x60] sm:$0xff] }
 0x8cc   :  { %8638 = vmatmul.mubr.msk.f32.vlgmr.msra.gmra.mrb[6].mxu0 %vm302_vm3, %v806_v2 }
 0x8cd   :  { %8646 = vmatpush3.msra.mxu0 %v218_v33  ;;  %8647 = vmatprep.mubr.msk.f32.mxu0 %vm9584_vm1, %v9583_v20  ;;  %v1583_v33 = vld [vmem:[%s11692_s6 + $0x38] sm:$0xff] }
 0x8ce   :  { %8655 = vmatprep.subr.mxu0 %v9583_v20  ;;  %9021 = vmatprep.subr.bf16.mxu1 %v9020_v31  ;;  %v9024_v35 = vpack.c.bf16 %v1583_v33, %v1582_v32  ;;  %v1732_v32 = vld [vmem:[%s11696_s10 + $0x70] sm:$0xff] }
 0x8cf   :  { %9023 = vmatpush3.bf16.msra.mxu1 %v9020_v31  ;;  %v9042_v33 = vpack.c.bf16 %v1732_v32, %v1730_v30  ;;  %v1880_v32 = vld [vmem:[%s11698_s12 + $0xf8] sm:$0xff] }
 0x8d0   :  { %9025 = vmatprep.subr.bf16.mxu1 %v9024_v35 }
 0x8d3   :  { %9027 = vmatpush3.bf16.msra.mxu1 %v9024_v35 }
 0x8ef   :  { %v989_v3 = vpop.xlane.xlu1 %988 }
 0x8f0   :  { %9391 = vrcp.f32 %v989_v3 }
 0x8f3   :  { %v1151_v4 = vpop.xlane.xlu0 %1150  ;;  %v1317_v5 = vpop.xlane.xlu1 %1316 }
 0x8f4   :  { %9393 = vrcp.f32 %v1151_v4 }
 0x8f5   :  { %9395 = vrcp.f32 %v1317_v5 }
 0x8f7   :  { %v1482_v6 = vpop.xlane.xlu0 %1481  ;;  %v1321_v11 = vpop.permute.xlu1 %1320 }
 0x8f8   :  { %9397 = vrcp.f32 %v1482_v6 }
 0x8fa   :  { %v9392_v7 = vpop.eup %9391 }
 0x8fb   :  { %v991_v8 = vmul.f32 %v9392_v7, %v9380_v50  ;;  %v1486_v14 = vpop.permute.xlu0 %1485  ;;  %v885_v46 = vpop.permute.xlu1 %884 }
 0x8fc   :  { %v895_v50 = vsel %vm227_vm2, %v9829_v19, %v885_v46  ;;  %v7886_v19 = vld [vmem:[%s11693_s7] ss:$0 sm:$0xff] }
 0x8fd   :  { %8648 = vmatmul.mubr.msk.f32.vlgmr.msra.gmra.mrb[8].mxu0 %vm302_vm3, %v991_v8  ;;  %v10044_v46 = vld [vmem:[%s11694_s8] ss:$0 sm:$0xff] }
 0x8fe   :  { %8656 = vmatpush3.msra.mxu0 %v1156_v56  ;;  %8657 = vmatprep.mubr.msk.f32.mxu0 %vm9584_vm1, %v9583_v20  ;;  %v9394_v9 = vpop.eup %9393 }
 0x8ff   :  { %8665 = vmatprep.subr.mxu0 %v9583_v20  ;;  %v1153_v53 = vmul.f32 %v9394_v9, %v9382_v34  ;;  %v9396_v10 = vpop.eup %9395 }
 0x900   :  { %v1319_v12 = vmul.f32 %v9396_v10, %v9384_v51 }
 0x901   :  { %8658 = vmatmul.mubr.msk.f32.vlgmr.msra.gmra.mrb[10].mxu0 %vm302_vm3, %v1153_v53  ;;  %v1719_v53 = vld [vmem:[%s11696_s10 + $0x8] sm:$0xff] }
 0x902   :  { %8666 = vmatpush3.msra.mxu0 %v1321_v11  ;;  %8667 = vmatprep.mubr.msk.f32.mxu0 %vm9584_vm1, %v9583_v20  ;;  %v9398_v13 = vpop.eup %9397  ;;  %v1718_v11 = vld [vmem:[%s11696_s10] sm:$0xff] }
 0x903   :  { %8675 = vmatprep.subr.mxu0 %v9583_v20  ;;  %v1484_v15 = vmul.f32 %v9398_v13, %v9386_v57  ;;  %v1723_v13 = vld [vmem:[%s11696_s10 + $0x28] sm:$0xff] }
 0x905   :  { %8668 = vmatmul.mubr.msk.f32.vlgmr.msra.gmra.mrb[12].mxu0 %vm302_vm3, %v1319_v12 }
 0x906   :  { %8676 = vmatpush3.msra.mxu0 %v1486_v14  ;;  %8677 = vmatprep.mubr.msk.f32.mxu0 %vm9584_vm1, %v9583_v20  ;;  %v1725_v14 = vld [vmem:[%s11696_s10 + $0x38] sm:$0xff] }
 0x909   :  { %8678 = vmatmul.mubr.msk.f32.vlgmr.msra.gmra.mrb[14].mxu0 %vm302_vm3, %v1484_v15  ;;  %v9032_v15 = vpack.c.bf16 %v1725_v14, %v1723_v13  ;;  %v1857_v13 = vld [vmem:[%s11698_s12 + $0x40] sm:$0xff]  ;;  %v1858_v14 = vld [vmem:[%s11698_s12 + $0x48] sm:$0xff] }
 0x90a   :  { %1816 = vmatprep.mubr.f32.mxu0 %v9583_v20 }
 0x99b   :  { %v714_v25 = vpop.f32.mrb[4].mxu0 }
 0x99c   :  { %v8629_v26 = vpop.f32.mrb[5].mxu0  ;;  %888 = vrot.lane.b32.xlu0 %v714_v25, %s11714_s20  ;;  %v1726_v25 = vld [vmem:[%s11696_s10 + $0x40] sm:$0xff] }
 0x99d   :  { %v1728_v26 = vld [vmem:[%s11696_s10 + $0x50] sm:$0xff] }
 0x99f   :  { %v879_v27 = vpop.f32.mrb[6].mxu0 }
 0x9a0   :  { %892 = vrot.lane.b32.xlu0 %v879_v27, %s11706_s25  ;;  %v8639_v28 = vpop.f32.mrb[7].mxu0  ;;  %v9038_v27 = vpack.c.bf16 %v1728_v26, %v1726_v25  ;;  %v1877_v25 = vld [vmem:[%s11698_s12 + $0xe0] sm:$0xff]  ;;  %v1878_v26 = vld [vmem:[%s11698_s12 + $0xe8] sm:$0xff] }
 0x9a1   :  { %v1731_v28 = vld [vmem:[%s11696_s10 + $0x68] sm:$0xff] }
 0x9a2   :  { %v9040_v31 = vpack.c.bf16 %v1733_v29, %v1731_v28  ;;  %v1861_v28 = vld [vmem:[%s11698_s12 + $0x60] sm:$0xff]  ;;  %v1862_v29 = vld [vmem:[%s11698_s12 + $0x68] sm:$0xff] }
 0x9a3   :  { %v9070_v30 = vpack.c.bf16 %v1862_v29, %v1861_v28 }
 0x9d0   :  { %v1061_v36 = vpop.f32.mrb[8].mxu0 }
 0x9d1   :  { %v8649_v37 = vpop.f32.mrb[9].mxu0 }
 0x9d4   :  { %v1227_v38 = vpop.f32.mrb[10].mxu0 }
 0x9d5   :  { %1562 = vrot.lane.b32.xlu1 %v1227_v38, %s11712_s21  ;;  %v8659_v39 = vpop.f32.mrb[11].mxu0 }
 0x9d8   :  { %v1392_v41 = vpop.f32.mrb[12].mxu0 }
 0x9d9   :  { %1566 = vrot.lane.b32.xlu1 %v1392_v41, %s11714_s20  ;;  %v8669_v42 = vpop.f32.mrb[13].mxu0 }
 0x9dc   :  { %v1557_v44 = vpop.f32.mrb[14].mxu0 }
 0x9dd   :  { %1570 = vrot.lane.b32.xlu0 %v1557_v44, %s11706_s25  ;;  %v8679_v45 = vpop.f32.mrb[15].mxu0  ;;  %s11727_s25 = smov 96  }
 0xa0e   :  { %v889_v47 = vpop.permute.xlu0 %888 }
 0xa0f   :  { %v897_v34 = vsel %vm896_vm4, %v895_v50, %v889_v47  ;;  %v10049_v50 = vld [vmem:[%s11695_s9] ss:$0 sm:$0xff] }
 0xa12   :  { %v893_v48 = vpop.permute.xlu0 %892 }
 0xa13   :  { %v899_v51 = vsel %vm898_vm5, %v897_v34, %v893_v48 }
 0xa14   :  { %8696 = vmatprep.mubr.msk.f32.mxu1 %vm65_vm0, %v899_v51  ;;  %v1865_v51 = vld [vmem:[%s11698_s12 + $0x80] sm:$0xff] }
 0xa47   :  { %v1563_v52 = vpop.permute.xlu1 %1562 }
 0xa48   :  { %v1573_v57 = vsel %vm227_vm2, %v1061_v36, %v1563_v52  ;;  %v1866_v52 = vld [vmem:[%s11698_s12 + $0x88] sm:$0xff] }
 0xa4b   :  { %v1567_v55 = vpop.permute.xlu1 %1566 }
 0xa4c   :  { %v1574_v58 = vsel %vm896_vm4, %v1573_v57, %v1567_v55  ;;  %v1849_v55 = vld [vmem:[%s11698_s12] sm:$0xff]  ;;  %v9044_v57 = vpack.c.bf16 %v1866_v52, %v1865_v51 }
 0xa4d   :  { %v1734_v51 = vld [vmem:[%s11697_s11] sm:$0x3] }
 0xa4e   :  { %9045 = vmatprep.subr.bf16.mxu1 %v9044_v57  ;;  %v1739_v52 = vrot.slane %v1734_v51, %v9763_v43 }
 0xa4f   :  { %v1571_v59 = vpop.permute.xlu0 %1570 }
 0xa50   :  { %v1575_v60 = vsel %vm898_vm5, %v1574_v58, %v1571_v59  ;;  %v1850_v58 = vld [vmem:[%s11698_s12 + $0x8] sm:$0xff]  ;;  %v1867_v59 = vld [vmem:[%s11698_s12 + $0x90] sm:$0xff] }
 0xa51   :  { %8697 = vmatmul.mubr.msk.f32.vlgmr.msra.gmra.mrb[20].mxu1 %vm65_vm0, %v1575_v60  ;;  %v1868_v60 = vld [vmem:[%s11698_s12 + $0x98] sm:$0xff] }
 0xb24   :  { %v8698_v61 = vpop.f32.mrb[20].mxu1 }
 0xb25   :  { %v1669_v62 = vadd.f32 %v8698_v61, %v7886_v19  ;;  %v1663_v0 = vpop.f32.mrb[21].mxu1  ;;  %v9048_v61 = vpack.c.bf16 %v1868_v60, %v1867_v59 }
 0xb26   :  { %v1664_v1 = vadd.f32 %v7886_v19, %v1663_v0  ;;  %v9046_v19 = vpack.c.bf16 %v1850_v58, %v1849_v55  ;;  %v1852_v0 = vld [vmem:[%s11698_s12 + $0x18] sm:$0xff]  ;;  %v1743_v55 = vrot.slane %v1734_v51, %v9778_v49  ;;  %v7902_v51 = vld [vmem:[%s11690_s4 + $0xb0] sm:$0xff] }
 0xb27   :  { %v1673_v8 = vadd.f32 %v1669_v62, %v9825_v18  ;;  %v1720_v18 = vld [vmem:[%s11696_s10 + $0x10] sm:$0xff] }
 0xb28   :  { %v1672_v2 = vadd.f32 %v1664_v1, %v9756_v40  ;;  %v1721_v40 = vld [vmem:[%s11696_s10 + $0x18] sm:$0xff]  ;;  %v9030_v12 = vpack.c.bf16 %v1720_v18, %v1718_v11  ;;  %v1851_v62 = vld [vmem:[%s11698_s12 + $0x10] sm:$0xff]  ;;  %v1869_v1 = vld [vmem:[%s11698_s12 + $0xa0] sm:$0xff]  ;;  %9047 = vmatpush3.bf16.msra.mxu1 %v9046_v19 }
 0xb29   :  { %v1679_v9 = vsel %vm65_vm0, %v1673_v8, 0.0  ;;  %v9028_v10 = vpack.c.bf16 %v1721_v40, %v1719_v53  ;;  %9049 = vmatprep.subr.bf16.mxu1 %v9048_v61  ;;  %v1855_v53 = vld [vmem:[%s11698_s12 + $0x30] sm:$0xff]  ;;  %v1856_v40 = vld [vmem:[%s11698_s12 + $0x38] sm:$0xff]  ;;  %v1873_v11 = vld [vmem:[%s11698_s12 + $0xc0] sm:$0xff] }
 0xb2a   :  { %v1676_v56 = vsel %vm65_vm0, %v1672_v2, 0.0  ;;  %v1874_v18 = vld [vmem:[%s11698_s12 + $0xc8] sm:$0xff] }
 0xb2b   :  { %1677 = vadd.xlane.f32.xlu1 %v1676_v56  ;;  %9029 = vmatprep.subr.bf16.mxu0 %v9028_v10  ;;  %v9050_v56 = vpack.c.bf16 %v1852_v0, %v1851_v62  ;;  %v9058_v10 = vpack.c.bf16 %v1856_v40, %v1855_v53 }
 0xb2c   :  { %9031 = vmatpush1.bf16.msra.mxu0 %v9030_v12  ;;  %v9060_v12 = vpack.c.bf16 %v1874_v18, %v1873_v11 }
 0xb2d   :  { %9033 = vmatprep.subr.bf16.mxu0 %v9032_v15  ;;  %9051 = vmatpush3.bf16.msra.mxu1 %v9050_v56  ;;  %v9062_v15 = vpack.c.bf16 %v1858_v14, %v1857_v13 }
 0xb30   :  { %9035 = vmatpush1.bf16.msra.mxu0 %v9034_v21  ;;  %v9064_v21 = vpack.c.bf16 %v1876_v17, %v1875_v16 }
 0xb31   :  { %9037 = vmatprep.subr.bf16.mxu0 %v9036_v24  ;;  %v9066_v24 = vpack.c.bf16 %v1860_v23, %v1859_v22 }
 0xb34   :  { %9039 = vmatpush1.bf16.msra.mxu0 %v9038_v27  ;;  %v9068_v27 = vpack.c.bf16 %v1878_v26, %v1877_v25 }
 0xb35   :  { %9041 = vmatprep.subr.bf16.mxu0 %v9040_v31  ;;  %v1879_v31 = vld [vmem:[%s11698_s12 + $0xf0] sm:$0xff] }
 0xb38   :  { %9043 = vmatpush1.bf16.msra.mxu0 %v9042_v33  ;;  %v9072_v33 = vpack.c.bf16 %v1880_v32, %v1879_v31 }
 0xbb8   :  { %v1678_v3 = vpop.xlane.xlu1 %1677 }
 0xbb9   :  { %v1682_v4 = vmul.f32 0.015625, %v1678_v3 }
 0xbbb   :  { %v1684_v5 = vsub.f32 %v1672_v2, %v1682_v4  ;;  %v1870_v2 = vld [vmem:[%s11698_s12 + $0xa8] sm:$0xff]  ;;  %v1853_v4 = vld [vmem:[%s11698_s12 + $0x20] sm:$0xff] }
 0xbbc   :  { %v9052_v3 = vpack.c.bf16 %v1870_v2, %v1869_v1 }
 0xbbd   :  { %v1686_v6 = vmul.f32 %v1684_v5, %v1684_v5 }
 0xbbe   :  { %9053 = vmatprep.subr.bf16.mxu1 %v9052_v3 }
 0xbbf   :  { %v1688_v7 = vsel %vm65_vm0, %v1686_v6, 0.0 }
 0xbc0   :  { %1689 = vadd.xlane.f32.xlu0 %v1688_v7  ;;  %v1871_v7 = vld [vmem:[%s11698_s12 + $0xb0] sm:$0xff] }
 0xbc4   :  { %1680 = vadd.xlane.f32.xlu0 %v1679_v9 }
 0xc4d   :  { %v1690_v35 = vpop.xlane.xlu0 %1689 }
 0xc4e   :  { %v1694_v36 = vmul.f32 0.015625, %v1690_v35  ;;  %v1863_v35 = vld [vmem:[%s11698_s12 + $0x70] sm:$0xff] }
 0xc50   :  { %v1696_v37 = vadd.f32 1e-05, %v1694_v36  ;;  %v1864_v36 = vld [vmem:[%s11698_s12 + $0x78] sm:$0xff] }
 0xc51   :  { %v1681_v38 = vpop.xlane.xlu0 %1680 }
 0xc52   :  { %9399 = vrsqrt.f32 %v1696_v37  ;;  %v1683_v39 = vmul.f32 0.015625, %v1681_v38  ;;  %v9074_v37 = vpack.c.bf16 %v1864_v36, %v1863_v35  ;;  %v7899_v36 = vld [vmem:[%s11690_s4 + $0x98] sm:$0xff] }
 0xc54   :  { %v10036_v41 = vsub.f32 %v1673_v8, %v1683_v39  ;;  %v1872_v8 = vld [vmem:[%s11698_s12 + $0xb8] sm:$0xff] }
 0xc55   :  { %v9056_v9 = vpack.c.bf16 %v1872_v8, %v1871_v7 }
 0xc56   :  { %v1687_v42 = vmul.f32 %v10036_v41, %v10036_v41 }
 0xc58   :  { %v1691_v44 = vsel %vm65_vm0, %v1687_v42, 0.0 }
 0xc59   :  { %1692 = vadd.xlane.f32.xlu1 %v1691_v44 }
 0xc5c   :  { %v9400_v45 = vpop.eup %9399 }
 0xc5d   :  { %v1700_v47 = vmul.f32 %v9400_v45, %v1684_v5  ;;  %v1854_v5 = vld [vmem:[%s11698_s12 + $0x28] sm:$0xff] }
 0xc5e   :  { %v9054_v6 = vpack.c.bf16 %v1854_v5, %v1853_v4 }
 0xc5f   :  { %v1708_v34 = vmul.f32 %v10044_v46, %v1700_v47 }
 0xc60   :  { %9055 = vmatpush3.bf16.msra.mxu1 %v9054_v6 }
 0xc61   :  { %v10053_v48 = vadd.f32 %v10049_v50, %v1708_v34  ;;  %9057 = vmatprep.subr.bf16.mxu1 %v9056_v9 }
 0xc63   :  { %7891 = vmatmul.mubr.msk.f32.vlgmr.msra.gmra.mrb[16].mxu0 %vm65_vm0, %v10053_v48 }
 0xc64   :  { %1822 = vmatprep.mubr.f32.mxu0 %v9583_v20  ;;  %9059 = vmatpush3.bf16.msra.mxu1 %v9058_v10 }
 0xc65   :  { %9061 = vmatprep.subr.bf16.mxu1 %v9060_v12 }
 0xc68   :  { %9063 = vmatpush3.bf16.msra.mxu1 %v9062_v15  ;;  %v7893_v15 = vld [vmem:[%s11699_s13] ss:$0 sm:$0xff] }
 0xc69   :  { %9065 = vmatprep.subr.bf16.mxu1 %v9064_v21 }
 0xc6c   :  { %9067 = vmatpush3.bf16.msra.mxu1 %v9066_v24 }
 0xc6d   :  { %9069 = vmatprep.subr.bf16.mxu1 %v9068_v27 }
 0xc70   :  { %9071 = vmatpush3.bf16.msra.mxu1 %v9070_v30 }
 0xc71   :  { %9073 = vmatprep.subr.bf16.mxu1 %v9072_v33 }
 0xc74   :  { %9075 = vmatpush3.bf16.msra.mxu1 %v9074_v37 }
 0xc75   :  { %8719 = vmatprep.subr.mxu1 %v9583_v20 }
 0xce6   :  { %v1693_v38 = vpop.xlane.xlu1 %1692 }
 0xce7   :  { %v1695_v39 = vmul.f32 0.015625, %v1693_v38  ;;  %v7896_v38 = vld [vmem:[%s11690_s4 + $0x80] sm:$0xff] }
 0xce9   :  { %v1697_v42 = vadd.f32 1e-05, %v1695_v39  ;;  %v7898_v39 = vld [vmem:[%s11690_s4 + $0x90] sm:$0xff] }
 0xceb   :  { %9401 = vrsqrt.f32 %v1697_v42  ;;  %v9078_v42 = vpack.c.bf16 %v7898_v39, %v7896_v38 }
 0xcf5   :  { %v9402_v44 = vpop.eup %9401 }
 0xcf6   :  { %v1701_v45 = vmul.f32 %v9402_v44, %v10036_v41  ;;  %v7901_v44 = vld [vmem:[%s11690_s4 + $0xa8] sm:$0xff] }
 0xcf8   :  { %v1709_v47 = vmul.f32 %v10044_v46, %v1701_v45  ;;  %v7903_v45 = vld [vmem:[%s11690_s4 + $0xb8] sm:$0xff] }
 0xcfa   :  { %v1717_v34 = vadd.f32 %v10049_v50, %v1709_v47  ;;  %v9080_v47 = vpack.c.bf16 %v7903_v45, %v7901_v44 }
 0xcfc   :  { %7892 = vmatmul.mubr.msk.f32.gmra.mrb[18].mxu0 %vm65_vm0, %v1717_v34 }
 0xcfd   :  { %2113 = vmatprep.mubr.f32.mxu0 %v9583_v20 }
 0xd36   :  { %v1818_v57 = vpop.f32.mrb[16].mxu0 }
 0xd37   :  { %v1819_v58 = vadd.f32 %v1818_v57, %v1739_v52  ;;  %v1820_v59 = vpop.f32.mrb[17].mxu0  ;;  %v7907_v57 = vld [vmem:[%s11690_s4 + $0xd8] sm:$0xff] }
 0xd38   :  { %v1821_v41 = vadd.f32 %v1820_v59, %v1743_v55  ;;  %v7904_v59 = vld [vmem:[%s11690_s4 + $0xc0] sm:$0xff] }
 0xd39   :  { %v1833_v60 = vmul.f32 0.70710677, %v1819_v58  ;;  %v1829_v1 = vmul.f32 0.5, %v1819_v58 }
 0xd3a   :  { %v1834_v46 = vmul.f32 0.70710677, %v1821_v41  ;;  %v1830_v62 = vmul.f32 0.5, %v1821_v41  ;;  %v7906_v41 = vld [vmem:[%s11690_s4 + $0xd0] sm:$0xff] }
 0xd3b   :  { %9403 = verf.f32 %v1833_v60  ;;  %v9086_v60 = vpack.c.bf16 %v7906_v41, %v7904_v59 }
 0xd3c   :  { %9405 = verf.f32 %v1834_v46  ;;  %v7909_v46 = vld [vmem:[%s11690_s4 + $0xe8] sm:$0xff] }
 0xd45   :  { %v9404_v50 = vpop.eup %9403 }
 0xd46   :  { %v9406_v19 = vpop.eup %9405  ;;  %v1841_v61 = vadd.f32 1.0, %v9404_v50  ;;  %v7911_v50 = vld [vmem:[%s11690_s4 + $0xf8] sm:$0xff] }
 0xd47   :  { %v1842_v0 = vadd.f32 1.0, %v9406_v19  ;;  %v9088_v19 = vpack.c.bf16 %v7911_v50, %v7909_v46 }
 0xd48   :  { %v1845_v56 = vmul.f32 %v1841_v61, %v1829_v1  ;;  %v7908_v61 = vld [vmem:[%s11690_s4 + $0xe0] sm:$0xff] }
 0xd49   :  { %v1846_v2 = vmul.f32 %v1842_v0, %v1830_v62  ;;  %v7910_v62 = vld [vmem:[%s11690_s4 + $0xf0] sm:$0xff] }
 0xd4a   :  { %v9090_v0 = vpack.c.bf16 %v7910_v62, %v7908_v61 }
 0xd4b   :  { %1952 = vmatprep.mubr.f32.mxu1 %v1846_v2 }
 0xd4c   :  { %1953 = vmatmul.mubr.f32.vlgmr.msra.gmra.mrb[22].mxu1 %v1845_v56 }
 0xdcf   :  { %v1824_v3 = vpop.f32.mrb[18].mxu0 }
 0xdd0   :  { %v1825_v4 = vadd.f32 %v1824_v3, %v1739_v52  ;;  %v1826_v5 = vpop.f32.mrb[19].mxu0 }
 0xdd1   :  { %v1827_v6 = vadd.f32 %v1826_v5, %v1743_v55  ;;  %v7905_v55 = vld [vmem:[%s11690_s4 + $0xc8] sm:$0xff] }
 0xdd2   :  { %v1835_v7 = vmul.f32 0.70710677, %v1825_v4  ;;  %v1831_v18 = vmul.f32 0.5, %v1825_v4  ;;  %v9084_v58 = vpack.c.bf16 %v7907_v57, %v7905_v55 }
 0xdd3   :  { %v1836_v8 = vmul.f32 0.70710677, %v1827_v6  ;;  %v1832_v10 = vmul.f32 0.5, %v1827_v6 }
 0xdd4   :  { %9407 = verf.f32 %v1835_v7 }
 0xdd5   :  { %9409 = verf.f32 %v1836_v8 }
 0xdde   :  { %v9408_v9 = vpop.eup %9407 }
 0xddf   :  { %v9410_v53 = vpop.eup %9409  ;;  %v1843_v40 = vadd.f32 1.0, %v9408_v9  ;;  %v7894_v9 = vld [vmem:[%s11700_s14] ss:$0 sm:$0xff] }
 0xde0   :  { %v1844_v11 = vadd.f32 1.0, %v9410_v53 }
 0xde1   :  { %v1847_v13 = vmul.f32 %v1843_v40, %v1831_v18  ;;  %v7895_v40 = vld [vmem:[%s11701_s15] ss:$0 sm:$0xff] }
 0xde2   :  { %v1848_v12 = vmul.f32 %v1844_v11, %v1832_v10 }
 0xde4   :  { %1957 = vmatprep.mubr.f32.mxu1 %v1848_v12 }
 0xde5   :  { %1958 = vmatmul.mubr.f32.gmra.mrb[24].mxu1 %v1847_v13 }
 0xde6   :  { %8721 = vmatprep.mubr.msk.f32.mxu1 %vm9584_vm1, %v9583_v20 }
 0xe1f   :  { %v8319_v14 = vpop.f32.mrb[22].mxu1 }
 0xe20   :  { %v8320_v16 = vpop.f32.mrb[23].mxu1 }
 0xe21   :  { %v8321_v17 = vadd.f32 %v8320_v16, %v8319_v14 }
 0xe23   :  { %v1955_v21 = vadd.f32 %v8321_v17, %v7893_v15 }
 0xe25   :  { %v1963_v22 = vadd.f32 %v1955_v21, %v10053_v48  ;;  %v7897_v48 = vld [vmem:[%s11690_s4 + $0x88] sm:$0xff]  ;;  %v7912_v21 = vld [vmem:[%s11691_s5 + $0x2] sm:$0x3] }
 0xe26   :  { %v9076_v37 = vpack.c.bf16 %v7899_v36, %v7897_v48 }
 0xe27   :  { %v1967_v23 = vsel %vm65_vm0, %v1963_v22, 0.0 }
 0xe28   :  { %1968 = vadd.xlane.f32.xlu0 %v1967_v23  ;;  %9077 = vmatprep.subr.bf16.mxu0 %v9076_v37 }
 0xe29   :  { %9079 = vmatpush1.bf16.msra.mxu0 %v9078_v42 }
 0xe2a   :  { %9081 = vmatprep.subr.bf16.mxu0 %v9080_v47 }
 0xeb5   :  { %v1969_v24 = vpop.xlane.xlu0 %1968 }
 0xeb6   :  { %v1973_v25 = vmul.f32 0.015625, %v1969_v24 }
 0xeb8   :  { %v1975_v26 = vsub.f32 %v1963_v22, %v1973_v25  ;;  %v8322_v27 = vpop.f32.mrb[24].mxu1  ;;  %v2037_v22 = vrot.slane %v7912_v21, %v9763_v43 }
 0xeb9   :  { %v8323_v28 = vpop.f32.mrb[25].mxu1 }
 0xeba   :  { %v8324_v29 = vadd.f32 %v8323_v28, %v8322_v27  ;;  %v1977_v30 = vmul.f32 %v1975_v26, %v1975_v26 }
 0xebc   :  { %v1960_v31 = vadd.f32 %v8324_v29, %v7893_v15  ;;  %v1979_v32 = vsel %vm65_vm0, %v1977_v30, 0.0 }
 0xebd   :  { %1980 = vadd.xlane.f32.xlu1 %v1979_v32 }
 0xebe   :  { %v1964_v33 = vadd.f32 %v1960_v31, %v1717_v34  ;;  %v7900_v34 = vld [vmem:[%s11690_s4 + $0xa0] sm:$0xff] }
 0xebf   :  { %v9082_v52 = vpack.c.bf16 %v7902_v51, %v7900_v34 }
 0xec0   :  { %v1970_v35 = vsel %vm65_vm0, %v1964_v33, 0.0 }
 0xec1   :  { %1971 = vadd.xlane.f32.xlu0 %v1970_v35  ;;  %9083 = vmatpush1.bf16.msra.mxu0 %v9082_v52 }
 0xec2   :  { %9085 = vmatprep.subr.bf16.mxu0 %v9084_v58 }
 0xec5   :  { %9087 = vmatpush1.bf16.msra.mxu0 %v9086_v60 }
 0xec6   :  { %9089 = vmatprep.subr.bf16.mxu0 %v9088_v19 }
 0xec9   :  { %9091 = vmatpush1.bf16.msra.mxu0 %v9090_v0 }
 0xeca   :  { %8699 = vmatprep.subr.mxu0 %v9583_v20 }
 0xf4a   :  { %v1981_v1 = vpop.xlane.xlu1 %1980 }
 0xf4b   :  { %v1985_v2 = vmul.f32 0.015625, %v1981_v1 }
 0xf4d   :  { %v1987_v56 = vadd.f32 1e-05, %v1985_v2 }
 0xf4e   :  { %v1972_v3 = vpop.xlane.xlu0 %1971 }
 0xf4f   :  { %9411 = vrsqrt.f32 %v1987_v56  ;;  %v1974_v4 = vmul.f32 0.015625, %v1972_v3 }
 0xf51   :  { %v1976_v5 = vsub.f32 %v1964_v33, %v1974_v4 }
 0xf53   :  { %v1978_v6 = vmul.f32 %v1976_v5, %v1976_v5 }
 0xf55   :  { %v1982_v7 = vsel %vm65_vm0, %v1978_v6, 0.0 }
 0xf56   :  { %1983 = vadd.xlane.f32.xlu1 %v1982_v7 }
 0xf59   :  { %v9412_v8 = vpop.eup %9411 }
 0xf5a   :  { %v1991_v53 = vmul.f32 %v9412_v8, %v1975_v26  ;;  %v10250_v26 = vrot.slane %v7912_v21, %v9778_v49 }
 0xf5c   :  { %v1999_v10 = vmul.f32 %v7894_v9, %v1991_v53 }
 0xf5e   :  { %v10230_v11 = vadd.f32 %v7895_v40, %v1999_v10 }
 0xf60   :  { %7913 = vmatmul.mubr.msk.f32.vlgmr.msra.gmra.mrb[20].mxu0 %vm65_vm0, %v10230_v11 }
 0xf61   :  { %2119 = vmatprep.mubr.f32.mxu0 %v9583_v20 }
 0xfe3   :  { %v1984_v18 = vpop.xlane.xlu1 %1983 }
 0xfe4   :  { %v1986_v12 = vmul.f32 0.015625, %v1984_v18 }
 0xfe6   :  { %v1988_v13 = vadd.f32 1e-05, %v1986_v12 }
 0xfe8   :  { %9413 = vrsqrt.f32 %v1988_v13 }
 0xff2   :  { %v9414_v14 = vpop.eup %9413 }
 0xff3   :  { %v1992_v15 = vmul.f32 %v9414_v14, %v1976_v5 }
 0xff5   :  { %v2000_v16 = vmul.f32 %v7894_v9, %v1992_v15 }
 0xff7   :  { %v10235_v17 = vadd.f32 %v7895_v40, %v2000_v16 }
 0xff9   :  { %7914 = vmatmul.mubr.msk.f32.gmra.mrb[22].mxu0 %vm65_vm0, %v10235_v17 }
 0xffa   :  { %8701 = vmatprep.mubr.msk.f32.mxu0 %vm9584_vm1, %v9583_v20 }
0x1033   :  { %v2115_v23 = vpop.f32.mrb[20].mxu0 }
0x1034   :  { %v2116_v24 = vadd.f32 %v2115_v23, %v2037_v22  ;;  %v2117_v25 = vpop.f32.mrb[21].mxu0 }
0x1035   :  { %v10255_v28 = vadd.f32 %v2117_v25, %v10250_v26 }
0x1036   :  { %2127 = vrot.lane.b32.xlu0 %v2116_v24, %s9586_s26 }
0x103a   :  { %2287 = vrot.lane.b32.xlu0 %v2116_v24, %s11716_s0 }
0x103e   :  { %2455 = vrot.lane.b32.xlu0 %v2116_v24, %s11714_s20 }
0x1042   :  { %2620 = vrot.lane.b32.xlu0 %v2116_v24, %s11712_s21 }
0x10a8   :  { %v2128_v27 = vpop.permute.xlu0 %2127 }
0x10a9   :  { %8700 = vmatpush3.xpose.msk.msra.mxu0 %vm227_vm2, %v2128_v27 }
0x10aa   :  { %8704 = vmatprep.subr.mxu0 %v9583_v20 }
0x10ac   :  { %8702 = vmatmul.mubr.msk.f32.vlgmr.msra.gmra.mrb[24].mxu0 %vm227_vm2, %v2116_v24  ;;  %v10258_v29 = vpop.permute.xlu0 %2287 }
0x10ad   :  { %8705 = vmatpush3.msra.mxu0 %v10255_v28  ;;  %8706 = vmatprep.mubr.msk.f32.mxu0 %vm9584_vm1, %v9583_v20 }
0x10ae   :  { %8709 = vmatprep.subr.mxu0 %v9583_v20 }
0x10b0   :  { %v2456_v30 = vpop.permute.xlu0 %2455 }
0x10b1   :  { %8720 = vmatpush3.xpose.msk.msra.mxu1 %vm227_vm2, %v2456_v30 }
0x10b2   :  { %8729 = vmatprep.subr.mxu1 %v9583_v20 }
0x10b4   :  { %v2621_v51 = vpop.permute.xlu0 %2620 }
0x10cc   :  { %v2121_v31 = vpop.f32.mrb[22].mxu0 }
0x10cd   :  { %v2122_v32 = vadd.f32 %v2121_v31, %v2037_v22  ;;  %v10266_v33 = vpop.f32.mrb[23].mxu0 }
0x10cf   :  { %2799 = vrot.lane.b32.xlu0 %v2122_v32, %s9586_s26 }
0x10d3   :  { %2959 = vrot.lane.b32.xlu0 %v2122_v32, %s11716_s0 }
0x10d7   :  { %3125 = vrot.lane.b32.xlu0 %v2122_v32, %s11710_s29 }
0x10db   :  { %3290 = vrot.lane.b32.xlu0 %v2122_v32, %s11724_s24 }
0x1141   :  { %v2800_v55 = vpop.permute.xlu0 %2799 }
0x1145   :  { %v2960_v59 = vpop.permute.xlu0 %2959 }
0x1149   :  { %v3126_v50 = vpop.permute.xlu0 %3125 }
0x114d   :  { %v3291_v61 = vpop.permute.xlu0 %3290 }
0x117f   :  { %v2199_v35 = vpop.f32.mrb[24].mxu0 }
0x1180   :  { %v2200_v48 = vadd.f32 %v2199_v35, %v9801_v54  ;;  %v8703_v36 = vpop.f32.mrb[25].mxu0 }
0x1182   :  { %v2203_v37 = vsel %vm302_vm3, %v2200_v48, -inf }
0x1183   :  { %2204 = vmax.xlane.f32.xlu1 %v2203_v37 }
0x1194   :  { %2289 = vrot.lane.b32.xlu1 %v2116_v24, %s11725_s27 }
0x1210   :  { %v2205_v38 = vpop.xlane.xlu1 %2204 }
0x1211   :  { %v2206_v39 = vsub.f32 %v2200_v48, %v2205_v38 }
0x1213   :  { %v2207_v42 = vmul.f32 1.442695, %v2206_v39 }
0x1214   :  { %v2290_v47 = vpop.permute.xlu1 %2289 }
0x1215   :  { %9415 = vpow2.f32 %v2207_v42 }
0x121f   :  { %v9416_v44 = vpop.eup %9415 }
0x1220   :  { %v2209_v45 = vsel %vm302_vm3, %v9416_v44, 0.0 }
0x1221   :  { %2210 = vadd.xlane.f32.xlu1 %v2209_v45 }
0x1232   :  { %2453 = vrot.lane.b32.xlu1 %v2116_v24, %s11710_s29 }
0x1236   :  { %2618 = vrot.lane.b32.xlu1 %v2116_v24, %s11724_s24 }
0x123a   :  { %2961 = vrot.lane.b32.xlu1 %v2122_v32, %s11725_s27 }
0x123e   :  { %3127 = vrot.lane.b32.xlu1 %v2122_v32, %s11714_s20 }
0x1242   :  { %3292 = vrot.lane.b32.xlu1 %v2122_v32, %s11712_s21 }
0x12ae   :  { %v2211_v34 = vpop.xlane.xlu1 %2210 }
0x12af   :  { %9417 = vrcp.f32 %v2211_v34 }
0x12b2   :  { %v2454_v52 = vpop.permute.xlu1 %2453 }
0x12b3   :  { %8722 = vmatmul.mubr.msk.f32.vlgmr.msra.gmra.mrb[26].mxu1 %vm227_vm2, %v2454_v52 }
0x12b4   :  { %8730 = vmatpush3.xpose.msk.msra.mxu1 %vm227_vm2, %v2621_v51  ;;  %8731 = vmatprep.mubr.msk.f32.mxu1 %vm9584_vm1, %v9583_v20 }
0x12b5   :  { %8739 = vmatprep.subr.mxu1 %v9583_v20 }
0x12b6   :  { %v2619_v57 = vpop.permute.xlu1 %2618 }
0x12b7   :  { %8732 = vmatmul.mubr.msk.f32.vlgmr.msra.gmra.mrb[28].mxu1 %vm227_vm2, %v2619_v57 }
0x12b8   :  { %8740 = vmatpush3.xpose.msk.msra.mxu1 %vm227_vm2, %v2800_v55  ;;  %8741 = vmatprep.mubr.msk.f32.mxu1 %vm9584_vm1, %v9583_v20 }
0x12b9   :  { %v9418_v58 = vpop.eup %9417  ;;  %8749 = vmatprep.subr.mxu1 %v9583_v20 }
0x12ba   :  { %v2962_v41 = vpop.permute.xlu1 %2961  ;;  %v2213_v60 = vmul.f32 %v9418_v58, %v9416_v44 }
0x12bb   :  { %8742 = vmatmul.mubr.msk.f32.vlgmr.msra.gmra.mrb[30].mxu1 %vm227_vm2, %v2122_v32 }
0x12bc   :  { %8750 = vmatpush3.xpose.msk.msra.mxu1 %vm227_vm2, %v2962_v41  ;;  %8707 = vmatmul.mubr.msk.f32.vlgmr.msra.gmra.mrb[26].mxu0 %vm302_vm3, %v2213_v60 }
0x12bd   :  { %8710 = vmatpush3.xpose.msk.msra.mxu0 %vm227_vm2, %v2290_v47  ;;  %8751 = vmatprep.mubr.msk.f32.mxu1 %vm9584_vm1, %v9583_v20 }
0x12be   :  { %v3128_v46 = vpop.permute.xlu1 %3127  ;;  %8759 = vmatprep.subr.mxu1 %v9583_v20  ;;  %8711 = vmatprep.mubr.msk.f32.mxu0 %vm9584_vm1, %v9583_v20 }
0x12bf   :  { %8752 = vmatmul.mubr.msk.f32.vlgmr.msra.gmra.mrb[32].mxu1 %vm227_vm2, %v2960_v59  ;;  %8714 = vmatprep.subr.mxu0 %v9583_v20 }
0x12c0   :  { %8760 = vmatpush3.xpose.msk.msra.mxu1 %vm227_vm2, %v3128_v46  ;;  %8712 = vmatmul.mubr.msk.f32.vlgmr.msra.gmra.mrb[28].mxu0 %vm227_vm2, %v10258_v29 }
0x12c1   :  { %8761 = vmatprep.mubr.msk.f32.mxu1 %vm9584_vm1, %v9583_v20  ;;  %8769 = vmatprep.subr.mxu1 %v9583_v20 }
0x12c2   :  { %v3293_v19 = vpop.permute.xlu1 %3292  ;;  %8716 = vmatprep.mubr.msk.f32.mxu0 %vm9584_vm1, %v9583_v20 }
0x12c3   :  { %8762 = vmatmul.mubr.msk.f32.vlgmr.msra.gmra.mrb[34].mxu1 %vm227_vm2, %v3126_v50 }
0x12c4   :  { %8770 = vmatpush3.xpose.msk.msra.mxu1 %vm227_vm2, %v3293_v19  ;;  %8771 = vmatprep.mubr.msk.f32.mxu1 %vm9584_vm1, %v9583_v20 }
0x12c7   :  { %8772 = vmatmul.mubr.msk.f32.vlgmr.msra.gmra.mrb[36].mxu1 %vm227_vm2, %v3291_v61 }
0x1386   :  { %v2527_v62 = vpop.f32.mrb[26].mxu1 }
0x1387   :  { %v2528_v0 = vadd.f32 %v2527_v62, %v9801_v54  ;;  %v8723_v1 = vpop.f32.mrb[27].mxu1 }
0x1389   :  { %v2531_v2 = vsel %vm302_vm3, %v2528_v0, -inf }
0x138a   :  { %2532 = vmax.xlane.f32.xlu0 %v2531_v2  ;;  %v2692_v56 = vpop.f32.mrb[28].mxu1 }
0x138b   :  { %v2693_v3 = vadd.f32 %v2692_v56, %v9801_v54  ;;  %v8733_v4 = vpop.f32.mrb[29].mxu1 }
0x138d   :  { %v2696_v5 = vsel %vm302_vm3, %v2693_v3, -inf }
0x138e   :  { %2697 = vmax.xlane.f32.xlu0 %v2696_v5  ;;  %v2871_v6 = vpop.f32.mrb[30].mxu1  ;;  %v2124_v5 = vadd.f32 %v10266_v33, %v10250_v26 }
0x138f   :  { %v10319_v7 = vpop.f32.mrb[26].mxu0  ;;  %v8743_v8 = vpop.f32.mrb[31].mxu1  ;;  %v2872_v15 = vadd.f32 %v2871_v6, %v9891_v63 }
0x1390   :  { %v8708_v9 = vpop.f32.mrb[27].mxu0 }
0x1391   :  { %v2875_v25 = vsel %vm302_vm3, %v2872_v15, -inf }
0x1392   :  { %v3033_v53 = vpop.f32.mrb[32].mxu1 }
0x1393   :  { %v3034_v40 = vadd.f32 %v3033_v53, %v9891_v63  ;;  %v2361_v10 = vpop.f32.mrb[28].mxu0  ;;  %v8753_v18 = vpop.f32.mrb[33].mxu1 }
0x1394   :  { %v10323_v12 = vadd.f32 %v2361_v10, %v9801_v54  ;;  %v8713_v13 = vpop.f32.mrb[29].mxu0 }
0x1395   :  { %v3037_v14 = vsel %vm302_vm3, %v3034_v40, -inf }
0x1396   :  { %3038 = vmax.xlane.f32.xlu0 %v3037_v14  ;;  %v3199_v16 = vpop.f32.mrb[34].mxu1  ;;  %v2365_v21 = vsel %vm302_vm3, %v10323_v12, -inf }
0x1397   :  { %2366 = vmax.xlane.f32.xlu1 %v2365_v21  ;;  %v8763_v22 = vpop.f32.mrb[35].mxu1  ;;  %v3200_v23 = vadd.f32 %v3199_v16, %v9891_v63 }
0x1399   :  { %v3203_v31 = vsel %vm302_vm3, %v3200_v23, -inf }
0x139a   :  { %v3364_v24 = vpop.f32.mrb[36].mxu1 }
0x139b   :  { %v3365_v27 = vadd.f32 %v3364_v24, %v9891_v63  ;;  %2876 = vmax.xlane.f32.xlu1 %v2875_v25  ;;  %v8773_v29 = vpop.f32.mrb[37].mxu1 }
0x139d   :  { %v3368_v30 = vsel %vm302_vm3, %v3365_v27, -inf }
0x139e   :  { %3369 = vmax.xlane.f32.xlu0 %v3368_v30 }
0x139f   :  { %3204 = vmax.xlane.f32.xlu1 %v3203_v31 }
0x1417   :  { %v2533_v32 = vpop.xlane.xlu0 %2532 }
0x1418   :  { %v2534_v35 = vsub.f32 %v2528_v0, %v2533_v32 }
0x141a   :  { %v2535_v48 = vmul.f32 1.442695, %v2534_v35 }
0x141b   :  { %v2698_v36 = vpop.xlane.xlu0 %2697 }
0x141c   :  { %9419 = vpow2.f32 %v2535_v48  ;;  %v2699_v37 = vsub.f32 %v2693_v3, %v2698_v36 }
0x141e   :  { %v2700_v38 = vmul.f32 1.442695, %v2699_v37 }
0x1420   :  { %9421 = vpow2.f32 %v2700_v38 }
0x1423   :  { %v3039_v39 = vpop.xlane.xlu0 %3038 }
0x1424   :  { %v3040_v42 = vsub.f32 %v3034_v40, %v3039_v39  ;;  %v2367_v44 = vpop.xlane.xlu1 %2366 }
0x1425   :  { %v2368_v6 = vsub.f32 %v10323_v12, %v2367_v44  ;;  %v7940_v44 = vld [vmem:[%s11692_s6 + $0x48] sm:$0xff] }
0x1426   :  { %v10334_v45 = vpop.eup %9419  ;;  %v3041_v47 = vmul.f32 1.442695, %v3040_v42  ;;  %v7939_v42 = vld [vmem:[%s11692_s6 + $0x40] sm:$0xff] }
0x1427   :  { %v2537_v34 = vsel %vm302_vm3, %v10334_v45, 0.0  ;;  %v2369_v8 = vmul.f32 1.442695, %v2368_v6 }
0x1428   :  { %9423 = vpow2.f32 %v3041_v47  ;;  %v2877_v51 = vpop.xlane.xlu1 %2876  ;;  %2538 = vadd.xlane.f32.xlu0 %v2537_v34  ;;  %v7941_v47 = vld [vmem:[%s11692_s6 + $0x50] sm:$0xff]  ;;  %v7942_v34 = vld [vmem:[%s11692_s6 + $0x58] sm:$0xff] }
0x1429   :  { %v2878_v52 = vsub.f32 %v2872_v15, %v2877_v51  ;;  %v9096_v51 = vpack.c.bf16 %v7942_v34, %v7941_v47  ;;  %v7959_v34 = vld [vmem:[%s11696_s10 + $0xa0] sm:$0xff] }
0x142a   :  { %v10338_v55 = vpop.eup %9421 }
0x142b   :  { %v2879_v57 = vmul.f32 1.442695, %v2878_v52  ;;  %v3370_v58 = vpop.xlane.xlu0 %3369  ;;  %v2702_v59 = vsel %vm302_vm3, %v10338_v55, 0.0 }
0x142c   :  { %v3371_v41 = vsub.f32 %v3365_v27, %v3370_v58  ;;  %v3205_v60 = vpop.xlane.xlu1 %3204  ;;  %2703 = vadd.xlane.f32.xlu1 %v2702_v59  ;;  %v7944_v58 = vld [vmem:[%s11692_s6 + $0x68] sm:$0xff] }
0x142d   :  { %9425 = vpow2.f32 %v2879_v57  ;;  %v3206_v46 = vsub.f32 %v3200_v23, %v3205_v60  ;;  %v7943_v57 = vld [vmem:[%s11692_s6 + $0x60] sm:$0xff] }
0x142e   :  { %v3372_v50 = vmul.f32 1.442695, %v3371_v41  ;;  %v9100_v41 = vpack.c.bf16 %v7944_v58, %v7943_v57  ;;  %v7966_v57 = vld [vmem:[%s11696_s10 + $0xd8] sm:$0xff] }
0x142f   :  { %v3207_v19 = vmul.f32 1.442695, %v3206_v46  ;;  %v7945_v46 = vld [vmem:[%s11692_s6 + $0x70] sm:$0xff] }
0x1430   :  { %9427 = vpow2.f32 %v3372_v50  ;;  %v7946_v50 = vld [vmem:[%s11692_s6 + $0x78] sm:$0xff] }
0x1431   :  { %9429 = vpow2.f32 %v3207_v19 }
0x1432   :  { %v10342_v61 = vpop.eup %9423  ;;  %9431 = vpow2.f32 %v2369_v8 }
0x1433   :  { %v3043_v62 = vsel %vm302_vm3, %v10342_v61, 0.0 }
0x1434   :  { %3044 = vadd.xlane.f32.xlu1 %v3043_v62 }
0x1437   :  { %v9426_v0 = vpop.eup %9425 }
0x1438   :  { %v2881_v1 = vsel %vm302_vm3, %v9426_v0, 0.0 }
0x1439   :  { %2882 = vadd.xlane.f32.xlu0 %v2881_v1 }
0x143a   :  { %v10347_v2 = vpop.eup %9427 }
0x143b   :  { %v10349_v56 = vpop.eup %9429  ;;  %v3374_v3 = vsel %vm302_vm3, %v10347_v2, 0.0 }
0x143c   :  { %3375 = vadd.xlane.f32.xlu1 %v3374_v3  ;;  %v3209_v4 = vsel %vm302_vm3, %v10349_v56, 0.0  ;;  %v9432_v9 = vpop.eup %9431 }
0x143d   :  { %3210 = vadd.xlane.f32.xlu0 %v3209_v4  ;;  %v2371_v53 = vsel %vm302_vm3, %v9432_v9, 0.0 }
0x144d   :  { %2542 = vrot.lane.b32.xlu1 %v10255_v28, %s11710_s29 }
0x1453   :  { %2377 = vrot.lane.b32.xlu0 %v10255_v28, %s11716_s0 }
0x1457   :  { %3049 = vrot.lane.b32.xlu0 %v2124_v5, %s11716_s0 }
0x145b   :  { %3379 = vrot.lane.b32.xlu0 %v2124_v5, %s11724_s24 }
0x1471   :  { %2372 = vadd.xlane.f32.xlu1 %v2371_v53 }
0x1482   :  { %2707 = vrot.lane.b32.xlu1 %v10255_v28, %s11724_s24 }
0x1486   :  { %3214 = vrot.lane.b32.xlu1 %v2124_v5, %s11710_s29 }
0x14b5   :  { %v2539_v40 = vpop.xlane.xlu0 %2538 }
0x14b9   :  { %v2704_v18 = vpop.xlane.xlu1 %2703 }
0x14c1   :  { %v3045_v12 = vpop.xlane.xlu1 %3044 }
0x14c6   :  { %v2883_v10 = vpop.xlane.xlu0 %2882 }
0x14c9   :  { %v3376_v13 = vpop.xlane.xlu1 %3375 }
0x14ca   :  { %v3211_v26 = vpop.xlane.xlu0 %3210 }
0x14cd   :  { %v2543_v14 = vpop.permute.xlu1 %2542 }
0x14ce   :  { %v2378_v33 = vpop.permute.xlu0 %2377 }
0x14cf   :  { %8715 = vmatpush3.msra.mxu0 %v2378_v33 }
0x14d0   :  { %8724 = vmatprep.subr.mxu0 %v9583_v20 }
0x14d2   :  { %v3050_v31 = vpop.permute.xlu0 %3049 }
0x14d6   :  { %v3380_v38 = vpop.permute.xlu0 %3379 }
0x14fe   :  { %v2373_v15 = vpop.xlane.xlu1 %2372 }
0x14ff   :  { %9433 = vrcp.f32 %v2373_v15 }
0x1500   :  { %9435 = vrcp.f32 %v2539_v40 }
0x1501   :  { %9437 = vrcp.f32 %v2704_v18 }
0x1502   :  { %9439 = vrcp.f32 %v2883_v10  ;;  %v2708_v24 = vpop.permute.xlu1 %2707 }
0x1503   :  { %9441 = vrcp.f32 %v3045_v12 }
0x1504   :  { %9443 = vrcp.f32 %v3211_v26 }
0x1505   :  { %9445 = vrcp.f32 %v3376_v13 }
0x1506   :  { %v3215_v48 = vpop.permute.xlu1 %3214 }
0x1509   :  { %v9434_v16 = vpop.eup %9433 }
0x150a   :  { %v2375_v28 = vmul.f32 %v9434_v16, %v9432_v9  ;;  %v9436_v21 = vpop.eup %9435 }
0x150b   :  { %v2541_v22 = vmul.f32 %v9436_v21, %v10334_v45  ;;  %v9438_v23 = vpop.eup %9437  ;;  %v9092_v45 = vpack.c.bf16 %v7940_v44, %v7939_v42  ;;  %v7960_v44 = vld [vmem:[%s11696_s10 + $0xa8] sm:$0xff] }
0x150c   :  { %8717 = vmatmul.mubr.msk.f32.vlgmr.msra.gmra.mrb[30].mxu0 %vm302_vm3, %v2375_v28  ;;  %v2706_v25 = vmul.f32 %v9438_v23, %v10338_v55  ;;  %v9440_v27 = vpop.eup %9439 }
0x150d   :  { %8725 = vmatpush3.msra.mxu0 %v2543_v14  ;;  %8726 = vmatprep.mubr.msk.f32.mxu0 %vm9584_vm1, %v9583_v20  ;;  %v2885_v29 = vmul.f32 %v9440_v27, %v9426_v0  ;;  %v9442_v30 = vpop.eup %9441 }
0x150e   :  { %8734 = vmatprep.subr.mxu0 %v9583_v20  ;;  %v3047_v32 = vmul.f32 %v9442_v30, %v10342_v61  ;;  %v9444_v35 = vpop.eup %9443  ;;  %9093 = vmatprep.subr.bf16.mxu1 %v9092_v45  ;;  %v9104_v61 = vpack.c.bf16 %v7946_v50, %v7945_v46  ;;  %v7968_v46 = vld [vmem:[%s11696_s10 + $0xe8] sm:$0xff]  ;;  %v7970_v50 = vld [vmem:[%s11696_s10 + $0xf8] sm:$0xff] }
0x150f   :  { %v3213_v36 = vmul.f32 %v9444_v35, %v10349_v56  ;;  %v9446_v37 = vpop.eup %9445  ;;  %9095 = vmatpush3.bf16.msra.mxu1 %v9092_v45  ;;  %v7962_v45 = vld [vmem:[%s11696_s10 + $0xb8] sm:$0xff] }
0x1510   :  { %8727 = vmatmul.mubr.msk.f32.vlgmr.msra.gmra.mrb[32].mxu0 %vm302_vm3, %v2541_v22  ;;  %v3378_v39 = vmul.f32 %v9446_v37, %v10347_v2  ;;  %9097 = vmatprep.subr.bf16.mxu1 %v9096_v51  ;;  %v9112_v47 = vpack.c.bf16 %v7962_v45, %v7960_v44  ;;  %v7999_v44 = vld [vmem:[%s11698_s12 + $0x1c8] sm:$0xff] }
0x1511   :  { %8735 = vmatpush3.msra.mxu0 %v2708_v24  ;;  %8736 = vmatprep.mubr.msk.f32.mxu0 %vm9584_vm1, %v9583_v20 }
0x1512   :  { %8744 = vmatprep.subr.mxu0 %v9583_v20 }
0x1513   :  { %9099 = vmatpush3.bf16.msra.mxu1 %v9096_v51  ;;  %v7961_v51 = vld [vmem:[%s11696_s10 + $0xb0] sm:$0xff] }
0x1514   :  { %8737 = vmatmul.mubr.msk.f32.vlgmr.msra.gmra.mrb[34].mxu0 %vm302_vm3, %v2706_v25  ;;  %9101 = vmatprep.subr.bf16.mxu1 %v9100_v41 }
0x1515   :  { %8745 = vmatpush3.msra.mxu0 %v2124_v5  ;;  %8746 = vmatprep.mubr.msk.f32.mxu0 %vm9584_vm1, %v9583_v20 }
0x1516   :  { %8754 = vmatprep.subr.mxu0 %v9583_v20 }
0x1517   :  { %9103 = vmatpush3.bf16.msra.mxu1 %v9100_v41  ;;  %v7965_v41 = vld [vmem:[%s11696_s10 + $0xd0] sm:$0xff] }
0x1518   :  { %8747 = vmatmul.mubr.msk.f32.vlgmr.msra.gmra.mrb[36].mxu0 %vm302_vm3, %v2885_v29  ;;  %9105 = vmatprep.subr.bf16.mxu1 %v9104_v61 }
0x1519   :  { %8755 = vmatpush3.msra.mxu0 %v3050_v31  ;;  %8756 = vmatprep.mubr.msk.f32.mxu0 %vm9584_vm1, %v9583_v20 }
0x151a   :  { %8764 = vmatprep.subr.mxu0 %v9583_v20 }
0x151b   :  { %9107 = vmatpush3.bf16.msra.mxu1 %v9104_v61  ;;  %v9120_v61 = vpack.c.bf16 %v7970_v50, %v7968_v46  ;;  %v8003_v46 = vld [vmem:[%s11698_s12 + $0x1e8] sm:$0xff] }
0x151c   :  { %8757 = vmatmul.mubr.msk.f32.vlgmr.msra.gmra.mrb[38].mxu0 %vm302_vm3, %v3047_v32 }
0x151d   :  { %8765 = vmatpush3.msra.mxu0 %v3215_v48  ;;  %8766 = vmatprep.mubr.msk.f32.mxu0 %vm9584_vm1, %v9583_v20  ;;  %v7956_v48 = vld [vmem:[%s11696_s10 + $0x88] sm:$0xff] }
0x151e   :  { %8774 = vmatprep.subr.mxu0 %v9583_v20 }
0x1520   :  { %8767 = vmatmul.mubr.msk.f32.vlgmr.msra.gmra.mrb[40].mxu0 %vm302_vm3, %v3213_v36  ;;  %v7958_v36 = vld [vmem:[%s11696_s10 + $0x98] sm:$0xff] }
0x1521   :  { %8775 = vmatpush3.msra.mxu0 %v3380_v38  ;;  %8776 = vmatprep.mubr.msk.f32.mxu0 %vm9584_vm1, %v9583_v20  ;;  %v9108_v37 = vpack.c.bf16 %v7958_v36, %v7956_v48  ;;  %v7955_v38 = vld [vmem:[%s11696_s10 + $0x80] sm:$0xff]  ;;  %v7997_v48 = vld [vmem:[%s11698_s12 + $0x1b8] sm:$0xff] }
0x1523   :  { %9109 = vmatprep.subr.bf16.mxu0 %v9108_v37  ;;  %v7980_v37 = vld [vmem:[%s11698_s12 + $0x130] sm:$0xff] }
0x1524   :  { %8777 = vmatmul.mubr.msk.f32.vlgmr.msra.gmra.mrb[42].mxu0 %vm302_vm3, %v3378_v39  ;;  %v7957_v39 = vld [vmem:[%s11696_s10 + $0x90] sm:$0xff] }
0x1525   :  { %3716 = vmatprep.mubr.f32.mxu0 %v9583_v20  ;;  %v9110_v42 = vpack.c.bf16 %v7957_v39, %v7955_v38  ;;  %v7981_v38 = vld [vmem:[%s11698_s12 + $0x138] sm:$0xff] }
0x1526   :  { %v9138_v39 = vpack.c.bf16 %v7981_v38, %v7980_v37 }
0x1527   :  { %9111 = vmatpush1.bf16.msra.mxu0 %v9110_v42  ;;  %v7998_v42 = vld [vmem:[%s11698_s12 + $0x1c0] sm:$0xff] }
0x1528   :  { %9113 = vmatprep.subr.bf16.mxu0 %v9112_v47  ;;  %v9140_v45 = vpack.c.bf16 %v7999_v44, %v7998_v42  ;;  %v7982_v47 = vld [vmem:[%s11698_s12 + $0x140] sm:$0xff] }
0x15df   :  { %v2449_v52 = vpop.f32.mrb[30].mxu0 }
0x15e0   :  { %2784 = vrot.lane.b32.xlu1 %v2449_v52, %s11712_s21  ;;  %v8718_v55 = vpop.f32.mrb[31].mxu0  ;;  %v9114_v52 = vpack.c.bf16 %v7961_v51, %v7959_v34  ;;  %v7983_v34 = vld [vmem:[%s11698_s12 + $0x148] sm:$0xff] }
0x15e1   :  { %v7964_v55 = vld [vmem:[%s11696_s10 + $0xc8] sm:$0xff]  ;;  %v9142_v51 = vpack.c.bf16 %v7983_v34, %v7982_v47 }
0x15e2   :  { %9115 = vmatpush1.bf16.msra.mxu0 %v9114_v52  ;;  %v9116_v58 = vpack.c.bf16 %v7966_v57, %v7964_v55  ;;  %v8000_v52 = vld [vmem:[%s11698_s12 + $0x1d0] sm:$0xff]  ;;  %v8001_v55 = vld [vmem:[%s11698_s12 + $0x1d8] sm:$0xff] }
0x15e3   :  { %v2614_v59 = vpop.f32.mrb[32].mxu0  ;;  %v9144_v57 = vpack.c.bf16 %v8001_v55, %v8000_v52  ;;  %v8007_v55 = vld [vmem:[%s11699_s13 + $0x1] ss:$0 sm:$0xff] }
0x15e4   :  { %2788 = vrot.lane.b32.xlu0 %v2614_v59, %s11714_s20  ;;  %v8728_v60 = vpop.f32.mrb[33].mxu0  ;;  %v7963_v59 = vld [vmem:[%s11696_s10 + $0xc0] sm:$0xff]  ;;  %9117 = vmatprep.subr.bf16.mxu0 %v9116_v58  ;;  %v7984_v58 = vld [vmem:[%s11698_s12 + $0x150] sm:$0xff] }
0x15e5   :  { %v9118_v60 = vpack.c.bf16 %v7965_v41, %v7963_v59  ;;  %v7985_v59 = vld [vmem:[%s11698_s12 + $0x158] sm:$0xff] }
0x15e6   :  { %v9146_v41 = vpack.c.bf16 %v7985_v59, %v7984_v58 }
0x15e7   :  { %v2779_v19 = vpop.f32.mrb[34].mxu0  ;;  %9119 = vmatpush1.bf16.msra.mxu0 %v9118_v60  ;;  %v8002_v60 = vld [vmem:[%s11698_s12 + $0x1e0] sm:$0xff] }
0x15e8   :  { %2792 = vrot.lane.b32.xlu0 %v2779_v19, %s11725_s27  ;;  %v8738_v62 = vpop.f32.mrb[35].mxu0  ;;  %v7967_v19 = vld [vmem:[%s11696_s10 + $0xe0] sm:$0xff]  ;;  %9121 = vmatprep.subr.bf16.mxu0 %v9120_v61  ;;  %v9148_v50 = vpack.c.bf16 %v8003_v46, %v8002_v60  ;;  %v7987_v61 = vld [vmem:[%s11698_s12 + $0x168] sm:$0xff] }
0x15e9   :  { %v7969_v62 = vld [vmem:[%s11696_s10 + $0xf0] sm:$0xff] }
0x15eb   :  { %v2955_v0 = vpop.f32.mrb[36].mxu0 }
0x15ec   :  { %v8748_v1 = vpop.f32.mrb[37].mxu0 }
0x15ef   :  { %v3121_v2 = vpop.f32.mrb[38].mxu0 }
0x15f0   :  { %3456 = vrot.lane.b32.xlu1 %v3121_v2, %s11712_s21  ;;  %v8758_v56 = vpop.f32.mrb[39].mxu0  ;;  %s9592_s21 = smov [#allocation2]  }
0x15f1   :  { %s7850_s1 = sshll.u32 %s9592_s21, 4  ;;  %s7851_s1 = int_to_ptr.vmem [resolvable:$true] %s7850_s1 }
0x15f2   :  { %p9564_p1 = scmp.lt.s32.totalorder %s7851_s1, %s7851_s1 }
0x15f3   :  { %v3286_v3 = vpop.f32.mrb[40].mxu0 }
0x15f4   :  { %3460 = vrot.lane.b32.xlu1 %v3286_v3, %s11714_s20  ;;  %v8768_v4 = vpop.f32.mrb[41].mxu0 }
0x15f7   :  { %v3451_v5 = vpop.f32.mrb[42].mxu0 }
0x15f8   :  { %3464 = vrot.lane.b32.xlu0 %v3451_v5, %s11725_s27  ;;  %v8778_v6 = vpop.f32.mrb[43].mxu0 }
0x1652   :  { %v2785_v8 = vpop.permute.xlu1 %2784 }
0x1653   :  { %v2795_v53 = vsel %vm227_vm2, %v10319_v7, %v2785_v8  ;;  %v7948_v7 = vld [vmem:[%s11693_s7 + $0x1] ss:$0 sm:$0xff] }
0x1656   :  { %v2789_v9 = vpop.permute.xlu0 %2788 }
0x1657   :  { %v2796_v40 = vsel %vm896_vm4, %v2795_v53, %v2789_v9  ;;  %v10502_v53 = vld [vmem:[%s11694_s8 + $0x1] ss:$0 sm:$0xff] }
0x165a   :  { %v2793_v10 = vpop.permute.xlu0 %2792 }
0x165b   :  { %v2797_v26 = vsel %vm898_vm5, %v2796_v40, %v2793_v10  ;;  %v10507_v10 = vld [vmem:[%s11695_s9 + $0x1] ss:$0 sm:$0xff] }
0x165c   :  { %8795 = vmatprep.mubr.msk.f32.mxu1 %vm65_vm0, %v2797_v26 }
0x1662   :  { %v3457_v33 = vpop.permute.xlu1 %3456 }
0x1663   :  { %v3467_v12 = vsel %vm227_vm2, %v2955_v0, %v3457_v33  ;;  %v9122_v0 = vpack.c.bf16 %v7969_v62, %v7967_v19  ;;  %v7986_v19 = vld [vmem:[%s11698_s12 + $0x160] sm:$0xff] }
0x1664   :  { %v9150_v62 = vpack.c.bf16 %v7987_v61, %v7986_v19 }
0x1665   :  { %9123 = vmatpush1.bf16.msra.mxu0 %v9122_v0  ;;  %v8004_v0 = vld [vmem:[%s11698_s12 + $0x1f0] sm:$0xff] }
0x1666   :  { %v3461_v18 = vpop.permute.xlu1 %3460 }
0x1667   :  { %v3468_v13 = vsel %vm896_vm4, %v3467_v12, %v3461_v18  ;;  %v7990_v18 = vld [vmem:[%s11698_s12 + $0x180] sm:$0xff]  ;;  %v7991_v12 = vld [vmem:[%s11698_s12 + $0x188] sm:$0xff] }
0x166a   :  { %v3465_v14 = vpop.permute.xlu0 %3464 }
0x166b   :  { %v3469_v15 = vsel %vm898_vm5, %v3468_v13, %v3465_v14  ;;  %v7974_v13 = vld [vmem:[%s11698_s12 + $0x100] sm:$0xff]  ;;  %v9124_v14 = vpack.c.bf16 %v7991_v12, %v7990_v18 }
0x166c   :  { %8796 = vmatmul.mubr.msk.f32.vlgmr.msra.gmra.mrb[38].mxu1 %vm65_vm0, %v3469_v15  ;;  %v7975_v15 = vld [vmem:[%s11698_s12 + $0x108] sm:$0xff] }
0x166d   :  { %9125 = vmatprep.subr.bf16.mxu1 %v9124_v14 }
0x173f   :  { %v8797_v16 = vpop.f32.mrb[38].mxu1 }
0x1740   :  { %v3565_v28 = vadd.f32 %v8797_v16, %v7948_v7  ;;  %v3559_v21 = vpop.f32.mrb[39].mxu1  ;;  %v7993_v16 = vld [vmem:[%s11698_s12 + $0x198] sm:$0xff] }
0x1741   :  { %v3560_v22 = vadd.f32 %v7948_v7, %v3559_v21  ;;  %v7992_v7 = vld [vmem:[%s11698_s12 + $0x190] sm:$0xff] }
0x1742   :  { %v3569_v32 = vadd.f32 %v3565_v28, %v10235_v17  ;;  %v9126_v28 = vpack.c.bf16 %v7975_v15, %v7974_v13  ;;  %v9128_v21 = vpack.c.bf16 %v7993_v16, %v7992_v7  ;;  %v7971_v13 = vld [vmem:[%s11697_s11 + $0x2] sm:$0x3] }
0x1743   :  { %v3568_v23 = vadd.f32 %v3560_v22, %v10230_v11  ;;  %v7976_v22 = vld [vmem:[%s11698_s12 + $0x110] sm:$0xff]  ;;  %v3639_v14 = vrot.slane %v7971_v13, %v9763_v43  ;;  %v3643_v15 = vrot.slane %v7971_v13, %v9778_v49 }
0x1744   :  { %v3577_v35 = vsel %vm65_vm0, %v3569_v32, 0.0  ;;  %9127 = vmatpush3.bf16.msra.mxu1 %v9126_v28 }
0x1745   :  { %v3574_v24 = vsel %vm65_vm0, %v3568_v23, 0.0  ;;  %9129 = vmatprep.subr.bf16.mxu1 %v9128_v21 }
0x1746   :  { %3575 = vadd.xlane.f32.xlu1 %v3574_v24  ;;  %v7994_v24 = vld [vmem:[%s11698_s12 + $0x1a0] sm:$0xff] }
0x17d3   :  { %v3576_v25 = vpop.xlane.xlu1 %3575 }
0x17d4   :  { %v3580_v27 = vmul.f32 0.015625, %v3576_v25  ;;  %v7995_v25 = vld [vmem:[%s11698_s12 + $0x1a8] sm:$0xff] }
0x17d6   :  { %v3582_v29 = vsub.f32 %v3568_v23, %v3580_v27  ;;  %v7977_v23 = vld [vmem:[%s11698_s12 + $0x118] sm:$0xff] }
0x17d7   :  { %v9130_v27 = vpack.c.bf16 %v7977_v23, %v7976_v22 }
0x17d8   :  { %v3584_v30 = vmul.f32 %v3582_v29, %v3582_v29 }
0x17d9   :  { %9131 = vmatpush3.bf16.msra.mxu1 %v9130_v27 }
0x17da   :  { %v3586_v31 = vsel %vm65_vm0, %v3584_v30, 0.0  ;;  %v7978_v30 = vld [vmem:[%s11698_s12 + $0x120] sm:$0xff] }
0x17db   :  { %3587 = vadd.xlane.f32.xlu0 %v3586_v31  ;;  %v7979_v31 = vld [vmem:[%s11698_s12 + $0x128] sm:$0xff] }
0x17df   :  { %3578 = vadd.xlane.f32.xlu0 %v3577_v35  ;;  %v7996_v35 = vld [vmem:[%s11698_s12 + $0x1b0] sm:$0xff] }
0x17e0   :  { %v9136_v36 = vpack.c.bf16 %v7997_v48, %v7996_v35 }
0x1868   :  { %v3588_v1 = vpop.xlane.xlu0 %3587 }
0x1869   :  { %v3592_v2 = vmul.f32 0.015625, %v3588_v1  ;;  %v8005_v1 = vld [vmem:[%s11698_s12 + $0x1f8] sm:$0xff] }
0x186b   :  { %v3594_v56 = vadd.f32 1e-05, %v3592_v2  ;;  %v9152_v2 = vpack.c.bf16 %v8005_v1, %v8004_v0 }
0x186c   :  { %v3579_v3 = vpop.xlane.xlu0 %3578 }
0x186d   :  { %9447 = vrsqrt.f32 %v3594_v56  ;;  %v3581_v4 = vmul.f32 0.015625, %v3579_v3  ;;  %v7988_v56 = vld [vmem:[%s11698_s12 + $0x170] sm:$0xff]  ;;  %v7989_v3 = vld [vmem:[%s11698_s12 + $0x178] sm:$0xff] }
0x186f   :  { %v10494_v5 = vsub.f32 %v3569_v32, %v3581_v4  ;;  %v9134_v32 = vpack.c.bf16 %v7979_v31, %v7978_v30  ;;  %v9154_v4 = vpack.c.bf16 %v7989_v3, %v7988_v56 }
0x1871   :  { %v3585_v6 = vmul.f32 %v10494_v5, %v10494_v5 }
0x1873   :  { %v3589_v8 = vsel %vm65_vm0, %v3585_v6, 0.0 }
0x1874   :  { %3590 = vadd.xlane.f32.xlu1 %v3589_v8 }
0x1877   :  { %v9448_v9 = vpop.eup %9447 }
0x1878   :  { %v3598_v40 = vmul.f32 %v9448_v9, %v3582_v29  ;;  %v9132_v29 = vpack.c.bf16 %v7995_v25, %v7994_v24 }
0x187a   :  { %v3606_v26 = vmul.f32 %v10502_v53, %v3598_v40  ;;  %9133 = vmatprep.subr.bf16.mxu1 %v9132_v29 }
0x187b   :  { %9135 = vmatpush3.bf16.msra.mxu1 %v9134_v32 }
0x187c   :  { %v10511_v33 = vadd.f32 %v10507_v10, %v3606_v26  ;;  %9137 = vmatprep.subr.bf16.mxu1 %v9136_v36 }
0x187e   :  { %7972 = vmatmul.mubr.msk.f32.vlgmr.msra.gmra.mrb[44].mxu0 %vm65_vm0, %v10511_v33 }
0x187f   :  { %3722 = vmatprep.mubr.f32.mxu0 %v9583_v20  ;;  %9139 = vmatpush3.bf16.msra.mxu1 %v9138_v39 }
0x1880   :  { %9141 = vmatprep.subr.bf16.mxu1 %v9140_v45 }
0x1883   :  { %9143 = vmatpush3.bf16.msra.mxu1 %v9142_v51 }
0x1884   :  { %9145 = vmatprep.subr.bf16.mxu1 %v9144_v57 }
0x1887   :  { %9147 = vmatpush3.bf16.msra.mxu1 %v9146_v41 }
0x1888   :  { %9149 = vmatprep.subr.bf16.mxu1 %v9148_v50 }
0x188b   :  { %9151 = vmatpush3.bf16.msra.mxu1 %v9150_v62 }
0x188c   :  { %9153 = vmatprep.subr.bf16.mxu1 %v9152_v2 }
0x188f   :  { %9155 = vmatpush3.bf16.msra.mxu1 %v9154_v4 }
0x1890   :  { %8818 = vmatprep.subr.mxu1 %v9583_v20 }
0x1901   :  { %v3591_v6 = vpop.xlane.xlu1 %3590 }
0x1902   :  { %v3593_v8 = vmul.f32 0.015625, %v3591_v6  ;;  %v8015_v6 = vld [vmem:[%s11690_s4 + $0x118] sm:$0xff] }
0x1904   :  { %v3595_v9 = vadd.f32 1e-05, %v3593_v8 }
0x1906   :  { %9449 = vrsqrt.f32 %v3595_v9  ;;  %v8012_v9 = vld [vmem:[%s11690_s4 + $0x100] sm:$0xff] }
0x1910   :  { %v9450_v40 = vpop.eup %9449 }
0x1911   :  { %v3599_v26 = vmul.f32 %v9450_v40, %v10494_v5  ;;  %v8014_v40 = vld [vmem:[%s11690_s4 + $0x110] sm:$0xff] }
0x1913   :  { %v3607_v18 = vmul.f32 %v10502_v53, %v3599_v26  ;;  %v9158_v26 = vpack.c.bf16 %v8014_v40, %v8012_v9 }
0x1915   :  { %v3615_v12 = vadd.f32 %v10507_v10, %v3607_v18  ;;  %v8017_v18 = vld [vmem:[%s11690_s4 + $0x128] sm:$0xff] }
0x1917   :  { %7973 = vmatmul.mubr.msk.f32.gmra.mrb[46].mxu0 %vm65_vm0, %v3615_v12 }
0x1918   :  { %4016 = vmatprep.mubr.f32.mxu0 %v9583_v20 }
0x1951   :  { %v3718_v7 = vpop.f32.mrb[44].mxu0 }
0x1952   :  { %v3719_v16 = vadd.f32 %v3718_v7, %v3639_v14  ;;  %v3720_v28 = vpop.f32.mrb[45].mxu0 }
0x1953   :  { %v3721_v5 = vadd.f32 %v3720_v28, %v3643_v15  ;;  %v8023_v28 = vld [vmem:[%s11690_s4 + $0x158] sm:$0xff] }
0x1954   :  { %v3733_v21 = vmul.f32 0.70710677, %v3719_v16  ;;  %v3729_v27 = vmul.f32 0.5, %v3719_v16  ;;  %v8021_v16 = vld [vmem:[%s11690_s4 + $0x148] sm:$0xff] }
0x1955   :  { %v3734_v53 = vmul.f32 0.70710677, %v3721_v5  ;;  %v3730_v24 = vmul.f32 0.5, %v3721_v5  ;;  %v9164_v5 = vpack.c.bf16 %v8023_v28, %v8021_v16 }
0x1956   :  { %9451 = verf.f32 %v3733_v21  ;;  %v8020_v21 = vld [vmem:[%s11690_s4 + $0x140] sm:$0xff] }
0x1957   :  { %9453 = verf.f32 %v3734_v53  ;;  %v8022_v53 = vld [vmem:[%s11690_s4 + $0x150] sm:$0xff] }
0x1960   :  { %v9452_v10 = vpop.eup %9451 }
0x1961   :  { %v9454_v22 = vpop.eup %9453  ;;  %v3741_v23 = vadd.f32 1.0, %v9452_v10  ;;  %v9166_v10 = vpack.c.bf16 %v8022_v53, %v8020_v21 }
0x1962   :  { %v3742_v25 = vadd.f32 1.0, %v9454_v22  ;;  %v8025_v22 = vld [vmem:[%s11690_s4 + $0x168] sm:$0xff] }
0x1963   :  { %v3745_v30 = vmul.f32 %v3741_v23, %v3729_v27  ;;  %v8027_v23 = vld [vmem:[%s11690_s4 + $0x178] sm:$0xff]  ;;  %v8026_v27 = vld [vmem:[%s11690_s4 + $0x170] sm:$0xff] }
0x1964   :  { %v3746_v29 = vmul.f32 %v3742_v25, %v3730_v24  ;;  %v9168_v24 = vpack.c.bf16 %v8027_v23, %v8025_v22  ;;  %v8024_v25 = vld [vmem:[%s11690_s4 + $0x160] sm:$0xff] }
0x1966   :  { %3854 = vmatprep.mubr.f32.mxu1 %v3746_v29  ;;  %v9170_v29 = vpack.c.bf16 %v8026_v27, %v8024_v25 }
0x1967   :  { %3855 = vmatmul.mubr.f32.vlgmr.msra.gmra.mrb[40].mxu1 %v3745_v30 }
0x19ea   :  { %v3724_v31 = vpop.f32.mrb[46].mxu0 }
0x19eb   :  { %v3725_v32 = vadd.f32 %v3724_v31, %v3639_v14  ;;  %v3726_v35 = vpop.f32.mrb[47].mxu0  ;;  %v8016_v14 = vld [vmem:[%s11690_s4 + $0x120] sm:$0xff] }
0x19ec   :  { %v3727_v48 = vadd.f32 %v3726_v35, %v3643_v15  ;;  %v8018_v15 = vld [vmem:[%s11690_s4 + $0x130] sm:$0xff] }
0x19ed   :  { %v3735_v36 = vmul.f32 0.70710677, %v3725_v32  ;;  %v3731_v47 = vmul.f32 0.5, %v3725_v32  ;;  %v9162_v7 = vpack.c.bf16 %v8018_v15, %v8016_v14 }
0x19ee   :  { %v3736_v37 = vmul.f32 0.70710677, %v3727_v48  ;;  %v3732_v44 = vmul.f32 0.5, %v3727_v48 }
0x19ef   :  { %9455 = verf.f32 %v3735_v36 }
0x19f0   :  { %9457 = verf.f32 %v3736_v37 }
0x19f9   :  { %v9456_v38 = vpop.eup %9455 }
0x19fa   :  { %v9458_v39 = vpop.eup %9457  ;;  %v3743_v42 = vadd.f32 1.0, %v9456_v38 }
0x19fb   :  { %v3744_v45 = vadd.f32 1.0, %v9458_v39 }
0x19fc   :  { %v3747_v51 = vmul.f32 %v3743_v42, %v3731_v47  ;;  %v8010_v42 = vld [vmem:[%s11700_s14 + $0x1] ss:$0 sm:$0xff] }
0x19fd   :  { %v3748_v34 = vmul.f32 %v3744_v45, %v3732_v44  ;;  %v8011_v45 = vld [vmem:[%s11701_s15 + $0x1] ss:$0 sm:$0xff] }
0x19ff   :  { %3859 = vmatprep.mubr.f32.mxu1 %v3748_v34 }
0x1a00   :  { %3860 = vmatmul.mubr.f32.gmra.mrb[42].mxu1 %v3747_v51 }
0x1a01   :  { %8820 = vmatprep.mubr.msk.f32.mxu1 %vm9584_vm1, %v9583_v20 }
0x1a3a   :  { %v8399_v52 = vpop.f32.mrb[40].mxu1 }
0x1a3b   :  { %v8400_v57 = vpop.f32.mrb[41].mxu1 }
0x1a3c   :  { %v8401_v58 = vadd.f32 %v8400_v57, %v8399_v52 }
0x1a3e   :  { %v3857_v59 = vadd.f32 %v8401_v58, %v8007_v55 }
0x1a40   :  { %v3865_v41 = vadd.f32 %v3857_v59, %v10511_v33  ;;  %v8013_v33 = vld [vmem:[%s11690_s4 + $0x108] sm:$0xff] }
0x1a41   :  { %v9156_v8 = vpack.c.bf16 %v8015_v6, %v8013_v33 }
0x1a42   :  { %v3871_v60 = vsel %vm65_vm0, %v3865_v41, 0.0 }
0x1a43   :  { %3872 = vadd.xlane.f32.xlu0 %v3871_v60  ;;  %9157 = vmatprep.subr.bf16.mxu0 %v9156_v8  ;;  %v8028_v60 = vld [vmem:[%s11691_s5 + $0x4] sm:$0x3] }
0x1a44   :  { %9159 = vmatpush1.bf16.msra.mxu0 %v9158_v26 }
0x1ad0   :  { %v3873_v46 = vpop.xlane.xlu0 %3872 }
0x1ad1   :  { %v3877_v50 = vmul.f32 0.015625, %v3873_v46  ;;  %v3940_v46 = vrot.slane %v8028_v60, %v9763_v43 }
0x1ad3   :  { %v3879_v19 = vsub.f32 %v3865_v41, %v3877_v50  ;;  %v8402_v61 = vpop.f32.mrb[42].mxu1 }
0x1ad4   :  { %v8403_v62 = vpop.f32.mrb[43].mxu1 }
0x1ad5   :  { %v8404_v0 = vadd.f32 %v8403_v62, %v8402_v61  ;;  %v3881_v1 = vmul.f32 %v3879_v19, %v3879_v19  ;;  %v10708_v62 = vrot.slane %v8028_v60, %v9778_v49 }
0x1ad7   :  { %v3862_v2 = vadd.f32 %v8404_v0, %v8007_v55  ;;  %v3883_v56 = vsel %vm65_vm0, %v3881_v1, 0.0 }
0x1ad8   :  { %3884 = vadd.xlane.f32.xlu1 %v3883_v56 }
0x1ad9   :  { %v3866_v3 = vadd.f32 %v3862_v2, %v3615_v12  ;;  %v8019_v12 = vld [vmem:[%s11690_s4 + $0x138] sm:$0xff] }
0x1ada   :  { %v9160_v13 = vpack.c.bf16 %v8019_v12, %v8017_v18 }
0x1adb   :  { %v3874_v4 = vsel %vm65_vm0, %v3866_v3, 0.0 }
0x1adc   :  { %3875 = vadd.xlane.f32.xlu0 %v3874_v4  ;;  %9161 = vmatprep.subr.bf16.mxu0 %v9160_v13 }
0x1add   :  { %9163 = vmatpush1.bf16.msra.mxu0 %v9162_v7 }
0x1ade   :  { %9165 = vmatprep.subr.bf16.mxu0 %v9164_v5 }
0x1ae1   :  { %9167 = vmatpush1.bf16.msra.mxu0 %v9166_v10 }
0x1ae2   :  { %9169 = vmatprep.subr.bf16.mxu0 %v9168_v24 }
0x1ae5   :  { %9171 = vmatpush1.bf16.msra.mxu0 %v9170_v29 }
0x1ae6   :  { %8798 = vmatprep.subr.mxu0 %v9583_v20 }
0x1b65   :  { %v3885_v30 = vpop.xlane.xlu1 %3884 }
0x1b66   :  { %v3889_v31 = vmul.f32 0.015625, %v3885_v30 }
0x1b68   :  { %v3891_v32 = vadd.f32 1e-05, %v3889_v31 }
0x1b69   :  { %v3876_v35 = vpop.xlane.xlu0 %3875 }
0x1b6a   :  { %9459 = vrsqrt.f32 %v3891_v32  ;;  %v3878_v48 = vmul.f32 0.015625, %v3876_v35 }
0x1b6c   :  { %v3880_v36 = vsub.f32 %v3866_v3, %v3878_v48 }
0x1b6e   :  { %v3882_v37 = vmul.f32 %v3880_v36, %v3880_v36 }
0x1b70   :  { %v3886_v38 = vsel %vm65_vm0, %v3882_v37, 0.0 }
0x1b71   :  { %3887 = vadd.xlane.f32.xlu1 %v3886_v38 }
0x1b74   :  { %v9460_v39 = vpop.eup %9459 }
0x1b75   :  { %v3895_v44 = vmul.f32 %v9460_v39, %v3879_v19 }
0x1b77   :  { %v3903_v47 = vmul.f32 %v8010_v42, %v3895_v44 }
0x1b79   :  { %v10688_v34 = vadd.f32 %v8011_v45, %v3903_v47 }
0x1b7b   :  { %8029 = vmatmul.mubr.msk.f32.vlgmr.msra.gmra.mrb[48].mxu0 %vm65_vm0, %v10688_v34 }
0x1b7c   :  { %4022 = vmatprep.mubr.f32.mxu0 %v9583_v20 }
0x1bfe   :  { %v3888_v51 = vpop.xlane.xlu1 %3887 }
0x1bff   :  { %v3890_v52 = vmul.f32 0.015625, %v3888_v51 }
0x1c01   :  { %v3892_v55 = vadd.f32 1e-05, %v3890_v52 }
0x1c03   :  { %9461 = vrsqrt.f32 %v3892_v55 }
0x1c0d   :  { %v9462_v57 = vpop.eup %9461 }
0x1c0e   :  { %v3896_v58 = vmul.f32 %v9462_v57, %v3880_v36 }
0x1c10   :  { %v3904_v59 = vmul.f32 %v8010_v42, %v3896_v58 }
0x1c12   :  { %v10693_v41 = vadd.f32 %v8011_v45, %v3904_v59 }
0x1c14   :  { %8030 = vmatmul.mubr.msk.f32.gmra.mrb[50].mxu0 %vm65_vm0, %v10693_v41 }
0x1c15   :  { %8800 = vmatprep.mubr.msk.f32.mxu0 %vm9584_vm1, %v9583_v20 }
0x1c4e   :  { %v4018_v50 = vpop.f32.mrb[48].mxu0 }
0x1c4f   :  { %v4019_v19 = vadd.f32 %v4018_v50, %v3940_v46  ;;  %v4020_v61 = vpop.f32.mrb[49].mxu0 }
0x1c50   :  { %v10713_v1 = vadd.f32 %v4020_v61, %v10708_v62 }
0x1c51   :  { %4030 = vrot.lane.b32.xlu0 %v4019_v19, %s9586_s26 }
0x1c55   :  { %4190 = vrot.lane.b32.xlu0 %v4019_v19, %s11716_s0 }
0x1c59   :  { %4358 = vrot.lane.b32.xlu0 %v4019_v19, %s11714_s20 }
0x1c5d   :  { %4523 = vrot.lane.b32.xlu0 %v4019_v19, %s11726_s19 }
0x1cc3   :  { %v4031_v0 = vpop.permute.xlu0 %4030 }
0x1cc4   :  { %8799 = vmatpush3.xpose.msk.msra.mxu0 %vm227_vm2, %v4031_v0 }
0x1cc5   :  { %8803 = vmatprep.subr.mxu0 %v9583_v20 }
0x1cc7   :  { %8801 = vmatmul.mubr.msk.f32.vlgmr.msra.gmra.mrb[52].mxu0 %vm227_vm2, %v4019_v19  ;;  %v10716_v2 = vpop.permute.xlu0 %4190 }
0x1cc8   :  { %8804 = vmatpush3.msra.mxu0 %v10713_v1  ;;  %8805 = vmatprep.mubr.msk.f32.mxu0 %vm9584_vm1, %v9583_v20 }
0x1cc9   :  { %8808 = vmatprep.subr.mxu0 %v9583_v20 }
0x1ccb   :  { %v4359_v56 = vpop.permute.xlu0 %4358 }
0x1ccc   :  { %8819 = vmatpush3.xpose.msk.msra.mxu1 %vm227_vm2, %v4359_v56 }
0x1ccd   :  { %8828 = vmatprep.subr.mxu1 %v9583_v20 }
0x1ccf   :  { %v4524_v16 = vpop.permute.xlu0 %4523 }
0x1ce7   :  { %v4024_v3 = vpop.f32.mrb[50].mxu0 }
0x1ce8   :  { %v4025_v4 = vadd.f32 %v4024_v3, %v3940_v46  ;;  %v10724_v33 = vpop.f32.mrb[51].mxu0 }
0x1cea   :  { %4702 = vrot.lane.b32.xlu0 %v4025_v4, %s9586_s26 }
0x1cee   :  { %4862 = vrot.lane.b32.xlu0 %v4025_v4, %s11716_s0 }
0x1cf2   :  { %5028 = vrot.lane.b32.xlu0 %v4025_v4, %s11727_s25 }
0x1cf6   :  { %5193 = vrot.lane.b32.xlu0 %v4025_v4, %s11724_s24 }
0x1d5c   :  { %v4703_v5 = vpop.permute.xlu0 %4702 }
0x1d60   :  { %v4863_v10 = vpop.permute.xlu0 %4862 }
0x1d64   :  { %v5029_v25 = vpop.permute.xlu0 %5028 }
0x1d68   :  { %v5194_v29 = vpop.permute.xlu0 %5193 }
0x1d9a   :  { %v4102_v6 = vpop.f32.mrb[52].mxu0 }
0x1d9b   :  { %v4103_v8 = vadd.f32 %v4102_v6, %v9801_v54  ;;  %v8802_v9 = vpop.f32.mrb[53].mxu0 }
0x1d9d   :  { %v4106_v40 = vsel %vm302_vm3, %v4103_v8, -inf }
0x1d9e   :  { %4107 = vmax.xlane.f32.xlu1 %v4106_v40 }
0x1daf   :  { %4192 = vrot.lane.b32.xlu1 %v4019_v19, %s11725_s27 }
0x1e2b   :  { %v4108_v26 = vpop.xlane.xlu1 %4107 }
0x1e2c   :  { %v4109_v18 = vsub.f32 %v4103_v8, %v4108_v26 }
0x1e2e   :  { %v4110_v12 = vmul.f32 1.442695, %v4109_v18 }
0x1e2f   :  { %v4193_v15 = vpop.permute.xlu1 %4192 }
0x1e30   :  { %9463 = vpow2.f32 %v4110_v12 }
0x1e3a   :  { %v9464_v13 = vpop.eup %9463 }
0x1e3b   :  { %v4112_v14 = vsel %vm302_vm3, %v9464_v13, 0.0 }
0x1e3c   :  { %4113 = vadd.xlane.f32.xlu1 %v4112_v14 }
0x1e4d   :  { %4356 = vrot.lane.b32.xlu1 %v4019_v19, %s11727_s25 }
0x1e51   :  { %4521 = vrot.lane.b32.xlu1 %v4019_v19, %s11724_s24 }
0x1e55   :  { %4864 = vrot.lane.b32.xlu1 %v4025_v4, %s11725_s27 }
0x1e59   :  { %5030 = vrot.lane.b32.xlu1 %v4025_v4, %s11714_s20 }
0x1e5d   :  { %5195 = vrot.lane.b32.xlu1 %v4025_v4, %s11726_s19 }
0x1ec9   :  { %v4114_v7 = vpop.xlane.xlu1 %4113 }
0x1eca   :  { %9465 = vrcp.f32 %v4114_v7 }
0x1ecd   :  { %v4357_v28 = vpop.permute.xlu1 %4356 }
0x1ece   :  { %8821 = vmatmul.mubr.msk.f32.vlgmr.msra.gmra.mrb[44].mxu1 %vm227_vm2, %v4357_v28 }
0x1ecf   :  { %8829 = vmatpush3.xpose.msk.msra.mxu1 %vm227_vm2, %v4524_v16  ;;  %8830 = vmatprep.mubr.msk.f32.mxu1 %vm9584_vm1, %v9583_v20 }
0x1ed0   :  { %8838 = vmatprep.subr.mxu1 %v9583_v20 }
0x1ed1   :  { %v4522_v21 = vpop.permute.xlu1 %4521 }
0x1ed2   :  { %8831 = vmatmul.mubr.msk.f32.vlgmr.msra.gmra.mrb[46].mxu1 %vm227_vm2, %v4522_v21 }
0x1ed3   :  { %8839 = vmatpush3.xpose.msk.msra.mxu1 %vm227_vm2, %v4703_v5  ;;  %8840 = vmatprep.mubr.msk.f32.mxu1 %vm9584_vm1, %v9583_v20 }
0x1ed4   :  { %v9466_v53 = vpop.eup %9465  ;;  %8848 = vmatprep.subr.mxu1 %v9583_v20 }
0x1ed5   :  { %v4116_v22 = vmul.f32 %v9466_v53, %v9464_v13  ;;  %v4865_v23 = vpop.permute.xlu1 %4864 }
0x1ed6   :  { %8841 = vmatmul.mubr.msk.f32.vlgmr.msra.gmra.mrb[48].mxu1 %vm227_vm2, %v4025_v4 }
0x1ed7   :  { %8849 = vmatpush3.xpose.msk.msra.mxu1 %vm227_vm2, %v4865_v23  ;;  %8806 = vmatmul.mubr.msk.f32.vlgmr.msra.gmra.mrb[54].mxu0 %vm302_vm3, %v4116_v22 }
0x1ed8   :  { %8809 = vmatpush3.xpose.msk.msra.mxu0 %vm227_vm2, %v4193_v15  ;;  %8850 = vmatprep.mubr.msk.f32.mxu1 %vm9584_vm1, %v9583_v20 }
0x1ed9   :  { %v5031_v24 = vpop.permute.xlu1 %5030  ;;  %8858 = vmatprep.subr.mxu1 %v9583_v20  ;;  %8810 = vmatprep.mubr.msk.f32.mxu0 %vm9584_vm1, %v9583_v20 }
0x1eda   :  { %8851 = vmatmul.mubr.msk.f32.vlgmr.msra.gmra.mrb[50].mxu1 %vm227_vm2, %v4863_v10  ;;  %8813 = vmatprep.subr.mxu0 %v9583_v20 }
0x1edb   :  { %8859 = vmatpush3.xpose.msk.msra.mxu1 %vm227_vm2, %v5031_v24  ;;  %8811 = vmatmul.mubr.msk.f32.vlgmr.msra.gmra.mrb[56].mxu0 %vm227_vm2, %v10716_v2 }
0x1edc   :  { %8860 = vmatprep.mubr.msk.f32.mxu1 %vm9584_vm1, %v9583_v20  ;;  %8868 = vmatprep.subr.mxu1 %v9583_v20 }
0x1edd   :  { %v5196_v27 = vpop.permute.xlu1 %5195  ;;  %8815 = vmatprep.mubr.msk.f32.mxu0 %vm9584_vm1, %v9583_v20 }
0x1ede   :  { %8861 = vmatmul.mubr.msk.f32.vlgmr.msra.gmra.mrb[52].mxu1 %vm227_vm2, %v5029_v25 }
0x1edf   :  { %8869 = vmatpush3.xpose.msk.msra.mxu1 %vm227_vm2, %v5196_v27  ;;  %8870 = vmatprep.mubr.msk.f32.mxu1 %vm9584_vm1, %v9583_v20 }
0x1ee2   :  { %8871 = vmatmul.mubr.msk.f32.vlgmr.msra.gmra.mrb[54].mxu1 %vm227_vm2, %v5194_v29 }
0x1fa1   :  { %v4430_v30 = vpop.f32.mrb[44].mxu1 }
0x1fa2   :  { %v4431_v31 = vadd.f32 %v4430_v30, %v9801_v54  ;;  %v8822_v32 = vpop.f32.mrb[45].mxu1 }
0x1fa4   :  { %v4434_v35 = vsel %vm302_vm3, %v4431_v31, -inf }
0x1fa5   :  { %4435 = vmax.xlane.f32.xlu0 %v4434_v35  ;;  %v4595_v48 = vpop.f32.mrb[46].mxu1 }
0x1fa6   :  { %v4596_v36 = vadd.f32 %v4595_v48, %v9801_v54  ;;  %v8832_v37 = vpop.f32.mrb[47].mxu1 }
0x1fa8   :  { %v4599_v38 = vsel %vm302_vm3, %v4596_v36, -inf }
0x1fa9   :  { %4600 = vmax.xlane.f32.xlu0 %v4599_v38  ;;  %v4774_v39 = vpop.f32.mrb[48].mxu1 }
0x1faa   :  { %v10777_v42 = vpop.f32.mrb[54].mxu0  ;;  %v8842_v44 = vpop.f32.mrb[49].mxu1  ;;  %v4775_v60 = vadd.f32 %v4774_v39, %v9891_v63 }
0x1fab   :  { %v8807_v45 = vpop.f32.mrb[55].mxu0  ;;  %v4027_v44 = vadd.f32 %v10724_v33, %v10708_v62 }
0x1fac   :  { %v4778_v2 = vsel %vm302_vm3, %v4775_v60, -inf }
0x1fad   :  { %v4936_v47 = vpop.f32.mrb[50].mxu1 }
0x1fae   :  { %v4937_v51 = vadd.f32 %v4936_v47, %v9891_v63  ;;  %v4264_v52 = vpop.f32.mrb[56].mxu0  ;;  %v8852_v55 = vpop.f32.mrb[51].mxu1 }
0x1faf   :  { %v10781_v57 = vadd.f32 %v4264_v52, %v9801_v54  ;;  %v8812_v58 = vpop.f32.mrb[57].mxu0 }
0x1fb0   :  { %v4940_v59 = vsel %vm302_vm3, %v4937_v51, -inf }
0x1fb1   :  { %4941 = vmax.xlane.f32.xlu0 %v4940_v59  ;;  %v5102_v46 = vpop.f32.mrb[52].mxu1  ;;  %v4268_v50 = vsel %vm302_vm3, %v10781_v57, -inf }
0x1fb2   :  { %4269 = vmax.xlane.f32.xlu1 %v4268_v50  ;;  %v8862_v19 = vpop.f32.mrb[53].mxu1  ;;  %v5103_v61 = vadd.f32 %v5102_v46, %v9891_v63 }
0x1fb4   :  { %v5106_v6 = vsel %vm302_vm3, %v5103_v61, -inf }
0x1fb5   :  { %v5267_v0 = vpop.f32.mrb[54].mxu1 }
0x1fb6   :  { %v5268_v56 = vadd.f32 %v5267_v0, %v9891_v63  ;;  %4779 = vmax.xlane.f32.xlu1 %v4778_v2  ;;  %v8872_v3 = vpop.f32.mrb[55].mxu1 }
0x1fb8   :  { %v5271_v4 = vsel %vm302_vm3, %v5268_v56, -inf }
0x1fb9   :  { %5272 = vmax.xlane.f32.xlu0 %v5271_v4 }
0x1fba   :  { %5107 = vmax.xlane.f32.xlu1 %v5106_v6 }
0x2032   :  { %v4436_v8 = vpop.xlane.xlu0 %4435 }
0x2033   :  { %v4437_v9 = vsub.f32 %v4431_v31, %v4436_v8 }
0x2035   :  { %v4438_v40 = vmul.f32 1.442695, %v4437_v9 }
0x2036   :  { %v4601_v26 = vpop.xlane.xlu0 %4600 }
0x2037   :  { %9467 = vpow2.f32 %v4438_v40  ;;  %v4602_v18 = vsub.f32 %v4596_v36, %v4601_v26 }
0x2039   :  { %v4603_v12 = vmul.f32 1.442695, %v4602_v18 }
0x203b   :  { %9469 = vpow2.f32 %v4603_v12 }
0x203e   :  { %v4942_v13 = vpop.xlane.xlu0 %4941 }
0x203f   :  { %v4943_v14 = vsub.f32 %v4937_v51, %v4942_v13  ;;  %v4270_v15 = vpop.xlane.xlu1 %4269 }
0x2040   :  { %v4271_v45 = vsub.f32 %v10781_v57, %v4270_v15 }
0x2041   :  { %v10792_v7 = vpop.eup %9467  ;;  %v4944_v16 = vmul.f32 1.442695, %v4943_v14 }
0x2042   :  { %v4440_v28 = vsel %vm302_vm3, %v10792_v7, 0.0  ;;  %v4272_v47 = vmul.f32 1.442695, %v4271_v45 }
0x2043   :  { %9471 = vpow2.f32 %v4944_v16  ;;  %v4780_v5 = vpop.xlane.xlu1 %4779  ;;  %4441 = vadd.xlane.f32.xlu0 %v4440_v28  ;;  %v8056_v16 = vld [vmem:[%s11692_s6 + $0x88] sm:$0xff] }
0x2044   :  { %v4781_v21 = vsub.f32 %v4775_v60, %v4780_v5  ;;  %v8057_v5 = vld [vmem:[%s11692_s6 + $0x90] sm:$0xff] }
0x2045   :  { %v10796_v53 = vpop.eup %9469 }
0x2046   :  { %v4782_v10 = vmul.f32 1.442695, %v4781_v21  ;;  %v5273_v22 = vpop.xlane.xlu0 %5272  ;;  %v4605_v23 = vsel %vm302_vm3, %v10796_v53, 0.0  ;;  %v8058_v21 = vld [vmem:[%s11692_s6 + $0x98] sm:$0xff] }
0x2047   :  { %v5274_v24 = vsub.f32 %v5268_v56, %v5273_v22  ;;  %v5108_v25 = vpop.xlane.xlu1 %5107  ;;  %4606 = vadd.xlane.f32.xlu1 %v4605_v23  ;;  %v8059_v23 = vld [vmem:[%s11692_s6 + $0xa0] sm:$0xff] }
0x2048   :  { %9473 = vpow2.f32 %v4782_v10  ;;  %v5109_v27 = vsub.f32 %v5103_v61, %v5108_v25 }
0x2049   :  { %v5275_v29 = vmul.f32 1.442695, %v5274_v24  ;;  %v8060_v24 = vld [vmem:[%s11692_s6 + $0xa8] sm:$0xff] }
0x204a   :  { %v5110_v30 = vmul.f32 1.442695, %v5109_v27  ;;  %v9180_v27 = vpack.c.bf16 %v8060_v24, %v8059_v23  ;;  %v8080_v24 = vld [vmem:[%s11696_s10 + $0x148] sm:$0xff] }
0x204b   :  { %9475 = vpow2.f32 %v5275_v29 }
0x204c   :  { %9477 = vpow2.f32 %v5110_v30  ;;  %v8061_v30 = vld [vmem:[%s11692_s6 + $0xb0] sm:$0xff] }
0x204d   :  { %v10800_v31 = vpop.eup %9471  ;;  %9479 = vpow2.f32 %v4272_v47 }
0x204e   :  { %v4946_v32 = vsel %vm302_vm3, %v10800_v31, 0.0 }
0x204f   :  { %4947 = vadd.xlane.f32.xlu1 %v4946_v32 }
0x2052   :  { %v9474_v35 = vpop.eup %9473 }
0x2053   :  { %v4784_v48 = vsel %vm302_vm3, %v9474_v35, 0.0 }
0x2054   :  { %4785 = vadd.xlane.f32.xlu0 %v4784_v48 }
0x2055   :  { %v10805_v36 = vpop.eup %9475 }
0x2056   :  { %v10807_v37 = vpop.eup %9477  ;;  %v5277_v38 = vsel %vm302_vm3, %v10805_v36, 0.0 }
0x2057   :  { %5278 = vadd.xlane.f32.xlu1 %v5277_v38  ;;  %v5112_v39 = vsel %vm302_vm3, %v10807_v37, 0.0  ;;  %v9480_v51 = vpop.eup %9479 }
0x2058   :  { %5113 = vadd.xlane.f32.xlu0 %v5112_v39  ;;  %v4274_v52 = vsel %vm302_vm3, %v9480_v51, 0.0 }
0x2068   :  { %4445 = vrot.lane.b32.xlu1 %v10713_v1, %s11727_s25 }
0x206e   :  { %4280 = vrot.lane.b32.xlu0 %v10713_v1, %s11716_s0 }
0x2072   :  { %4952 = vrot.lane.b32.xlu0 %v4027_v44, %s11716_s0 }
0x2076   :  { %5282 = vrot.lane.b32.xlu0 %v4027_v44, %s11724_s24 }
0x208c   :  { %4275 = vadd.xlane.f32.xlu1 %v4274_v52 }
0x209d   :  { %4610 = vrot.lane.b32.xlu1 %v10713_v1, %s11724_s24 }
0x20a1   :  { %5117 = vrot.lane.b32.xlu1 %v4027_v44, %s11727_s25 }
0x20d0   :  { %v4442_v55 = vpop.xlane.xlu0 %4441 }
0x20d4   :  { %v4607_v57 = vpop.xlane.xlu1 %4606 }
0x20dc   :  { %v4948_v59 = vpop.xlane.xlu1 %4947 }
0x20e1   :  { %v4786_v58 = vpop.xlane.xlu0 %4785 }
0x20e4   :  { %v5279_v60 = vpop.xlane.xlu1 %5278 }
0x20e5   :  { %v5114_v62 = vpop.xlane.xlu0 %5113 }
0x20e8   :  { %v4446_v46 = vpop.permute.xlu1 %4445 }
0x20e9   :  { %v4281_v33 = vpop.permute.xlu0 %4280 }
0x20ea   :  { %8814 = vmatpush3.msra.mxu0 %v4281_v33 }
0x20eb   :  { %8823 = vmatprep.subr.mxu0 %v9583_v20 }
0x20ed   :  { %v4953_v9 = vpop.permute.xlu0 %4952 }
0x20f1   :  { %v5283_v14 = vpop.permute.xlu0 %5282 }
0x2119   :  { %v4276_v50 = vpop.xlane.xlu1 %4275 }
0x211a   :  { %9481 = vrcp.f32 %v4276_v50 }
0x211b   :  { %9483 = vrcp.f32 %v4442_v55 }
0x211c   :  { %9485 = vrcp.f32 %v4607_v57 }
0x211d   :  { %9487 = vrcp.f32 %v4786_v58  ;;  %v4611_v56 = vpop.permute.xlu1 %4610 }
0x211e   :  { %9489 = vrcp.f32 %v4948_v59 }
0x211f   :  { %9491 = vrcp.f32 %v5114_v62 }
0x2120   :  { %9493 = vrcp.f32 %v5279_v60 }
0x2121   :  { %v5118_v18 = vpop.permute.xlu1 %5117 }
0x2124   :  { %v9482_v19 = vpop.eup %9481 }
0x2125   :  { %v4278_v1 = vmul.f32 %v9482_v19, %v9480_v51  ;;  %v9484_v61 = vpop.eup %9483 }
0x2126   :  { %v4444_v0 = vmul.f32 %v9484_v61, %v10792_v7  ;;  %v9486_v2 = vpop.eup %9485  ;;  %v8055_v7 = vld [vmem:[%s11692_s6 + $0x80] sm:$0xff] }
0x2127   :  { %8816 = vmatmul.mubr.msk.f32.vlgmr.msra.gmra.mrb[58].mxu0 %vm302_vm3, %v4278_v1  ;;  %v4609_v3 = vmul.f32 %v9486_v2, %v10796_v53  ;;  %v9488_v4 = vpop.eup %9487  ;;  %v9172_v28 = vpack.c.bf16 %v8056_v16, %v8055_v7  ;;  %v9176_v53 = vpack.c.bf16 %v8058_v21, %v8057_v5  ;;  %v8071_v7 = vld [vmem:[%s11696_s10 + $0x100] sm:$0xff]  ;;  %v8073_v16 = vld [vmem:[%s11696_s10 + $0x110] sm:$0xff]  ;;  %v8076_v5 = vld [vmem:[%s11696_s10 + $0x128] sm:$0xff] }
0x2128   :  { %8824 = vmatpush3.msra.mxu0 %v4446_v46  ;;  %8825 = vmatprep.mubr.msk.f32.mxu0 %vm9584_vm1, %v9583_v20  ;;  %v4788_v6 = vmul.f32 %v9488_v4, %v9474_v35  ;;  %v9490_v8 = vpop.eup %9489  ;;  %v8078_v21 = vld [vmem:[%s11696_s10 + $0x138] sm:$0xff] }
0x2129   :  { %8833 = vmatprep.subr.mxu0 %v9583_v20  ;;  %v4950_v40 = vmul.f32 %v9490_v8, %v10800_v31  ;;  %v9492_v26 = vpop.eup %9491  ;;  %9173 = vmatprep.subr.bf16.mxu1 %v9172_v28  ;;  %v8062_v31 = vld [vmem:[%s11692_s6 + $0xb8] sm:$0xff] }
0x212a   :  { %v5116_v12 = vmul.f32 %v9492_v26, %v10807_v37  ;;  %v9494_v13 = vpop.eup %9493  ;;  %9175 = vmatpush3.bf16.msra.mxu1 %v9172_v28  ;;  %v9184_v35 = vpack.c.bf16 %v8062_v31, %v8061_v30  ;;  %v9190_v28 = vpack.c.bf16 %v8073_v16, %v8071_v7  ;;  %v8081_v30 = vld [vmem:[%s11696_s10 + $0x150] sm:$0xff] }
0x212b   :  { %8826 = vmatmul.mubr.msk.f32.vlgmr.msra.gmra.mrb[60].mxu0 %vm302_vm3, %v4444_v0  ;;  %v5281_v15 = vmul.f32 %v9494_v13, %v10805_v36  ;;  %9177 = vmatprep.subr.bf16.mxu1 %v9176_v53  ;;  %v8072_v13 = vld [vmem:[%s11696_s10 + $0x108] sm:$0xff]  ;;  %v8096_v16 = vld [vmem:[%s11698_s12 + $0x230] sm:$0xff] }
0x212c   :  { %8834 = vmatpush3.msra.mxu0 %v4611_v56  ;;  %8835 = vmatprep.mubr.msk.f32.mxu0 %vm9584_vm1, %v9583_v20 }
0x212d   :  { %8843 = vmatprep.subr.mxu0 %v9583_v20 }
0x212e   :  { %9179 = vmatpush3.bf16.msra.mxu1 %v9176_v53  ;;  %v9192_v53 = vpack.c.bf16 %v8078_v21, %v8076_v5  ;;  %v8114_v21 = vld [vmem:[%s11698_s12 + $0x2c0] sm:$0xff] }
0x212f   :  { %8836 = vmatmul.mubr.msk.f32.vlgmr.msra.gmra.mrb[62].mxu0 %vm302_vm3, %v4609_v3  ;;  %9181 = vmatprep.subr.bf16.mxu1 %v9180_v27 }
0x2130   :  { %8844 = vmatpush3.msra.mxu0 %v4027_v44  ;;  %8845 = vmatprep.mubr.msk.f32.mxu0 %vm9584_vm1, %v9583_v20 }
0x2131   :  { %8853 = vmatprep.subr.mxu0 %v9583_v20 }
0x2132   :  { %9183 = vmatpush3.bf16.msra.mxu1 %v9180_v27 }
0x2133   :  { %8846 = vmatmul.mubr.msk.f32.vlgmr.msra.gmra.mrb[64].mxu0 %vm302_vm3, %v4788_v6  ;;  %9185 = vmatprep.subr.bf16.mxu1 %v9184_v35 }
0x2134   :  { %8854 = vmatpush3.msra.mxu0 %v4953_v9  ;;  %8855 = vmatprep.mubr.msk.f32.mxu0 %vm9584_vm1, %v9583_v20 }
0x2135   :  { %8863 = vmatprep.subr.mxu0 %v9583_v20 }
0x2136   :  { %9187 = vmatpush3.bf16.msra.mxu1 %v9184_v35  ;;  %v8086_v35 = vld [vmem:[%s11696_s10 + $0x178] sm:$0xff] }
0x2137   :  { %8856 = vmatmul.mubr.msk.f32.vlgmr.msra.gmra.mrb[66].mxu0 %vm302_vm3, %v4950_v40 }
0x2138   :  { %8864 = vmatpush3.msra.mxu0 %v5118_v18  ;;  %8865 = vmatprep.mubr.msk.f32.mxu0 %vm9584_vm1, %v9583_v20 }
0x2139   :  { %8873 = vmatprep.subr.mxu0 %v9583_v20 }
0x213b   :  { %8866 = vmatmul.mubr.msk.f32.vlgmr.msra.gmra.mrb[68].mxu0 %vm302_vm3, %v5116_v12 }
0x213c   :  { %8874 = vmatpush3.msra.mxu0 %v5283_v14  ;;  %8875 = vmatprep.mubr.msk.f32.mxu0 %vm9584_vm1, %v9583_v20  ;;  %v8074_v14 = vld [vmem:[%s11696_s10 + $0x118] sm:$0xff] }
0x213f   :  { %8876 = vmatmul.mubr.msk.f32.vlgmr.msra.gmra.mrb[70].mxu0 %vm302_vm3, %v5281_v15  ;;  %v9188_v15 = vpack.c.bf16 %v8074_v14, %v8072_v13  ;;  %v8112_v14 = vld [vmem:[%s11698_s12 + $0x2b0] sm:$0xff] }
0x2140   :  { %5619 = vmatprep.mubr.f32.mxu0 %v9583_v20 }
0x2141   :  { %9189 = vmatprep.subr.bf16.mxu0 %v9188_v15  ;;  %v8113_v15 = vld [vmem:[%s11698_s12 + $0x2b8] sm:$0xff] }
0x2142   :  { %9191 = vmatpush1.bf16.msra.mxu0 %v9190_v28  ;;  %v9216_v7 = vpack.c.bf16 %v8113_v15, %v8112_v14  ;;  %v8097_v28 = vld [vmem:[%s11698_s12 + $0x238] sm:$0xff] }
0x2143   :  { %9193 = vmatprep.subr.bf16.mxu0 %v9192_v53  ;;  %v9218_v5 = vpack.c.bf16 %v8097_v28, %v8096_v16  ;;  %v8115_v53 = vld [vmem:[%s11698_s12 + $0x2c8] sm:$0xff] }
0x21fa   :  { %v4352_v10 = vpop.f32.mrb[58].mxu0 }
0x21fb   :  { %4687 = vrot.lane.b32.xlu1 %v4352_v10, %s11726_s19  ;;  %v8817_v22 = vpop.f32.mrb[59].mxu0  ;;  %v8075_v10 = vld [vmem:[%s11696_s10 + $0x120] sm:$0xff] }
0x21fc   :  { %v8077_v22 = vld [vmem:[%s11696_s10 + $0x130] sm:$0xff] }
0x21fd   :  { %v9194_v23 = vpack.c.bf16 %v8077_v22, %v8075_v10  ;;  %v9220_v10 = vpack.c.bf16 %v8115_v53, %v8114_v21  ;;  %v8098_v22 = vld [vmem:[%s11698_s12 + $0x240] sm:$0xff] }
0x21fe   :  { %v4517_v25 = vpop.f32.mrb[60].mxu0 }
0x21ff   :  { %4691 = vrot.lane.b32.xlu0 %v4517_v25, %s11714_s20  ;;  %v8827_v29 = vpop.f32.mrb[61].mxu0  ;;  %9195 = vmatpush1.bf16.msra.mxu0 %v9194_v23  ;;  %v8082_v25 = vld [vmem:[%s11696_s10 + $0x158] sm:$0xff]  ;;  %v8099_v23 = vld [vmem:[%s11698_s12 + $0x248] sm:$0xff] }
0x2200   :  { %v9196_v27 = vpack.c.bf16 %v8082_v25, %v8080_v24  ;;  %v8079_v29 = vld [vmem:[%s11696_s10 + $0x140] sm:$0xff]  ;;  %v9222_v24 = vpack.c.bf16 %v8099_v23, %v8098_v22  ;;  %v8116_v25 = vld [vmem:[%s11698_s12 + $0x2d0] sm:$0xff] }
0x2201   :  { %v9198_v31 = vpack.c.bf16 %v8081_v30, %v8079_v29  ;;  %v8100_v30 = vld [vmem:[%s11698_s12 + $0x250] sm:$0xff] }
0x2202   :  { %v4682_v32 = vpop.f32.mrb[62].mxu0  ;;  %9197 = vmatprep.subr.bf16.mxu0 %v9196_v27  ;;  %v8117_v27 = vld [vmem:[%s11698_s12 + $0x2d8] sm:$0xff] }
0x2203   :  { %4695 = vrot.lane.b32.xlu0 %v4682_v32, %s11725_s27  ;;  %v8837_v48 = vpop.f32.mrb[63].mxu0  ;;  %9199 = vmatpush1.bf16.msra.mxu0 %v9198_v31  ;;  %v8084_v32 = vld [vmem:[%s11696_s10 + $0x168] sm:$0xff]  ;;  %v9224_v29 = vpack.c.bf16 %v8117_v27, %v8116_v25  ;;  %v8101_v31 = vld [vmem:[%s11698_s12 + $0x258] sm:$0xff] }
0x2204   :  { %v8083_v48 = vld [vmem:[%s11696_s10 + $0x160] sm:$0xff] }
0x2206   :  { %v4858_v36 = vpop.f32.mrb[64].mxu0 }
0x2207   :  { %v8847_v37 = vpop.f32.mrb[65].mxu0 }
0x2208   :  { %v8085_v37 = vld [vmem:[%s11696_s10 + $0x170] sm:$0xff] }
0x220a   :  { %v5024_v38 = vpop.f32.mrb[66].mxu0 }
0x220b   :  { %5359 = vrot.lane.b32.xlu1 %v5024_v38, %s11726_s19  ;;  %v8857_v39 = vpop.f32.mrb[67].mxu0  ;;  %v9202_v38 = vpack.c.bf16 %v8085_v37, %v8083_v48  ;;  %v8119_v48 = vld [vmem:[%s11698_s12 + $0x2e8] sm:$0xff]  ;;  %v8102_v37 = vld [vmem:[%s11698_s12 + $0x260] sm:$0xff] }
0x220e   :  { %v5189_v44 = vpop.f32.mrb[68].mxu0 }
0x220f   :  { %5363 = vrot.lane.b32.xlu1 %v5189_v44, %s11714_s20  ;;  %v8867_v45 = vpop.f32.mrb[69].mxu0 }
0x2212   :  { %v5354_v47 = vpop.f32.mrb[70].mxu0 }
0x2213   :  { %5367 = vrot.lane.b32.xlu0 %v5354_v47, %s11725_s27  ;;  %v8877_v51 = vpop.f32.mrb[71].mxu0 }
0x226d   :  { %v4688_v52 = vpop.permute.xlu1 %4687 }
0x226e   :  { %v4698_v58 = vsel %vm227_vm2, %v10777_v42, %v4688_v52  ;;  %v8064_v42 = vld [vmem:[%s11693_s7 + $0x2] ss:$0 sm:$0xff] }
0x2271   :  { %v4692_v55 = vpop.permute.xlu0 %4691 }
0x2272   :  { %v4699_v62 = vsel %vm896_vm4, %v4698_v58, %v4692_v55 }
0x2275   :  { %v4696_v33 = vpop.permute.xlu0 %4695 }
0x2276   :  { %v4700_v57 = vsel %vm898_vm5, %v4699_v62, %v4696_v33  ;;  %v10960_v33 = vld [vmem:[%s11694_s8 + $0x2] ss:$0 sm:$0xff] }
0x2277   :  { %8894 = vmatprep.mubr.msk.f32.mxu1 %vm65_vm0, %v4700_v57 }
0x227d   :  { %v5360_v59 = vpop.permute.xlu1 %5359 }
0x227e   :  { %v5370_v46 = vsel %vm227_vm2, %v4858_v36, %v5360_v59  ;;  %v9200_v36 = vpack.c.bf16 %v8086_v35, %v8084_v32  ;;  %v10965_v59 = vld [vmem:[%s11695_s9 + $0x2] ss:$0 sm:$0xff]  ;;  %v9226_v32 = vpack.c.bf16 %v8101_v31, %v8100_v30 }
0x227f   :  { %v8118_v35 = vld [vmem:[%s11698_s12 + $0x2e0] sm:$0xff] }
0x2280   :  { %9201 = vmatprep.subr.bf16.mxu0 %v9200_v36  ;;  %v9228_v36 = vpack.c.bf16 %v8119_v48, %v8118_v35  ;;  %v8123_v30 = vld [vmem:[%s11699_s13 + $0x2] ss:$0 sm:$0xff] }
0x2281   :  { %v5364_v60 = vpop.permute.xlu1 %5363  ;;  %9203 = vmatpush1.bf16.msra.mxu0 %v9202_v38  ;;  %v8103_v38 = vld [vmem:[%s11698_s12 + $0x268] sm:$0xff] }
0x2282   :  { %v5371_v50 = vsel %vm896_vm4, %v5370_v46, %v5364_v60 }
0x2285   :  { %v5368_v19 = vpop.permute.xlu0 %5367 }
0x2286   :  { %v5372_v1 = vsel %vm898_vm5, %v5371_v50, %v5368_v19  ;;  %v8106_v50 = vld [vmem:[%s11698_s12 + $0x280] sm:$0xff]  ;;  %v8107_v19 = vld [vmem:[%s11698_s12 + $0x288] sm:$0xff] }
0x2287   :  { %8895 = vmatmul.mubr.msk.f32.vlgmr.msra.gmra.mrb[56].mxu1 %vm65_vm0, %v5372_v1  ;;  %v8090_v1 = vld [vmem:[%s11698_s12 + $0x200] sm:$0xff] }
0x235a   :  { %v8896_v61 = vpop.f32.mrb[56].mxu1 }
0x235b   :  { %v5468_v0 = vadd.f32 %v8896_v61, %v8064_v42  ;;  %v5462_v2 = vpop.f32.mrb[57].mxu1  ;;  %v8091_v61 = vld [vmem:[%s11698_s12 + $0x208] sm:$0xff] }
0x235c   :  { %v5463_v56 = vadd.f32 %v8064_v42, %v5462_v2  ;;  %v9204_v42 = vpack.c.bf16 %v8107_v19, %v8106_v50  ;;  %v8109_v2 = vld [vmem:[%s11698_s12 + $0x298] sm:$0xff] }
0x235d   :  { %v5472_v26 = vadd.f32 %v5468_v0, %v10693_v41  ;;  %v8108_v0 = vld [vmem:[%s11698_s12 + $0x290] sm:$0xff] }
0x235e   :  { %v5471_v3 = vadd.f32 %v5463_v56, %v10688_v34  ;;  %v9206_v56 = vpack.c.bf16 %v8091_v61, %v8090_v1  ;;  %9205 = vmatprep.subr.bf16.mxu1 %v9204_v42  ;;  %v8087_v61 = vld [vmem:[%s11697_s11 + $0x4] sm:$0x3] }
0x235f   :  { %v5480_v12 = vsel %vm65_vm0, %v5472_v26, 0.0 }
0x2360   :  { %v5477_v4 = vsel %vm65_vm0, %v5471_v3, 0.0  ;;  %9207 = vmatpush3.bf16.msra.mxu1 %v9206_v56 }
0x2361   :  { %5478 = vadd.xlane.f32.xlu1 %v5477_v4  ;;  %v8092_v4 = vld [vmem:[%s11698_s12 + $0x210] sm:$0xff] }
0x23ee   :  { %v5479_v6 = vpop.xlane.xlu1 %5478 }
0x23ef   :  { %v5483_v8 = vmul.f32 0.015625, %v5479_v6  ;;  %v8093_v6 = vld [vmem:[%s11698_s12 + $0x218] sm:$0xff] }
0x23f1   :  { %v5485_v9 = vsub.f32 %v5471_v3, %v5483_v8  ;;  %v9208_v3 = vpack.c.bf16 %v8109_v2, %v8108_v0  ;;  %v8110_v8 = vld [vmem:[%s11698_s12 + $0x2a0] sm:$0xff]  ;;  %v5542_v0 = vrot.slane %v8087_v61, %v9763_v43  ;;  %v5546_v2 = vrot.slane %v8087_v61, %v9778_v49  ;;  %v8133_v61 = vld [vmem:[%s11690_s4 + $0x1a8] sm:$0xff] }
0x23f3   :  { %v5487_v40 = vmul.f32 %v5485_v9, %v5485_v9  ;;  %9209 = vmatprep.subr.bf16.mxu1 %v9208_v3 }
0x23f5   :  { %v5489_v18 = vsel %vm65_vm0, %v5487_v40, 0.0  ;;  %v9210_v40 = vpack.c.bf16 %v8093_v6, %v8092_v4 }
0x23f6   :  { %5490 = vadd.xlane.f32.xlu0 %v5489_v18  ;;  %v8094_v18 = vld [vmem:[%s11698_s12 + $0x220] sm:$0xff] }
0x23f7   :  { %9211 = vmatpush3.bf16.msra.mxu1 %v9210_v40 }
0x23fa   :  { %5481 = vadd.xlane.f32.xlu0 %v5480_v12  ;;  %v8095_v12 = vld [vmem:[%s11698_s12 + $0x228] sm:$0xff] }
0x23fb   :  { %v9214_v13 = vpack.c.bf16 %v8095_v12, %v8094_v18 }
0x2483   :  { %v5491_v39 = vpop.xlane.xlu0 %5490 }
0x2484   :  { %v5495_v44 = vmul.f32 0.015625, %v5491_v39  ;;  %v9230_v39 = vpack.c.bf16 %v8103_v38, %v8102_v37 }
0x2486   :  { %v5497_v45 = vadd.f32 1e-05, %v5495_v44  ;;  %v8120_v44 = vld [vmem:[%s11698_s12 + $0x2f0] sm:$0xff] }
0x2487   :  { %v5482_v47 = vpop.xlane.xlu0 %5481 }
0x2488   :  { %9495 = vrsqrt.f32 %v5497_v45  ;;  %v5484_v51 = vmul.f32 0.015625, %v5482_v47  ;;  %v8121_v45 = vld [vmem:[%s11698_s12 + $0x2f8] sm:$0xff] }
0x2489   :  { %v9232_v47 = vpack.c.bf16 %v8121_v45, %v8120_v44 }
0x248a   :  { %v10952_v52 = vsub.f32 %v5472_v26, %v5484_v51  ;;  %v8104_v51 = vld [vmem:[%s11698_s12 + $0x270] sm:$0xff] }
0x248c   :  { %v5488_v55 = vmul.f32 %v10952_v52, %v10952_v52 }
0x248e   :  { %v5492_v58 = vsel %vm65_vm0, %v5488_v55, 0.0  ;;  %v8105_v55 = vld [vmem:[%s11698_s12 + $0x278] sm:$0xff] }
0x248f   :  { %5493 = vadd.xlane.f32.xlu1 %v5492_v58  ;;  %v9234_v58 = vpack.c.bf16 %v8105_v55, %v8104_v51 }
0x2492   :  { %v9496_v62 = vpop.eup %9495 }
0x2493   :  { %v5501_v57 = vmul.f32 %v9496_v62, %v5485_v9  ;;  %v8111_v9 = vld [vmem:[%s11698_s12 + $0x2a8] sm:$0xff] }
0x2494   :  { %v9212_v26 = vpack.c.bf16 %v8111_v9, %v8110_v8 }
0x2495   :  { %v5509_v60 = vmul.f32 %v10960_v33, %v5501_v57 }
0x2496   :  { %9213 = vmatprep.subr.bf16.mxu1 %v9212_v26 }
0x2497   :  { %v10969_v46 = vadd.f32 %v10965_v59, %v5509_v60  ;;  %9215 = vmatpush3.bf16.msra.mxu1 %v9214_v13 }
0x2498   :  { %9217 = vmatprep.subr.bf16.mxu1 %v9216_v7 }
0x2499   :  { %8088 = vmatmul.mubr.msk.f32.vlgmr.msra.gmra.mrb[72].mxu0 %vm65_vm0, %v10969_v46 }
0x249a   :  { %5625 = vmatprep.mubr.f32.mxu0 %v9583_v20 }
0x249b   :  { %9219 = vmatpush3.bf16.msra.mxu1 %v9218_v5 }
0x249c   :  { %9221 = vmatprep.subr.bf16.mxu1 %v9220_v10 }
0x249f   :  { %9223 = vmatpush3.bf16.msra.mxu1 %v9222_v24 }
0x24a0   :  { %9225 = vmatprep.subr.bf16.mxu1 %v9224_v29 }
0x24a3   :  { %9227 = vmatpush3.bf16.msra.mxu1 %v9226_v32 }
0x24a4   :  { %9229 = vmatprep.subr.bf16.mxu1 %v9228_v36 }
0x24a7   :  { %9231 = vmatpush3.bf16.msra.mxu1 %v9230_v39 }
0x24a8   :  { %9233 = vmatprep.subr.bf16.mxu1 %v9232_v47 }
0x24ab   :  { %9235 = vmatpush3.bf16.msra.mxu1 %v9234_v58 }
0x24ac   :  { %8917 = vmatprep.subr.mxu1 %v9583_v20 }
0x251c   :  { %v5494_v62 = vpop.xlane.xlu1 %5493 }
0x251d   :  { %v5496_v57 = vmul.f32 0.015625, %v5494_v62 }
0x251f   :  { %v5498_v60 = vadd.f32 1e-05, %v5496_v57 }
0x2521   :  { %9497 = vrsqrt.f32 %v5498_v60  ;;  %v8131_v60 = vld [vmem:[%s11690_s4 + $0x198] sm:$0xff] }
0x252b   :  { %v9498_v50 = vpop.eup %9497 }
0x252c   :  { %v5502_v19 = vmul.f32 %v9498_v50, %v10952_v52 }
0x252e   :  { %v5510_v1 = vmul.f32 %v10960_v33, %v5502_v19  ;;  %v8128_v19 = vld [vmem:[%s11690_s4 + $0x180] sm:$0xff] }
0x2530   :  { %v5518_v42 = vadd.f32 %v10965_v59, %v5510_v1  ;;  %v8130_v1 = vld [vmem:[%s11690_s4 + $0x190] sm:$0xff] }
0x2532   :  { %8089 = vmatmul.mubr.msk.f32.gmra.mrb[74].mxu0 %vm65_vm0, %v5518_v42 }
0x2533   :  { %5919 = vmatprep.mubr.f32.mxu0 %v9583_v20 }
0x256c   :  { %v5621_v56 = vpop.f32.mrb[72].mxu0 }
0x256d   :  { %v5622_v3 = vadd.f32 %v5621_v56, %v5542_v0  ;;  %v5623_v4 = vpop.f32.mrb[73].mxu0  ;;  %v8132_v56 = vld [vmem:[%s11690_s4 + $0x1a0] sm:$0xff] }
0x256e   :  { %v5624_v52 = vadd.f32 %v5623_v4, %v5546_v2 }
0x256f   :  { %v5636_v6 = vmul.f32 0.70710677, %v5622_v3  ;;  %v5632_v18 = vmul.f32 0.5, %v5622_v3  ;;  %v8134_v3 = vld [vmem:[%s11690_s4 + $0x1b0] sm:$0xff] }
0x2570   :  { %v5637_v33 = vmul.f32 0.70710677, %v5624_v52  ;;  %v5633_v40 = vmul.f32 0.5, %v5624_v52  ;;  %v9242_v4 = vpack.c.bf16 %v8134_v3, %v8132_v56  ;;  %v8137_v52 = vld [vmem:[%s11690_s4 + $0x1c8] sm:$0xff] }
0x2571   :  { %9499 = verf.f32 %v5636_v6  ;;  %v8139_v6 = vld [vmem:[%s11690_s4 + $0x1d8] sm:$0xff] }
0x2572   :  { %9501 = verf.f32 %v5637_v33  ;;  %v9244_v33 = vpack.c.bf16 %v8139_v6, %v8137_v52 }
0x257b   :  { %v9500_v59 = vpop.eup %9499 }
0x257c   :  { %v9502_v8 = vpop.eup %9501  ;;  %v5644_v9 = vadd.f32 1.0, %v9500_v59  ;;  %v8136_v59 = vld [vmem:[%s11690_s4 + $0x1c0] sm:$0xff] }
0x257d   :  { %v5645_v26 = vadd.f32 1.0, %v9502_v8  ;;  %v8138_v8 = vld [vmem:[%s11690_s4 + $0x1d0] sm:$0xff] }
0x257e   :  { %v5648_v13 = vmul.f32 %v5644_v9, %v5632_v18  ;;  %v9246_v9 = vpack.c.bf16 %v8138_v8, %v8136_v59 }
0x257f   :  { %v5649_v12 = vmul.f32 %v5645_v26, %v5633_v40  ;;  %v8141_v40 = vld [vmem:[%s11690_s4 + $0x1e8] sm:$0xff]  ;;  %v8143_v26 = vld [vmem:[%s11690_s4 + $0x1f8] sm:$0xff] }
0x2580   :  { %v9248_v18 = vpack.c.bf16 %v8143_v26, %v8141_v40 }
0x2581   :  { %5757 = vmatprep.mubr.f32.mxu1 %v5649_v12  ;;  %v8140_v12 = vld [vmem:[%s11690_s4 + $0x1e0] sm:$0xff] }
0x2582   :  { %5758 = vmatmul.mubr.f32.vlgmr.msra.gmra.mrb[58].mxu1 %v5648_v13  ;;  %v8142_v13 = vld [vmem:[%s11690_s4 + $0x1f0] sm:$0xff] }
0x2605   :  { %v5627_v14 = vpop.f32.mrb[74].mxu0 }
0x2606   :  { %v5628_v15 = vadd.f32 %v5627_v14, %v5542_v0  ;;  %v5629_v7 = vpop.f32.mrb[75].mxu0  ;;  %v8135_v0 = vld [vmem:[%s11690_s4 + $0x1b8] sm:$0xff]  ;;  %v9250_v14 = vpack.c.bf16 %v8142_v13, %v8140_v12 }
0x2607   :  { %v5630_v16 = vadd.f32 %v5629_v7, %v5546_v2  ;;  %v9240_v2 = vpack.c.bf16 %v8135_v0, %v8133_v61 }
0x2608   :  { %v5638_v28 = vmul.f32 0.70710677, %v5628_v15  ;;  %v5634_v24 = vmul.f32 0.5, %v5628_v15 }
0x2609   :  { %v5639_v5 = vmul.f32 0.70710677, %v5630_v16  ;;  %v5635_v22 = vmul.f32 0.5, %v5630_v16 }
0x260a   :  { %9503 = verf.f32 %v5638_v28 }
0x260b   :  { %9505 = verf.f32 %v5639_v5 }
0x2614   :  { %v9504_v21 = vpop.eup %9503 }
0x2615   :  { %v9506_v53 = vpop.eup %9505  ;;  %v5646_v10 = vadd.f32 1.0, %v9504_v21 }
0x2616   :  { %v5647_v23 = vadd.f32 1.0, %v9506_v53 }
0x2617   :  { %v5650_v27 = vmul.f32 %v5646_v10, %v5634_v24 }
0x2618   :  { %v5651_v25 = vmul.f32 %v5647_v23, %v5635_v22  ;;  %v8126_v23 = vld [vmem:[%s11700_s14 + $0x2] ss:$0 sm:$0xff] }
0x261a   :  { %5762 = vmatprep.mubr.f32.mxu1 %v5651_v25  ;;  %v8127_v25 = vld [vmem:[%s11701_s15 + $0x2] ss:$0 sm:$0xff] }
0x261b   :  { %5763 = vmatmul.mubr.f32.gmra.mrb[60].mxu1 %v5650_v27 }
0x261c   :  { %8919 = vmatprep.mubr.msk.f32.mxu1 %vm9584_vm1, %v9583_v20 }
0x2655   :  { %v8479_v29 = vpop.f32.mrb[58].mxu1 }
0x2656   :  { %v8480_v31 = vpop.f32.mrb[59].mxu1 }
0x2657   :  { %v8481_v32 = vadd.f32 %v8480_v31, %v8479_v29 }
0x2659   :  { %v5760_v35 = vadd.f32 %v8481_v32, %v8123_v30 }
0x265b   :  { %v5768_v48 = vadd.f32 %v5760_v35, %v10969_v46  ;;  %v8129_v46 = vld [vmem:[%s11690_s4 + $0x188] sm:$0xff] }
0x265c   :  { %v9236_v50 = vpack.c.bf16 %v8131_v60, %v8129_v46 }
0x265d   :  { %v5774_v36 = vsel %vm65_vm0, %v5768_v48, 0.0 }
0x265e   :  { %5775 = vadd.xlane.f32.xlu0 %v5774_v36  ;;  %9237 = vmatprep.subr.bf16.mxu0 %v9236_v50 }
0x26eb   :  { %v5776_v37 = vpop.xlane.xlu0 %5775 }
0x26ec   :  { %v5780_v38 = vmul.f32 0.015625, %v5776_v37 }
0x26ee   :  { %v5782_v39 = vsub.f32 %v5768_v48, %v5780_v38  ;;  %v8482_v44 = vpop.f32.mrb[60].mxu1  ;;  %v8144_v38 = vld [vmem:[%s11691_s5 + $0x6] sm:$0x3] }
0x26ef   :  { %v8483_v45 = vpop.f32.mrb[61].mxu1 }
0x26f0   :  { %v8484_v47 = vadd.f32 %v8483_v45, %v8482_v44  ;;  %v5784_v51 = vmul.f32 %v5782_v39, %v5782_v39 }
0x26f2   :  { %v5765_v55 = vadd.f32 %v8484_v47, %v8123_v30  ;;  %v5786_v58 = vsel %vm65_vm0, %v5784_v51, 0.0  ;;  %v11166_v51 = vrot.slane %v8144_v38, %v9778_v49 }
0x26f3   :  { %5787 = vadd.xlane.f32.xlu1 %v5786_v58 }
0x26f4   :  { %v5769_v62 = vadd.f32 %v5765_v55, %v5518_v42  ;;  %v9238_v42 = vpack.c.bf16 %v8130_v1, %v8128_v19 }
0x26f6   :  { %v5777_v57 = vsel %vm65_vm0, %v5769_v62, 0.0  ;;  %9239 = vmatpush1.bf16.msra.mxu0 %v9238_v42 }
0x26f7   :  { %5778 = vadd.xlane.f32.xlu0 %v5777_v57  ;;  %9241 = vmatprep.subr.bf16.mxu0 %v9240_v2 }
0x26fa   :  { %9243 = vmatpush1.bf16.msra.mxu0 %v9242_v4 }
0x26fb   :  { %9245 = vmatprep.subr.bf16.mxu0 %v9244_v33 }
0x26fe   :  { %9247 = vmatpush1.bf16.msra.mxu0 %v9246_v9 }
0x26ff   :  { %9249 = vmatprep.subr.bf16.mxu0 %v9248_v18 }
0x2702   :  { %9251 = vmatpush1.bf16.msra.mxu0 %v9250_v14 }
0x2703   :  { %8897 = vmatprep.subr.mxu0 %v9583_v20 }
0x2780   :  { %v5788_v15 = vpop.xlane.xlu1 %5787 }
0x2781   :  { %v5792_v7 = vmul.f32 0.015625, %v5788_v15 }
0x2783   :  { %v5794_v16 = vadd.f32 1e-05, %v5792_v7 }
0x2784   :  { %v5779_v28 = vpop.xlane.xlu0 %5778 }
0x2785   :  { %9507 = vrsqrt.f32 %v5794_v16  ;;  %v5781_v5 = vmul.f32 0.015625, %v5779_v28 }
0x2787   :  { %v5783_v21 = vsub.f32 %v5769_v62, %v5781_v5 }
0x2789   :  { %v5785_v53 = vmul.f32 %v5783_v21, %v5783_v21 }
0x278b   :  { %v5789_v10 = vsel %vm65_vm0, %v5785_v53, 0.0 }
0x278c   :  { %5790 = vadd.xlane.f32.xlu1 %v5789_v10 }
0x278f   :  { %v9508_v22 = vpop.eup %9507 }
0x2790   :  { %v5798_v24 = vmul.f32 %v9508_v22, %v5782_v39  ;;  %v5843_v39 = vrot.slane %v8144_v38, %v9763_v43 }
0x2792   :  { %v5806_v27 = vmul.f32 %v8126_v23, %v5798_v24 }
0x2794   :  { %v11146_v29 = vadd.f32 %v8127_v25, %v5806_v27 }
0x2796   :  { %8145 = vmatmul.mubr.msk.f32.vlgmr.msra.gmra.mrb[76].mxu0 %vm65_vm0, %v11146_v29 }
0x2797   :  { %5925 = vmatprep.mubr.f32.mxu0 %v9583_v20 }
0x2819   :  { %v5791_v30 = vpop.xlane.xlu1 %5790 }
0x281a   :  { %v5793_v31 = vmul.f32 0.015625, %v5791_v30 }
0x281c   :  { %v5795_v32 = vadd.f32 1e-05, %v5793_v31 }
0x281e   :  { %9509 = vrsqrt.f32 %v5795_v32 }
0x2828   :  { %v9510_v35 = vpop.eup %9509 }
0x2829   :  { %v5799_v48 = vmul.f32 %v9510_v35, %v5783_v21 }
0x282b   :  { %v5807_v36 = vmul.f32 %v8126_v23, %v5799_v48 }
0x282d   :  { %v11151_v37 = vadd.f32 %v8127_v25, %v5807_v36 }
0x282f   :  { %8146 = vmatmul.mubr.msk.f32.gmra.mrb[78].mxu0 %vm65_vm0, %v11151_v37 }
0x2830   :  { %8899 = vmatprep.mubr.msk.f32.mxu0 %vm9584_vm1, %v9583_v20 }
0x2869   :  { %v5921_v44 = vpop.f32.mrb[76].mxu0 }
0x286a   :  { %v5922_v45 = vadd.f32 %v5921_v44, %v5843_v39  ;;  %v5923_v47 = vpop.f32.mrb[77].mxu0 }
0x286b   :  { %v11171_v58 = vadd.f32 %v5923_v47, %v11166_v51 }
0x286c   :  { %5933 = vrot.lane.b32.xlu0 %v5922_v45, %s9586_s26 }
0x2870   :  { %6093 = vrot.lane.b32.xlu0 %v5922_v45, %s11728_s2 }
0x2874   :  { %6261 = vrot.lane.b32.xlu0 %v5922_v45, %s11729_s23 }
0x2878   :  { %6426 = vrot.lane.b32.xlu0 %v5922_v45, %s11726_s19 }
0x28de   :  { %v5934_v55 = vpop.permute.xlu0 %5933 }
0x28df   :  { %8898 = vmatpush3.xpose.msk.msra.mxu0 %vm227_vm2, %v5934_v55 }
0x28e0   :  { %8902 = vmatprep.subr.mxu0 %v9583_v20 }
0x28e2   :  { %8900 = vmatmul.mubr.msk.f32.vlgmr.msra.gmra.mrb[80].mxu0 %vm227_vm2, %v5922_v45  ;;  %v11174_v62 = vpop.permute.xlu0 %6093 }
0x28e3   :  { %8903 = vmatpush3.msra.mxu0 %v11171_v58  ;;  %8904 = vmatprep.mubr.msk.f32.mxu0 %vm9584_vm1, %v9583_v20 }
0x28e4   :  { %8907 = vmatprep.subr.mxu0 %v9583_v20 }
0x28e6   :  { %v6262_v57 = vpop.permute.xlu0 %6261 }
0x28e7   :  { %8918 = vmatpush3.xpose.msk.msra.mxu1 %vm227_vm2, %v6262_v57 }
0x28e8   :  { %8927 = vmatprep.subr.mxu1 %v9583_v20 }
0x28ea   :  { %v6427_v33 = vpop.permute.xlu0 %6426 }
0x2902   :  { %v5927_v46 = vpop.f32.mrb[78].mxu0 }
0x2903   :  { %v5928_v60 = vadd.f32 %v5927_v46, %v5843_v39  ;;  %v11182_v50 = vpop.f32.mrb[79].mxu0 }
0x2905   :  { %6605 = vrot.lane.b32.xlu0 %v5928_v60, %s9586_s26 }
0x2909   :  { %6765 = vrot.lane.b32.xlu0 %v5928_v60, %s11728_s2 }
0x290d   :  { %6931 = vrot.lane.b32.xlu0 %v5928_v60, %s11727_s25 }
0x2911   :  { %7096 = vrot.lane.b32.xlu0 %v5928_v60, %s11724_s24 }
0x2977   :  { %v6606_v8 = vpop.permute.xlu0 %6605 }
0x297b   :  { %v6766_v26 = vpop.permute.xlu0 %6765 }
0x297f   :  { %v6932_v14 = vpop.permute.xlu0 %6931 }
0x2983   :  { %v7097_v7 = vpop.permute.xlu0 %7096 }
0x29b5   :  { %v6005_v19 = vpop.f32.mrb[80].mxu0 }
0x29b6   :  { %v6006_v1 = vadd.f32 %v6005_v19, %v9801_v54  ;;  %v8901_v42 = vpop.f32.mrb[81].mxu0 }
0x29b8   :  { %v6009_v61 = vsel %vm302_vm3, %v6006_v1, -inf }
0x29b9   :  { %6010 = vmax.xlane.f32.xlu1 %v6009_v61 }
0x29ca   :  { %6095 = vrot.lane.b32.xlu1 %v5922_v45, %s11725_s27 }
0x2a46   :  { %v6011_v0 = vpop.xlane.xlu1 %6010 }
0x2a47   :  { %v6012_v2 = vsub.f32 %v6006_v1, %v6011_v0 }
0x2a49   :  { %v6013_v56 = vmul.f32 1.442695, %v6012_v2 }
0x2a4a   :  { %v6096_v52 = vpop.permute.xlu1 %6095 }
0x2a4b   :  { %9511 = vpow2.f32 %v6013_v56 }
0x2a55   :  { %v9512_v3 = vpop.eup %9511 }
0x2a56   :  { %v6015_v4 = vsel %vm302_vm3, %v9512_v3, 0.0 }
0x2a57   :  { %6016 = vadd.xlane.f32.xlu1 %v6015_v4 }
0x2a68   :  { %6259 = vrot.lane.b32.xlu1 %v5922_v45, %s11727_s25 }
0x2a6c   :  { %6424 = vrot.lane.b32.xlu1 %v5922_v45, %s11724_s24 }
0x2a70   :  { %6767 = vrot.lane.b32.xlu1 %v5928_v60, %s11725_s27 }
0x2a74   :  { %6933 = vrot.lane.b32.xlu1 %v5928_v60, %s11729_s23 }
0x2a78   :  { %7098 = vrot.lane.b32.xlu1 %v5928_v60, %s11726_s19 }
0x2ae4   :  { %v6017_v6 = vpop.xlane.xlu1 %6016 }
0x2ae5   :  { %9513 = vrcp.f32 %v6017_v6 }
0x2ae8   :  { %v6260_v59 = vpop.permute.xlu1 %6259 }
0x2ae9   :  { %8920 = vmatmul.mubr.msk.f32.vlgmr.msra.gmra.mrb[62].mxu1 %vm227_vm2, %v6260_v59 }
0x2aea   :  { %8928 = vmatpush3.xpose.msk.msra.mxu1 %vm227_vm2, %v6427_v33  ;;  %8929 = vmatprep.mubr.msk.f32.mxu1 %vm9584_vm1, %v9583_v20 }
0x2aeb   :  { %8937 = vmatprep.subr.mxu1 %v9583_v20 }
0x2aec   :  { %v6425_v9 = vpop.permute.xlu1 %6424 }
0x2aed   :  { %8930 = vmatmul.mubr.msk.f32.vlgmr.msra.gmra.mrb[64].mxu1 %vm227_vm2, %v6425_v9 }
0x2aee   :  { %8938 = vmatpush3.xpose.msk.msra.mxu1 %vm227_vm2, %v6606_v8  ;;  %8939 = vmatprep.mubr.msk.f32.mxu1 %vm9584_vm1, %v9583_v20 }
0x2aef   :  { %v9514_v40 = vpop.eup %9513  ;;  %8947 = vmatprep.subr.mxu1 %v9583_v20 }
0x2af0   :  { %v6019_v18 = vmul.f32 %v9514_v40, %v9512_v3  ;;  %v6768_v12 = vpop.permute.xlu1 %6767 }
0x2af1   :  { %8940 = vmatmul.mubr.msk.f32.vlgmr.msra.gmra.mrb[66].mxu1 %vm227_vm2, %v5928_v60 }
0x2af2   :  { %8948 = vmatpush3.xpose.msk.msra.mxu1 %vm227_vm2, %v6768_v12  ;;  %8905 = vmatmul.mubr.msk.f32.vlgmr.msra.gmra.mrb[82].mxu0 %vm302_vm3, %v6019_v18 }
0x2af3   :  { %8908 = vmatpush3.xpose.msk.msra.mxu0 %vm227_vm2, %v6096_v52  ;;  %8949 = vmatprep.mubr.msk.f32.mxu1 %vm9584_vm1, %v9583_v20 }
0x2af4   :  { %v6934_v13 = vpop.permute.xlu1 %6933  ;;  %8957 = vmatprep.subr.mxu1 %v9583_v20  ;;  %8909 = vmatprep.mubr.msk.f32.mxu0 %vm9584_vm1, %v9583_v20 }
0x2af5   :  { %8950 = vmatmul.mubr.msk.f32.vlgmr.msra.gmra.mrb[68].mxu1 %vm227_vm2, %v6766_v26  ;;  %8912 = vmatprep.subr.mxu0 %v9583_v20 }
0x2af6   :  { %8958 = vmatpush3.xpose.msk.msra.mxu1 %vm227_vm2, %v6934_v13  ;;  %8910 = vmatmul.mubr.msk.f32.vlgmr.msra.gmra.mrb[84].mxu0 %vm227_vm2, %v11174_v62 }
0x2af7   :  { %8959 = vmatprep.mubr.msk.f32.mxu1 %vm9584_vm1, %v9583_v20  ;;  %8967 = vmatprep.subr.mxu1 %v9583_v20 }
0x2af8   :  { %v7099_v15 = vpop.permute.xlu1 %7098  ;;  %8914 = vmatprep.mubr.msk.f32.mxu0 %vm9584_vm1, %v9583_v20 }
0x2af9   :  { %8960 = vmatmul.mubr.msk.f32.vlgmr.msra.gmra.mrb[70].mxu1 %vm227_vm2, %v6932_v14 }
0x2afa   :  { %8968 = vmatpush3.xpose.msk.msra.mxu1 %vm227_vm2, %v7099_v15  ;;  %8969 = vmatprep.mubr.msk.f32.mxu1 %vm9584_vm1, %v9583_v20 }
0x2afd   :  { %8970 = vmatmul.mubr.msk.f32.vlgmr.msra.gmra.mrb[72].mxu1 %vm227_vm2, %v7097_v7 }
0x2bbc   :  { %v6333_v16 = vpop.f32.mrb[62].mxu1 }
0x2bbd   :  { %v6334_v28 = vadd.f32 %v6333_v16, %v9801_v54  ;;  %v8921_v5 = vpop.f32.mrb[63].mxu1 }
0x2bbf   :  { %v6337_v21 = vsel %vm302_vm3, %v6334_v28, -inf }
0x2bc0   :  { %6338 = vmax.xlane.f32.xlu0 %v6337_v21  ;;  %v6498_v53 = vpop.f32.mrb[64].mxu1 }
0x2bc1   :  { %v6499_v10 = vadd.f32 %v6498_v53, %v9801_v54  ;;  %v8931_v22 = vpop.f32.mrb[65].mxu1 }
0x2bc3   :  { %v6502_v23 = vsel %vm302_vm3, %v6499_v10, -inf }
0x2bc4   :  { %6503 = vmax.xlane.f32.xlu0 %v6502_v23  ;;  %v6677_v24 = vpop.f32.mrb[66].mxu1 }
0x2bc5   :  { %v11235_v25 = vpop.f32.mrb[82].mxu0  ;;  %v8941_v27 = vpop.f32.mrb[67].mxu1  ;;  %v6678_v44 = vadd.f32 %v6677_v24, %v9891_v63 }
0x2bc6   :  { %v8906_v30 = vpop.f32.mrb[83].mxu0  ;;  %v5930_v27 = vadd.f32 %v11182_v50, %v11166_v51 }
0x2bc7   :  { %v6681_v46 = vsel %vm302_vm3, %v6678_v44, -inf }
0x2bc8   :  { %v6839_v31 = vpop.f32.mrb[68].mxu1 }
0x2bc9   :  { %v6840_v32 = vadd.f32 %v6839_v31, %v9891_v63  ;;  %v6167_v35 = vpop.f32.mrb[84].mxu0  ;;  %v8951_v48 = vpop.f32.mrb[69].mxu1 }
0x2bca   :  { %v11239_v36 = vadd.f32 %v6167_v35, %v9801_v54  ;;  %v8911_v38 = vpop.f32.mrb[85].mxu0 }
0x2bcb   :  { %v6843_v39 = vsel %vm302_vm3, %v6840_v32, -inf }
0x2bcc   :  { %6844 = vmax.xlane.f32.xlu0 %v6843_v39  ;;  %v7005_v45 = vpop.f32.mrb[70].mxu1  ;;  %v6171_v47 = vsel %vm302_vm3, %v11239_v36, -inf }
0x2bcd   :  { %6172 = vmax.xlane.f32.xlu1 %v6171_v47  ;;  %v8961_v55 = vpop.f32.mrb[71].mxu1  ;;  %v7006_v62 = vadd.f32 %v7005_v45, %v9891_v63 }
0x2bcf   :  { %v7009_v1 = vsel %vm302_vm3, %v7006_v62, -inf }
0x2bd0   :  { %v7170_v57 = vpop.f32.mrb[72].mxu1 }
0x2bd1   :  { %v7171_v54 = vadd.f32 %v7170_v57, %v9891_v63  ;;  %6682 = vmax.xlane.f32.xlu1 %v6681_v46  ;;  %v8971_v60 = vpop.f32.mrb[73].mxu1 }
0x2bd3   :  { %v7174_v19 = vsel %vm302_vm3, %v7171_v54, -inf }
0x2bd4   :  { %7175 = vmax.xlane.f32.xlu0 %v7174_v19 }
0x2bd5   :  { %7010 = vmax.xlane.f32.xlu1 %v7009_v1 }
0x2c4d   :  { %v6339_v42 = vpop.xlane.xlu0 %6338 }
0x2c4e   :  { %v6340_v61 = vsub.f32 %v6334_v28, %v6339_v42 }
0x2c50   :  { %v6341_v0 = vmul.f32 1.442695, %v6340_v61 }
0x2c51   :  { %v6504_v2 = vpop.xlane.xlu0 %6503 }
0x2c52   :  { %9515 = vpow2.f32 %v6341_v0  ;;  %v6505_v56 = vsub.f32 %v6499_v10, %v6504_v2 }
0x2c54   :  { %v6506_v3 = vmul.f32 1.442695, %v6505_v56 }
0x2c56   :  { %9517 = vpow2.f32 %v6506_v3 }
0x2c59   :  { %v6845_v4 = vpop.xlane.xlu0 %6844 }
0x2c5a   :  { %v6846_v52 = vsub.f32 %v6840_v32, %v6845_v4  ;;  %v6173_v6 = vpop.xlane.xlu1 %6172 }
0x2c5b   :  { %v6174_v30 = vsub.f32 %v11239_v36, %v6173_v6 }
0x2c5c   :  { %v11250_v63 = vpop.eup %9515  ;;  %v6847_v33 = vmul.f32 1.442695, %v6846_v52 }
0x2c5d   :  { %v6343_v59 = vsel %vm302_vm3, %v11250_v63, 0.0  ;;  %v6175_v31 = vmul.f32 1.442695, %v6174_v30 }
0x2c5e   :  { %9519 = vpow2.f32 %v6847_v33  ;;  %v6683_v8 = vpop.xlane.xlu1 %6682  ;;  %6344 = vadd.xlane.f32.xlu0 %v6343_v59  ;;  %v8172_v33 = vld [vmem:[%s11692_s6 + $0xc8] sm:$0xff] }
0x2c5f   :  { %v6684_v9 = vsub.f32 %v6678_v44, %v6683_v8  ;;  %v8173_v8 = vld [vmem:[%s11692_s6 + $0xd0] sm:$0xff] }
0x2c60   :  { %v11254_v40 = vpop.eup %9517 }
0x2c61   :  { %v6685_v26 = vmul.f32 1.442695, %v6684_v9  ;;  %v7176_v18 = vpop.xlane.xlu0 %7175  ;;  %v6508_v12 = vsel %vm302_vm3, %v11254_v40, 0.0  ;;  %v8174_v9 = vld [vmem:[%s11692_s6 + $0xd8] sm:$0xff] }
0x2c62   :  { %v7177_v13 = vsub.f32 %v7171_v54, %v7176_v18  ;;  %v7011_v14 = vpop.xlane.xlu1 %7010  ;;  %6509 = vadd.xlane.f32.xlu1 %v6508_v12  ;;  %v8175_v12 = vld [vmem:[%s11692_s6 + $0xe0] sm:$0xff] }
0x2c63   :  { %9521 = vpow2.f32 %v6685_v26  ;;  %v7012_v15 = vsub.f32 %v7006_v62, %v7011_v14 }
0x2c64   :  { %v7178_v7 = vmul.f32 1.442695, %v7177_v13  ;;  %v8176_v13 = vld [vmem:[%s11692_s6 + $0xe8] sm:$0xff] }
0x2c65   :  { %v7013_v16 = vmul.f32 1.442695, %v7012_v15  ;;  %v9260_v15 = vpack.c.bf16 %v8176_v13, %v8175_v12  ;;  %v8192_v12 = vld [vmem:[%s11696_s10 + $0x1a8] sm:$0xff]  ;;  %v8194_v13 = vld [vmem:[%s11696_s10 + $0x1b8] sm:$0xff] }
0x2c66   :  { %9523 = vpow2.f32 %v7178_v7 }
0x2c67   :  { %9525 = vpow2.f32 %v7013_v16  ;;  %v8177_v16 = vld [vmem:[%s11692_s6 + $0xf0] sm:$0xff] }
0x2c68   :  { %v11258_v28 = vpop.eup %9519  ;;  %9527 = vpow2.f32 %v6175_v31 }
0x2c69   :  { %v6849_v5 = vsel %vm302_vm3, %v11258_v28, 0.0 }
0x2c6a   :  { %6850 = vadd.xlane.f32.xlu1 %v6849_v5 }
0x2c6d   :  { %v9522_v21 = vpop.eup %9521 }
0x2c6e   :  { %v6687_v53 = vsel %vm302_vm3, %v9522_v21, 0.0 }
0x2c6f   :  { %6688 = vadd.xlane.f32.xlu0 %v6687_v53 }
0x2c70   :  { %v11263_v10 = vpop.eup %9523 }
0x2c71   :  { %v11265_v22 = vpop.eup %9525  ;;  %v7180_v23 = vsel %vm302_vm3, %v11263_v10, 0.0 }
0x2c72   :  { %7181 = vadd.xlane.f32.xlu1 %v7180_v23  ;;  %v7015_v24 = vsel %vm302_vm3, %v11265_v22, 0.0  ;;  %v9528_v32 = vpop.eup %9527 }
0x2c73   :  { %7016 = vadd.xlane.f32.xlu0 %v7015_v24  ;;  %v6177_v35 = vsel %vm302_vm3, %v9528_v32, 0.0 }
0x2c83   :  { %6348 = vrot.lane.b32.xlu1 %v11171_v58, %s11727_s25 }
0x2c89   :  { %6183 = vrot.lane.b32.xlu0 %v11171_v58, %s11728_s2 }
0x2c8d   :  { %6855 = vrot.lane.b32.xlu0 %v5930_v27, %s11728_s2 }
0x2c91   :  { %7185 = vrot.lane.b32.xlu0 %v5930_v27, %s11724_s24 }
0x2ca7   :  { %6178 = vadd.xlane.f32.xlu1 %v6177_v35 }
0x2cb8   :  { %6513 = vrot.lane.b32.xlu1 %v11171_v58, %s11724_s24 }
0x2cbc   :  { %7020 = vrot.lane.b32.xlu1 %v5930_v27, %s11727_s25 }
0x2ceb   :  { %v6345_v48 = vpop.xlane.xlu0 %6344 }
0x2cef   :  { %v6510_v36 = vpop.xlane.xlu1 %6509 }
0x2cf7   :  { %v6851_v39 = vpop.xlane.xlu1 %6850 }
0x2cfc   :  { %v6689_v38 = vpop.xlane.xlu0 %6688 }
0x2cff   :  { %v7182_v44 = vpop.xlane.xlu1 %7181 }
0x2d00   :  { %v7017_v51 = vpop.xlane.xlu0 %7016 }
0x2d03   :  { %v6349_v45 = vpop.permute.xlu1 %6348 }
0x2d04   :  { %v6184_v50 = vpop.permute.xlu0 %6183 }
0x2d05   :  { %8913 = vmatpush3.msra.mxu0 %v6184_v50 }
0x2d06   :  { %8922 = vmatprep.subr.mxu0 %v9583_v20 }
0x2d08   :  { %v6856_v61 = vpop.permute.xlu0 %6855 }
0x2d0c   :  { %v7186_v52 = vpop.permute.xlu0 %7185 }
0x2d34   :  { %v6179_v47 = vpop.xlane.xlu1 %6178 }
0x2d35   :  { %9529 = vrcp.f32 %v6179_v47 }
0x2d36   :  { %9531 = vrcp.f32 %v6345_v48 }
0x2d37   :  { %9533 = vrcp.f32 %v6510_v36 }
0x2d38   :  { %9535 = vrcp.f32 %v6689_v38  ;;  %v6514_v54 = vpop.permute.xlu1 %6513 }
0x2d39   :  { %9537 = vrcp.f32 %v6851_v39 }
0x2d3a   :  { %9539 = vrcp.f32 %v7017_v51 }
0x2d3b   :  { %9541 = vrcp.f32 %v7182_v44 }
0x2d3c   :  { %v7021_v56 = vpop.permute.xlu1 %7020 }
0x2d3f   :  { %v9530_v55 = vpop.eup %9529 }
0x2d40   :  { %v6181_v58 = vmul.f32 %v9530_v55, %v9528_v32  ;;  %v9532_v62 = vpop.eup %9531 }
0x2d41   :  { %v6347_v57 = vmul.f32 %v9532_v62, %v11250_v63  ;;  %v9534_v46 = vpop.eup %9533  ;;  %v8171_v63 = vld [vmem:[%s11692_s6 + $0xc0] sm:$0xff] }
0x2d42   :  { %8915 = vmatmul.mubr.msk.f32.vlgmr.msra.gmra.mrb[86].mxu0 %vm302_vm3, %v6181_v58  ;;  %v6512_v60 = vmul.f32 %v9534_v46, %v11254_v40  ;;  %v9536_v19 = vpop.eup %9535  ;;  %v9252_v59 = vpack.c.bf16 %v8172_v33, %v8171_v63  ;;  %v9256_v40 = vpack.c.bf16 %v8174_v9, %v8173_v8  ;;  %v8190_v8 = vld [vmem:[%s11696_s10 + $0x198] sm:$0xff] }
0x2d43   :  { %8923 = vmatpush3.msra.mxu0 %v6349_v45  ;;  %8924 = vmatprep.mubr.msk.f32.mxu0 %vm9584_vm1, %v9583_v20  ;;  %v6691_v1 = vmul.f32 %v9536_v19, %v9522_v21  ;;  %v9538_v42 = vpop.eup %9537 }
0x2d44   :  { %8932 = vmatprep.subr.mxu0 %v9583_v20  ;;  %v6853_v0 = vmul.f32 %v9538_v42, %v11258_v28  ;;  %v9540_v2 = vpop.eup %9539  ;;  %9253 = vmatprep.subr.bf16.mxu1 %v9252_v59  ;;  %v8178_v28 = vld [vmem:[%s11692_s6 + $0xf8] sm:$0xff] }
0x2d45   :  { %v7019_v3 = vmul.f32 %v9540_v2, %v11265_v22  ;;  %v9542_v4 = vpop.eup %9541  ;;  %9255 = vmatpush3.bf16.msra.mxu1 %v9252_v59  ;;  %v9264_v21 = vpack.c.bf16 %v8178_v28, %v8177_v16  ;;  %v8188_v59 = vld [vmem:[%s11696_s10 + $0x188] sm:$0xff] }
0x2d46   :  { %8925 = vmatmul.mubr.msk.f32.vlgmr.msra.gmra.mrb[88].mxu0 %vm302_vm3, %v6347_v57  ;;  %v7184_v6 = vmul.f32 %v9542_v4, %v11263_v10  ;;  %9257 = vmatprep.subr.bf16.mxu1 %v9256_v40  ;;  %v9268_v9 = vpack.c.bf16 %v8190_v8, %v8188_v59  ;;  %v8196_v28 = vld [vmem:[%s11696_s10 + $0x1c8] sm:$0xff]  ;;  %v8186_v59 = vld [vmem:[%s11695_s9 + $0x3] ss:$0 sm:$0xff] }
0x2d47   :  { %8933 = vmatpush3.msra.mxu0 %v6514_v54  ;;  %8934 = vmatprep.mubr.msk.f32.mxu0 %vm9584_vm1, %v9583_v20 }
0x2d48   :  { %8942 = vmatprep.subr.mxu0 %v9583_v20 }
0x2d49   :  { %9259 = vmatpush3.bf16.msra.mxu1 %v9256_v40  ;;  %v8187_v40 = vld [vmem:[%s11696_s10 + $0x180] sm:$0xff] }
0x2d4a   :  { %8935 = vmatmul.mubr.msk.f32.vlgmr.msra.gmra.mrb[90].mxu0 %vm302_vm3, %v6512_v60  ;;  %9261 = vmatprep.subr.bf16.mxu1 %v9260_v15 }
0x2d4b   :  { %8943 = vmatpush3.msra.mxu0 %v5930_v27  ;;  %8944 = vmatprep.mubr.msk.f32.mxu0 %vm9584_vm1, %v9583_v20 }
0x2d4c   :  { %8952 = vmatprep.subr.mxu0 %v9583_v20 }
0x2d4d   :  { %9263 = vmatpush3.bf16.msra.mxu1 %v9260_v15  ;;  %v8191_v15 = vld [vmem:[%s11696_s10 + $0x1a0] sm:$0xff] }
0x2d4e   :  { %8945 = vmatmul.mubr.msk.f32.vlgmr.msra.gmra.mrb[92].mxu0 %vm302_vm3, %v6691_v1  ;;  %9265 = vmatprep.subr.bf16.mxu1 %v9264_v21 }
0x2d4f   :  { %8953 = vmatpush3.msra.mxu0 %v6856_v61  ;;  %8954 = vmatprep.mubr.msk.f32.mxu0 %vm9584_vm1, %v9583_v20 }
0x2d50   :  { %8962 = vmatprep.subr.mxu0 %v9583_v20 }
0x2d51   :  { %9267 = vmatpush3.bf16.msra.mxu1 %v9264_v21 }
0x2d52   :  { %8955 = vmatmul.mubr.msk.f32.vlgmr.msra.gmra.mrb[94].mxu0 %vm302_vm3, %v6853_v0 }
0x2d53   :  { %8963 = vmatpush3.msra.mxu0 %v7021_v56  ;;  %8964 = vmatprep.mubr.msk.f32.mxu0 %vm9584_vm1, %v9583_v20 }
0x2d54   :  { %8972 = vmatprep.subr.mxu0 %v9583_v20 }
0x2d56   :  { %8965 = vmatmul.mubr.msk.f32.vlgmr.msra.gmra.mrb[96].mxu0 %vm302_vm3, %v7019_v3 }
0x2d57   :  { %8973 = vmatpush3.msra.mxu0 %v7186_v52  ;;  %8974 = vmatprep.mubr.msk.f32.mxu0 %vm9584_vm1, %v9583_v20 }
0x2d58   :  { %9269 = vmatprep.subr.bf16.mxu0 %v9268_v9 }
0x2d5a   :  { %8975 = vmatmul.mubr.msk.f32.vlgmr.msra.gmra.mrb[98].mxu0 %vm302_vm3, %v7184_v6 }
0x2d5b   :  { %7522 = vmatprep.mubr.f32.mxu0 %v9583_v20 }
0x2e15   :  { %v6255_v26 = vpop.f32.mrb[86].mxu0 }
0x2e16   :  { %6590 = vrot.lane.b32.xlu1 %v6255_v26, %s11726_s19  ;;  %v8916_v18 = vpop.f32.mrb[87].mxu0  ;;  %v8189_v26 = vld [vmem:[%s11696_s10 + $0x190] sm:$0xff] }
0x2e17   :  { %v9270_v18 = vpack.c.bf16 %v8189_v26, %v8187_v40 }
0x2e19   :  { %v6420_v14 = vpop.f32.mrb[88].mxu0  ;;  %9271 = vmatpush1.bf16.msra.mxu0 %v9270_v18 }
0x2e1a   :  { %6594 = vrot.lane.b32.xlu0 %v6420_v14, %s11729_s23  ;;  %v8926_v7 = vpop.f32.mrb[89].mxu0  ;;  %v9272_v14 = vpack.c.bf16 %v8194_v13, %v8192_v12  ;;  %v8212_v12 = vld [vmem:[%s11698_s12 + $0x330] sm:$0xff] }
0x2e1b   :  { %v8193_v7 = vld [vmem:[%s11696_s10 + $0x1b0] sm:$0xff] }
0x2e1c   :  { %v9274_v16 = vpack.c.bf16 %v8193_v7, %v8191_v15  ;;  %9273 = vmatprep.subr.bf16.mxu0 %v9272_v14  ;;  %v8230_v14 = vld [vmem:[%s11698_s12 + $0x3c0] sm:$0xff]  ;;  %v8231_v15 = vld [vmem:[%s11698_s12 + $0x3c8] sm:$0xff] }
0x2e1d   :  { %v6585_v5 = vpop.f32.mrb[90].mxu0  ;;  %v9300_v7 = vpack.c.bf16 %v8231_v15, %v8230_v14  ;;  %v8239_v14 = vld [vmem:[%s11699_s13 + $0x3] ss:$0 sm:$0xff] }
0x2e1e   :  { %6598 = vrot.lane.b32.xlu0 %v6585_v5, %s11725_s27  ;;  %v8936_v53 = vpop.f32.mrb[91].mxu0  ;;  %9275 = vmatpush1.bf16.msra.mxu0 %v9274_v16  ;;  %v8198_v5 = vld [vmem:[%s11696_s10 + $0x1d8] sm:$0xff]  ;;  %v8214_v16 = vld [vmem:[%s11698_s12 + $0x340] sm:$0xff] }
0x2e1f   :  { %v9276_v21 = vpack.c.bf16 %v8198_v5, %v8196_v28  ;;  %v8195_v53 = vld [vmem:[%s11696_s10 + $0x1c0] sm:$0xff]  ;;  %v8215_v28 = vld [vmem:[%s11698_s12 + $0x348] sm:$0xff] }
0x2e20   :  { %v9302_v5 = vpack.c.bf16 %v8215_v28, %v8214_v16 }
0x2e21   :  { %v6761_v10 = vpop.f32.mrb[92].mxu0  ;;  %9277 = vmatprep.subr.bf16.mxu0 %v9276_v21  ;;  %v8232_v21 = vld [vmem:[%s11698_s12 + $0x3d0] sm:$0xff] }
0x2e22   :  { %v8946_v22 = vpop.f32.mrb[93].mxu0 }
0x2e25   :  { %v6927_v23 = vpop.f32.mrb[94].mxu0 }
0x2e26   :  { %7262 = vrot.lane.b32.xlu1 %v6927_v23, %s11726_s19  ;;  %v8956_v24 = vpop.f32.mrb[95].mxu0  ;;  %v8200_v23 = vld [vmem:[%s11696_s10 + $0x1e8] sm:$0xff] }
0x2e27   :  { %v8202_v24 = vld [vmem:[%s11696_s10 + $0x1f8] sm:$0xff] }
0x2e29   :  { %v7092_v27 = vpop.f32.mrb[96].mxu0 }
0x2e2a   :  { %7266 = vrot.lane.b32.xlu1 %v7092_v27, %s11729_s23  ;;  %v8966_v30 = vpop.f32.mrb[97].mxu0  ;;  %v8199_v27 = vld [vmem:[%s11696_s10 + $0x1e0] sm:$0xff] }
0x2e2b   :  { %v9280_v30 = vpack.c.bf16 %v8202_v24, %v8200_v23  ;;  %v8217_v23 = vld [vmem:[%s11698_s12 + $0x358] sm:$0xff] }
0x2e2d   :  { %v7257_v31 = vpop.f32.mrb[98].mxu0 }
0x2e2e   :  { %7270 = vrot.lane.b32.xlu0 %v7257_v31, %s11725_s27  ;;  %v8976_v32 = vpop.f32.mrb[99].mxu0  ;;  %v8201_v31 = vld [vmem:[%s11696_s10 + $0x1f0] sm:$0xff] }
0x2e2f   :  { %v9282_v32 = vpack.c.bf16 %v8201_v31, %v8199_v27  ;;  %v8234_v27 = vld [vmem:[%s11698_s12 + $0x3e0] sm:$0xff] }
0x2e88   :  { %v6591_v35 = vpop.permute.xlu1 %6590 }
0x2e89   :  { %v6601_v38 = vsel %vm227_vm2, %v11235_v25, %v6591_v35  ;;  %v8180_v25 = vld [vmem:[%s11693_s7 + $0x3] ss:$0 sm:$0xff] }
0x2e8a   :  { %v8222_v35 = vld [vmem:[%s11698_s12 + $0x380] sm:$0xff] }
0x2e8c   :  { %v6595_v48 = vpop.permute.xlu0 %6594 }
0x2e8d   :  { %v6602_v51 = vsel %vm896_vm4, %v6601_v38, %v6595_v48  ;;  %v8223_v48 = vld [vmem:[%s11698_s12 + $0x388] sm:$0xff]  ;;  %v8206_v38 = vld [vmem:[%s11698_s12 + $0x300] sm:$0xff] }
0x2e90   :  { %v6599_v50 = vpop.permute.xlu0 %6598 }
0x2e91   :  { %v6603_v36 = vsel %vm898_vm5, %v6602_v51, %v6599_v50  ;;  %v9284_v51 = vpack.c.bf16 %v8223_v48, %v8222_v35  ;;  %v8207_v50 = vld [vmem:[%s11698_s12 + $0x308] sm:$0xff] }
0x2e92   :  { %8993 = vmatprep.mubr.msk.f32.mxu1 %vm65_vm0, %v6603_v36  ;;  %v8224_v36 = vld [vmem:[%s11698_s12 + $0x390] sm:$0xff]  ;;  %v8219_v35 = vld [vmem:[%s11698_s12 + $0x368] sm:$0xff] }
0x2e93   :  { %9285 = vmatprep.subr.bf16.mxu1 %v9284_v51  ;;  %v8237_v51 = vld [vmem:[%s11698_s12 + $0x3f8] sm:$0xff] }
0x2e98   :  { %v7263_v39 = vpop.permute.xlu1 %7262 }
0x2e99   :  { %v7273_v45 = vsel %vm227_vm2, %v6761_v10, %v7263_v39  ;;  %v8197_v10 = vld [vmem:[%s11696_s10 + $0x1d0] sm:$0xff]  ;;  %v8225_v39 = vld [vmem:[%s11698_s12 + $0x398] sm:$0xff] }
0x2e9a   :  { %v9278_v22 = vpack.c.bf16 %v8197_v10, %v8195_v53  ;;  %v8233_v53 = vld [vmem:[%s11698_s12 + $0x3d8] sm:$0xff] }
0x2e9b   :  { %v9304_v10 = vpack.c.bf16 %v8233_v53, %v8232_v21 }
0x2e9c   :  { %v7267_v44 = vpop.permute.xlu1 %7266  ;;  %9279 = vmatpush1.bf16.msra.mxu0 %v9278_v22  ;;  %v8216_v22 = vld [vmem:[%s11698_s12 + $0x350] sm:$0xff] }
0x2e9d   :  { %v7274_v47 = vsel %vm896_vm4, %v7273_v45, %v7267_v44  ;;  %9281 = vmatprep.subr.bf16.mxu0 %v9280_v30  ;;  %v9286_v44 = vpack.c.bf16 %v8207_v50, %v8206_v38  ;;  %v9288_v45 = vpack.c.bf16 %v8225_v39, %v8224_v36  ;;  %v9306_v24 = vpack.c.bf16 %v8217_v23, %v8216_v22  ;;  %v8235_v30 = vld [vmem:[%s11698_s12 + $0x3e8] sm:$0xff]  ;;  %v8236_v38 = vld [vmem:[%s11698_s12 + $0x3f0] sm:$0xff]  ;;  %v8221_v39 = vld [vmem:[%s11698_s12 + $0x378] sm:$0xff] }
0x2e9e   :  { %v9308_v31 = vpack.c.bf16 %v8235_v30, %v8234_v27  ;;  %v9312_v50 = vpack.c.bf16 %v8237_v51, %v8236_v38  ;;  %v8220_v36 = vld [vmem:[%s11698_s12 + $0x370] sm:$0xff]  ;;  %v7749_v27 = vld [vmem:[%s11702_s16 + $0x80] sm:$0xff]  ;;  %v7750_v30 = vld [vmem:[%s11702_s16 + $0x88] sm:$0xff] }
0x2ea0   :  { %v7271_v55 = vpop.permute.xlu0 %7270  ;;  %9283 = vmatpush1.bf16.msra.mxu0 %v9282_v32  ;;  %v8218_v32 = vld [vmem:[%s11698_s12 + $0x360] sm:$0xff] }
0x2ea1   :  { %v7275_v58 = vsel %vm898_vm5, %v7274_v47, %v7271_v55  ;;  %v8208_v47 = vld [vmem:[%s11698_s12 + $0x310] sm:$0xff]  ;;  %v8209_v55 = vld [vmem:[%s11698_s12 + $0x318] sm:$0xff]  ;;  %v9310_v48 = vpack.c.bf16 %v8219_v35, %v8218_v32 }
0x2ea2   :  { %8994 = vmatmul.mubr.msk.f32.vlgmr.msra.gmra.mrb[74].mxu1 %vm65_vm0, %v7275_v58  ;;  %v8226_v58 = vld [vmem:[%s11698_s12 + $0x3a0] sm:$0xff] }
0x2ea3   :  { %9287 = vmatpush3.bf16.msra.mxu1 %v9286_v44  ;;  %v9314_v44 = vpack.c.bf16 %v8221_v39, %v8220_v36 }
0x2ea4   :  { %9289 = vmatprep.subr.bf16.mxu1 %v9288_v45  ;;  %v8203_v45 = vld [vmem:[%s11697_s11 + $0x6] sm:$0x3] }
0x2f75   :  { %v8995_v62 = vpop.f32.mrb[74].mxu1 }
0x2f76   :  { %v7371_v57 = vadd.f32 %v8995_v62, %v8180_v25  ;;  %v7365_v46 = vpop.f32.mrb[75].mxu1  ;;  %v9290_v62 = vpack.c.bf16 %v8209_v55, %v8208_v47  ;;  %v7445_v47 = vrot.slane %v8203_v45, %v9763_v43  ;;  %v7449_v55 = vrot.slane %v8203_v45, %v9778_v49 }
0x2f77   :  { %v7366_v54 = vadd.f32 %v8180_v25, %v7365_v46  ;;  %v8227_v25 = vld [vmem:[%s11698_s12 + $0x3a8] sm:$0xff]  ;;  %v8210_v46 = vld [vmem:[%s11698_s12 + $0x320] sm:$0xff] }
0x2f78   :  { %v7375_v60 = vadd.f32 %v7371_v57, %v11151_v37  ;;  %v9292_v57 = vpack.c.bf16 %v8227_v25, %v8226_v58  ;;  %9291 = vmatpush3.bf16.msra.mxu1 %v9290_v62 }
0x2f79   :  { %v7374_v19 = vadd.f32 %v7366_v54, %v11146_v29  ;;  %v8211_v54 = vld [vmem:[%s11698_s12 + $0x328] sm:$0xff] }
0x2f7a   :  { %v7383_v1 = vsel %vm65_vm0, %v7375_v60, 0.0  ;;  %9293 = vmatprep.subr.bf16.mxu1 %v9292_v57 }
0x2f7b   :  { %7384 = vadd.xlane.f32.xlu0 %v7383_v1  ;;  %v7380_v42 = vsel %vm65_vm0, %v7374_v19, 0.0 }
0x2f7c   :  { %7381 = vadd.xlane.f32.xlu1 %v7380_v42 }
0x3008   :  { %v7385_v61 = vpop.xlane.xlu0 %7384 }
0x3009   :  { %v7387_v0 = vmul.f32 0.015625, %v7385_v61  ;;  %v7382_v2 = vpop.xlane.xlu1 %7381 }
0x300a   :  { %v7386_v56 = vmul.f32 0.015625, %v7382_v2 }
0x300b   :  { %v11361_v3 = vsub.f32 %v7375_v60, %v7387_v0  ;;  %v9294_v60 = vpack.c.bf16 %v8211_v54, %v8210_v46 }
0x300c   :  { %v11363_v4 = vsub.f32 %v7374_v19, %v7386_v56 }
0x300d   :  { %v7391_v52 = vmul.f32 %v11361_v3, %v11361_v3  ;;  %9295 = vmatpush3.bf16.msra.mxu1 %v9294_v60 }
0x300e   :  { %v7390_v6 = vmul.f32 %v11363_v4, %v11363_v4 }
0x300f   :  { %v7395_v63 = vsel %vm65_vm0, %v7391_v52, 0.0 }
0x3010   :  { %7396 = vadd.xlane.f32.xlu1 %v7395_v63  ;;  %v7392_v33 = vsel %vm65_vm0, %v7390_v6, 0.0  ;;  %v8185_v6 = vld [vmem:[%s11694_s8 + $0x3] ss:$0 sm:$0xff] }
0x3011   :  { %7393 = vadd.xlane.f32.xlu0 %v7392_v33 }
0x309d   :  { %v7397_v19 = vpop.xlane.xlu1 %7396 }
0x309e   :  { %v7399_v1 = vmul.f32 0.015625, %v7397_v19  ;;  %v7394_v42 = vpop.xlane.xlu0 %7393 }
0x309f   :  { %v7398_v61 = vmul.f32 0.015625, %v7394_v42 }
0x30a0   :  { %v7401_v0 = vadd.f32 1e-05, %v7399_v1 }
0x30a1   :  { %v7400_v2 = vadd.f32 1e-05, %v7398_v61 }
0x30a2   :  { %9543 = vrsqrt.f32 %v7401_v0 }
0x30a3   :  { %9545 = vrsqrt.f32 %v7400_v2 }
0x30ac   :  { %v9544_v56 = vpop.eup %9543 }
0x30ad   :  { %v9546_v52 = vpop.eup %9545  ;;  %v7405_v33 = vmul.f32 %v9544_v56, %v11361_v3  ;;  %v8228_v3 = vld [vmem:[%s11698_s12 + $0x3b0] sm:$0xff] }
0x30ae   :  { %v7404_v63 = vmul.f32 %v9546_v52, %v11363_v4  ;;  %v8229_v4 = vld [vmem:[%s11698_s12 + $0x3b8] sm:$0xff] }
0x30af   :  { %v7413_v40 = vmul.f32 %v8185_v6, %v7405_v33  ;;  %v9296_v18 = vpack.c.bf16 %v8229_v4, %v8228_v3 }
0x30b0   :  { %v7412_v8 = vmul.f32 %v8185_v6, %v7404_v63 }
0x30b1   :  { %v11468_v26 = vadd.f32 %v8186_v59, %v7413_v40  ;;  %9297 = vmatprep.subr.bf16.mxu1 %v9296_v18 }
0x30b2   :  { %v11463_v9 = vadd.f32 %v8186_v59, %v7412_v8 }
0x30b4   :  { %8204 = vmatmul.mubr.msk.f32.vlgmr.msra.gmra.mrb[100].mxu0 %vm65_vm0, %v11463_v9 }
0x30b5   :  { %7528 = vmatprep.mubr.f32.mxu0 %v9583_v20  ;;  %v8213_v20 = vld [vmem:[%s11698_s12 + $0x338] sm:$0xff] }
0x30b6   :  { %v9298_v13 = vpack.c.bf16 %v8213_v20, %v8212_v12 }
0x30b8   :  { %8205 = vmatmul.mubr.msk.f32.gmra.mrb[102].mxu0 %vm65_vm0, %v11468_v26  ;;  %9299 = vmatpush3.bf16.msra.mxu1 %v9298_v13 }
0x30b9   :  { %9301 = vmatprep.subr.bf16.mxu1 %v9300_v7 }
0x30bc   :  { %9303 = vmatpush3.bf16.msra.mxu1 %v9302_v5 }
0x30bd   :  { %9305 = vmatprep.subr.bf16.mxu1 %v9304_v10 }
0x30c0   :  { %9307 = vmatpush3.bf16.msra.mxu1 %v9306_v24 }
0x30c1   :  { %9309 = vmatprep.subr.bf16.mxu1 %v9308_v31  ;;  %v9316_v31 = vpack.c.bf16 %v7750_v30, %v7749_v27 }
0x30c3   :  { %9317 = vmatprep.subr.bf16.mxu0 %v9316_v31  ;;  %v3914_v31 = vrot.slane %v10693_v41, 7  ;;  %v8242_v41 = vld [vmem:[%s11700_s14 + $0x3] ss:$0 sm:$0xff] }
0x30c4   :  { %9311 = vmatpush3.bf16.msra.mxu1 %v9310_v48 }
0x30c5   :  { %9313 = vmatprep.subr.bf16.mxu1 %v9312_v50 }
0x30c8   :  { %9315 = vmatpush3.bf16.msra.mxu1 %v9314_v44 }
0x3187   :  { %v7524_v58 = vpop.f32.mrb[100].mxu0 }
0x3188   :  { %v7525_v25 = vadd.f32 %v7524_v58, %v7445_v47  ;;  %v7526_v62 = vpop.f32.mrb[101].mxu0  ;;  %v7751_v58 = vld [vmem:[%s11702_s16 + $0x90] sm:$0xff] }
0x3189   :  { %v7527_v57 = vadd.f32 %v7526_v62, %v7449_v55 }
0x318a   :  { %v7539_v46 = vmul.f32 0.70710677, %v7525_v25  ;;  %v7535_v6 = vmul.f32 0.5, %v7525_v25  ;;  %v7752_v25 = vld [vmem:[%s11702_s16 + $0x98] sm:$0xff] }
0x318b   :  { %v7540_v54 = vmul.f32 0.70710677, %v7527_v57  ;;  %v7530_v60 = vpop.f32.mrb[102].mxu0  ;;  %v7536_v49 = vmul.f32 0.5, %v7527_v57  ;;  %v9320_v62 = vpack.c.bf16 %v7752_v25, %v7751_v58  ;;  %v7735_v57 = vld [vmem:[%s11702_s16 + $0x10] sm:$0xff] }
0x318c   :  { %9547 = verf.f32 %v7539_v46  ;;  %v7531_v19 = vadd.f32 %v7530_v60, %v7445_v47  ;;  %v7532_v1 = vpop.f32.mrb[103].mxu0  ;;  %v7736_v46 = vld [vmem:[%s11702_s16 + $0x18] sm:$0xff] }
0x318d   :  { %9549 = verf.f32 %v7540_v54  ;;  %v7533_v42 = vadd.f32 %v7532_v1, %v7449_v55  ;;  %v5817_v55 = vrot.slane %v11151_v37, 7  ;;  %v2010_v54 = vrot.slane %v10235_v17, 7  ;;  %v7754_v1 = vld [vmem:[%s11702_s16 + $0xa8] sm:$0xff]  ;;  %v7737_v17 = vld [vmem:[%s11702_s16 + $0x20] sm:$0xff] }
0x318e   :  { %v7541_v61 = vmul.f32 0.70710677, %v7531_v19  ;;  %v7537_v18 = vmul.f32 0.5, %v7531_v19  ;;  %v9322_v37 = vpack.c.bf16 %v7736_v46, %v7735_v57  ;;  %v7753_v19 = vld [vmem:[%s11702_s16 + $0xa0] sm:$0xff] }
0x318f   :  { %v7542_v0 = vmul.f32 0.70710677, %v7533_v42  ;;  %v7538_v3 = vmul.f32 0.5, %v7533_v42  ;;  %v5819_v60 = vsel %vm2012_vm6, %v11146_v29, %v5817_v55  ;;  %v9324_v42 = vpack.c.bf16 %v7754_v1, %v7753_v19 }
0x3190   :  { %9551 = verf.f32 %v7541_v61  ;;  %v7738_v61 = vld [vmem:[%s11702_s16 + $0x28] sm:$0xff]  ;;  %v2013_v29 = vsel %vm2012_vm6, %v10230_v11, %v2010_v54  ;;  %v7740_v11 = vld [vmem:[%s11702_s16 + $0x38] sm:$0xff] }
0x3191   :  { %9553 = verf.f32 %v7542_v0  ;;  %v9326_v0 = vpack.c.bf16 %v7738_v61, %v7737_v17 }
0x3196   :  { %v9548_v2 = vpop.eup %9547 }
0x3197   :  { %v9550_v43 = vpop.eup %9549  ;;  %v7547_v56 = vadd.f32 1.0, %v9548_v2  ;;  %v9358_v2 = vpack.i.bf16 %v2013_v29, %v5819_v60 }
0x3198   :  { %v7548_v52 = vadd.f32 1.0, %v9550_v43  ;;  %v7755_v43 = vld [vmem:[%s11702_s16 + $0xb0] sm:$0xff] }
0x3199   :  { %v7551_v8 = vmul.f32 %v7547_v56, %v7535_v6  ;;  %v7756_v56 = vld [vmem:[%s11702_s16 + $0xb8] sm:$0xff] }
0x319a   :  { %v9552_v63 = vpop.eup %9551  ;;  %v7552_v33 = vmul.f32 %v7548_v52, %v7536_v49  ;;  %v9328_v49 = vpack.c.bf16 %v7756_v56, %v7755_v43  ;;  %v7739_v52 = vld [vmem:[%s11702_s16 + $0x30] sm:$0xff] }
0x319b   :  { %v9554_v59 = vpop.eup %9553  ;;  %v7549_v40 = vadd.f32 1.0, %v9552_v63  ;;  %v9330_v6 = vpack.c.bf16 %v7740_v11, %v7739_v52  ;;  %v7757_v63 = vld [vmem:[%s11702_s16 + $0xc0] sm:$0xff] }
0x319c   :  { %v7550_v4 = vadd.f32 1.0, %v9554_v59  ;;  %7660 = vmatprep.mubr.f32.mxu1 %v7552_v33  ;;  %v7758_v33 = vld [vmem:[%s11702_s16 + $0xc8] sm:$0xff] }
0x319d   :  { %7661 = vmatmul.mubr.f32.vlgmr.msra.gmra.mrb[76].mxu1 %v7551_v8  ;;  %v7553_v20 = vmul.f32 %v7549_v40, %v7537_v18  ;;  %v9332_v59 = vpack.c.bf16 %v7758_v33, %v7757_v63  ;;  %v7741_v8 = vld [vmem:[%s11702_s16 + $0x40] sm:$0xff]  ;;  %v7742_v40 = vld [vmem:[%s11702_s16 + $0x48] sm:$0xff]  ;;  %v7760_v18 = vld [vmem:[%s11702_s16 + $0xd8] sm:$0xff] }
0x319e   :  { %v7554_v12 = vmul.f32 %v7550_v4, %v7538_v3  ;;  %v9334_v3 = vpack.c.bf16 %v7742_v40, %v7741_v8  ;;  %v7759_v4 = vld [vmem:[%s11702_s16 + $0xd0] sm:$0xff] }
0x31a0   :  { %7665 = vmatprep.mubr.f32.mxu1 %v7554_v12  ;;  %v9336_v12 = vpack.c.bf16 %v7760_v18, %v7759_v4 }
0x31a1   :  { %7666 = vmatmul.mubr.f32.gmra.mrb[78].mxu1 %v7553_v20  ;;  %v7743_v20 = vld [vmem:[%s11702_s16 + $0x50] sm:$0xff] }
0x3270   :  { %v8559_v13 = vpop.f32.mrb[76].mxu1 }
0x3271   :  { %v8560_v15 = vpop.f32.mrb[77].mxu1 }
0x3272   :  { %v8561_v7 = vadd.f32 %v8560_v15, %v8559_v13  ;;  %v7744_v13 = vld [vmem:[%s11702_s16 + $0x58] sm:$0xff]  ;;  %v7761_v15 = vld [vmem:[%s11702_s16 + $0xe0] sm:$0xff] }
0x3274   :  { %v7663_v16 = vadd.f32 %v8561_v7, %v8239_v14  ;;  %v8562_v28 = vpop.f32.mrb[78].mxu1  ;;  %v7762_v7 = vld [vmem:[%s11702_s16 + $0xe8] sm:$0xff] }
0x3275   :  { %v8563_v5 = vpop.f32.mrb[79].mxu1 }
0x3276   :  { %v8564_v21 = vadd.f32 %v8563_v5, %v8562_v28  ;;  %v7671_v53 = vadd.f32 %v7663_v16, %v11463_v9  ;;  %v7733_v9 = vld [vmem:[%s11702_s16] sm:$0xff]  ;;  %v9340_v16 = vpack.c.bf16 %v7762_v7, %v7761_v15  ;;  %v7746_v5 = vld [vmem:[%s11702_s16 + $0x68] sm:$0xff] }
0x3277   :  { %v7745_v28 = vld [vmem:[%s11702_s16 + $0x60] sm:$0xff] }
0x3278   :  { %v7668_v10 = vadd.f32 %v8564_v21, %v8239_v14  ;;  %v7677_v22 = vsel %vm65_vm0, %v7671_v53, 0.0  ;;  %v9338_v14 = vpack.c.bf16 %v7744_v13, %v7743_v20  ;;  %v9342_v21 = vpack.c.bf16 %v7746_v5, %v7745_v28 }
0x3279   :  { %7678 = vadd.xlane.f32.xlu0 %v7677_v22  ;;  %v7747_v22 = vld [vmem:[%s11702_s16 + $0x70] sm:$0xff] }
0x327a   :  { %v7672_v23 = vadd.f32 %v7668_v10, %v11468_v26  ;;  %v7734_v26 = vld [vmem:[%s11702_s16 + $0x8] sm:$0xff]  ;;  %v7764_v10 = vld [vmem:[%s11702_s16 + $0xf8] sm:$0xff] }
0x327b   :  { %v9318_v32 = vpack.c.bf16 %v7734_v26, %v7733_v9 }
0x327c   :  { %v7680_v24 = vsel %vm65_vm0, %v7672_v23, 0.0 }
0x327d   :  { %7681 = vadd.xlane.f32.xlu1 %v7680_v24  ;;  %9319 = vmatpush3.bf16.msra.mxu0 %v9318_v32  ;;  %v7748_v24 = vld [vmem:[%s11702_s16 + $0x78] sm:$0xff] }
0x327e   :  { %9321 = vmatprep.subr.bf16.mxu0 %v9320_v62  ;;  %v9346_v27 = vpack.c.bf16 %v7748_v24, %v7747_v22 }
0x3281   :  { %9323 = vmatpush3.bf16.msra.mxu0 %v9322_v37 }
0x3282   :  { %9325 = vmatprep.subr.bf16.mxu0 %v9324_v42 }
0x3285   :  { %9327 = vmatpush3.bf16.msra.mxu0 %v9326_v0 }
0x3286   :  { %9329 = vmatprep.subr.bf16.mxu0 %v9328_v49 }
0x3289   :  { %9331 = vmatpush3.bf16.msra.mxu0 %v9330_v6 }
0x328a   :  { %9333 = vmatprep.subr.bf16.mxu0 %v9332_v59 }
0x328d   :  { %9335 = vmatpush3.bf16.msra.mxu0 %v9334_v3 }
0x328e   :  { %9337 = vmatprep.subr.bf16.mxu0 %v9336_v12 }
0x3291   :  { %9339 = vmatpush3.bf16.msra.mxu0 %v9338_v14 }
0x3292   :  { %9341 = vmatprep.subr.bf16.mxu0 %v9340_v16 }
0x3295   :  { %9343 = vmatpush3.bf16.msra.mxu0 %v9342_v21 }
0x3306   :  { %v7679_v35 = vpop.xlane.xlu0 %7678 }
0x3307   :  { %v7683_v48 = vmul.f32 0.015625, %v7679_v35 }
0x3309   :  { %v11556_v38 = vsub.f32 %v7671_v53, %v7683_v48  ;;  %v7763_v53 = vld [vmem:[%s11702_s16 + $0xf0] sm:$0xff] }
0x330a   :  { %v7682_v51 = vpop.xlane.xlu1 %7681 }
0x330b   :  { %v7684_v50 = vmul.f32 0.015625, %v7682_v51  ;;  %v7687_v36 = vmul.f32 %v11556_v38, %v11556_v38 }
0x330d   :  { %v11560_v39 = vsub.f32 %v7672_v23, %v7684_v50  ;;  %v7689_v44 = vsel %vm65_vm0, %v7687_v36, 0.0  ;;  %v9344_v23 = vpack.c.bf16 %v7764_v10, %v7763_v53  ;;  %v3916_v50 = vsel %vm2012_vm6, %v10688_v34, %v3914_v31  ;;  %v8243_v34 = vld [vmem:[%s11701_s15 + $0x3] ss:$0 sm:$0xff]  ;;  %s9559_s15 = scalar_lea.vmem %s7851_s1, 32 }
0x330e   :  { %7690 = vadd.xlane.f32.xlu0 %v7689_v44  ;;  %p9560_p0 = scmp.ne.s32.totalorder %s7851_s1, %s9559_s15  ;;  %p9565_p2 = scmp.lt.s32.totalorder %s9559_s15, %s9559_s15 }
0x330f   :  { %v7688_v45 = vmul.f32 %v11560_v39, %v11560_v39  ;;  %9345 = vmatprep.subr.bf16.mxu0 %v9344_v23 }
0x3310   :  { %9347 = vmatpush3.bf16.msra.mxu0 %v9346_v27  ;;  %p9566_p3 = por %p9565_p2, %p9564_p1 }
0x3311   :  { %v7692_v47 = vsel %vm65_vm0, %v7688_v45, 0.0 }
0x3312   :  { %7693 = vadd.xlane.f32.xlu1 %v7692_v47  ;;  %p9567_p4 = pnand %p9566_p3, %p9560_p0 }
0x3324   :  { %9359 = vrot.lane.b32.xlu0 %v9358_v2, %s9586_s26 }
0x339b   :  { %v7691_v30 = vpop.xlane.xlu0 %7690 }
0x339c   :  { %v7695_v9 = vmul.f32 0.015625, %v7691_v30 }
0x339e   :  { %v7697_v26 = vadd.f32 1e-05, %v7695_v9 }
0x339f   :  { %v9360_v32 = vpop.permute.xlu0 %9359  ;;  %v7694_v35 = vpop.xlane.xlu1 %7693 }
0x33a0   :  { %9555 = vrsqrt.f32 %v7697_v26  ;;  %v9362_v48 = vunpack.i.h.bf16 %v9360_v32  ;;  %v7696_v51 = vmul.f32 0.015625, %v7694_v35  ;;  %v9361_v37 = vunpack.i.l.bf16 %v9360_v32 }
0x33a2   :  { %v7698_v36 = vadd.f32 1e-05, %v7696_v51  ;;  %v7732_v44 = vsel %vm65_vm0, %v3916_v50, %v9362_v48 }
0x33a3   :  { %7836 = vmatprep.mubr.f32.mxu0 %v7732_v44 }
0x33a4   :  { %9557 = vrsqrt.f32 %v7698_v36 }
0x33aa   :  { %v9556_v45 = vpop.eup %9555 }
0x33ab   :  { %v7701_v47 = vmul.f32 %v9556_v45, %v11556_v38 }
0x33ad   :  { %v7709_v62 = vmul.f32 %v8242_v41, %v7701_v47 }
0x33ae   :  { %v9558_v55 = vpop.eup %9557 }
0x33af   :  { %v7702_v58 = vmul.f32 %v9558_v55, %v11560_v39  ;;  %v7717_v46 = vadd.f32 %v8243_v34, %v7709_v62  ;;  %v8244_v39 = vld [vmem:[%s11703_s17] ss:$0 sm:$0xff] }
0x33b1   :  { %v7710_v25 = vmul.f32 %v8242_v41, %v7702_v58 }
0x33b3   :  { %v7718_v57 = vadd.f32 %v8243_v34, %v7710_v25 }
0x33b5   :  { %v7720_v54 = vrot.slane %v7718_v57, 7 }
0x33b7   :  { %v7722_v60 = vsel %vm2012_vm6, %v7717_v46, %v7720_v54 }
0x33b8   :  { %v7731_v38 = vsel %vm65_vm0, %v7722_v60, %v9361_v37 }
0x33b9   :  { %7837 = vmatmul.mubr.f32.vlgmr.msra.gmra.mrb[104].mxu0 %v7731_v38 }
0x348c   :  { %v8597_v19 = vpop.f32.mrb[104].mxu0 }
0x348d   :  { %v8598_v1 = vpop.f32.mrb[105].mxu0 }
0x348e   :  { %v8599_v42 = vadd.f32 %v8598_v1, %v8597_v19 }
0x3490   :  { %v7839_v17 = vadd.f32 %v8599_v42, %v8244_v39 }
0x3492   :  { %7843 = vst.msk [vmem:[#allocation2] sm:$0x3] %vm7842_vm7, %v7839_v17 }
0x3493   :  { %9570 = shalt.err (!%p9567_p4)
}
0x3494   :  { %s9571_s24 = scalar_lea.hbm %s11704_s18, 32 }
0x3495   :  { %p9572_p5 = scmp.ne.s32.totalorder %s11704_s18, %s9571_s24  ;;  %p9575_p6 = scmp.lt.u32.totalorder %s9571_s24, %s11704_s18 }
0x3497   :  { %p9577_p7 = pnand %p9575_p6, %p9572_p5 }
0x3499   :  { %9580 = shalt.err (!%p9577_p7)
}
0x349a   :  { %7853 = dma.vmem_to_hbm [thread:$0]  %s7851_s1, 32, %s11704_s18, [#allocation3]  }
0x349b   :  { %9581 = dma.done.wait [#allocation3], 32  }
0x349c   :  { %9582 = vsyncadd [#allocation3], 4294967264 }
0x349d   :  { %7857 = vsyncpa [#allocation3], 1 }

</bundles_post_ra>
